<compile_context>
chip_gen: v6e
topology: v6e:2x2x1
jax: 0.10.0
libtpu: 0.0.40
codegen_flags: <defaults>
</compile_context>

<pallas_src>
import functools

import jax
import jax.numpy as jnp
from jax.experimental import pallas as pl
from jax.experimental.pallas import tpu as pltpu


def _round_up(x, m):
    return pl.cdiv(x, m) * m


def _vmem_limit_bytes():
    """Per-generation scoped-VMEM budget: ~75% of physical VMEM."""
    cap = 64 * 1024 * 1024                 # conservative default (v7x per-TC VMEM)
    try:
        info = pltpu.get_tpu_info()
        cap = int(getattr(info, "vmem_capacity_bytes", cap))
    except Exception:
        pass
    return (cap * 3) // 4                  # v5e/v6e -> ~96 MiB, v7x -> ~48 MiB


def _pick_tm(desired, n_rows, per_row_bytes, resident_bytes, budget_bytes):
    """Largest row tile (multiple of 8) whose pipelined buffers fit the budget."""
    avail = max(budget_bytes - resident_bytes, 8 * per_row_bytes)
    tm = min(int(desired), avail // max(per_row_bytes, 1))
    tm = max(8, (int(tm) // 8) * 8)
    return int(min(tm, _round_up(n_rows, 8)))


def _invariant_spec(block_shape, index_map, single_buffer):
    """BlockSpec for a grid-invariant operand; single-buffer it when possible."""
    if single_buffer:
        try:
            return pl.BlockSpec(block_shape, index_map,
                                pipeline_mode=pl.Buffered(1))
        except Exception:                  # pipeline_mode/Buffered unavailable
            pass
    return pl.BlockSpec(block_shape, index_map)


# -----------------------------------------------------------------------------
# Kernel 1: sequence head
#   rows = B * seq_nums * L ; per row:
#     x = sum_l softmax(combine)[l] * esm_s[row, l, :]     (NL1, E) -> (E,)
#     x = LayerNorm_E(x) ; x = relu(x @ W1 + b1) @ W2 + b2 (E,) -> (c_s,)
#   grid = (row tiles [parallel], layer chunks [arbitrary, reduction])
# -----------------------------------------------------------------------------
def _esm_s_head_kernel(w_ref, s_ref, g_ref, bta_ref,
                       w1_ref, b1_ref, w2_ref, b2_ref,
                       o_ref, acc_ref, *, nl1, lc):
    k = pl.program_id(1)
    nk = pl.num_programs(1)
    chunk_exact = (nl1 % lc) == 0          # static

    # Softmax-weighted layer combine for this chunk of lc (<= 8) layers, fp32.
    # Short static unroll keeps the mul+add stream visible to the scheduler so
    # it hides under the input DMA.
    part = jnp.zeros((s_ref.shape[0], s_ref.shape[2]), jnp.float32)
    for l in range(lc):
        idx = k * lc + l
        contrib = w_ref[idx] * s_ref[:, l, :].astype(jnp.float32)
        if (not chunk_exact) and l > 0:
            # Tail chunk: select (not multiply) so stale pad-layer data, even
            # NaN, cannot leak into the accumulator.
            contrib = jnp.where(idx < nl1, contrib, 0.0)
        part = part + contrib

    @pl.when(k == 0)
    def _():
        acc_ref[...] = part

    @pl.when(k > 0)
    def _():
        acc_ref[...] = acc_ref[...] + part

    # LayerNorm -> Linear -> ReLU -> Linear on the last layer chunk only.
    @pl.when(k == nk - 1)
    def _():
        x = acc_ref[...]
        mu = jnp.mean(x, axis=-1, keepdims=True)
        var = jnp.mean((x - mu) ** 2, axis=-1, keepdims=True)
        xn = (x - mu) * jax.lax.rsqrt(var + 1e-5)
        xn = xn * g_ref[...].astype(jnp.float32) + bta_ref[...].astype(jnp.float32)
        h = jnp.dot(xn.astype(w1_ref.dtype), w1_ref[...],
                    preferred_element_type=jnp.float32)
        h = jnp.maximum(h + b1_ref[...].astype(jnp.float32), 0.0)
        y = jnp.dot(h.astype(w2_ref.dtype), w2_ref[...],
                    preferred_element_type=jnp.float32)
        y = y + b2_ref[...].astype(jnp.float32)
        o_ref[...] = y.astype(o_ref.dtype)


def esm_s_head(esm_s, comb, gamma, beta, w1, b1, w2, b2, *,
               desired_tm=512, out_dtype=jnp.float32):
    B, S, L, NL1, E = esm_s.shape
    E_w, c_s = w1.shape
    assert E_w == E
    N = B * S * L
    x = esm_s.reshape(N, NL1, E)           # pure view: rows x layers x embed

    # Layer-chunked reduction axis: lc layers per step (full NL1 when small so
    # the block's second-to-last dim is either a multiple of 8 or the full dim).
    lc = NL1 if NL1 <= 8 else 8
    nk = pl.cdiv(NL1, lc)

    in_isz = jnp.dtype(esm_s.dtype).itemsize
    w_isz = jnp.dtype(w1.dtype).itemsize
    out_isz = jnp.dtype(out_dtype).itemsize
    budget = _vmem_limit_bytes()
    # double-buffered input chunk + double-buffered output + fp32 accumulator
    per_row = 2 * _round_up(lc, 8) * E * in_isz + 2 * c_s * out_isz + E * 4
    resident = (E * c_s + c_s * c_s + 2 * E + 2 * c_s) * w_isz
    tm = _pick_tm(desired_tm, N, per_row, 2 * resident, budget)

    # Hoisted softmax; zero-padded to nk*lc so SMEM reads for the (masked)
    # tail chunk stay in bounds.
    wsm = jax.nn.softmax(comb.astype(jnp.float32), axis=-1)
    wsm_pad = jnp.zeros((nk * lc,), jnp.float32).at[:NL1].set(wsm)

    cost = pl.CostEstimate(
        flops=int(2 * N * (NL1 * E + E * c_s + c_s * c_s) + 8 * N * E),
        transcendentals=int(N),
        bytes_accessed=int(N * NL1 * E * in_isz + resident + N * c_s * out_isz),
    )

    def build(single_buffer):
        inv = lambda shp: _invariant_spec(shp, lambda i, k: (0, 0), single_buffer)
        return pl.pallas_call(
            functools.partial(_esm_s_head_kernel, nl1=NL1, lc=lc),
            out_shape=jax.ShapeDtypeStruct((N, c_s), out_dtype),
            grid=(pl.cdiv(N, tm), nk),
            in_specs=[
                pl.BlockSpec(memory_space=pltpu.MemorySpace.SMEM),   # combine w
                pl.BlockSpec((tm, lc, E), lambda i, k: (i, k, 0)),   # esm_s chunk
                inv((1, E)),            # gamma
                inv((1, E)),            # beta
                inv((E, c_s)),          # w1
                inv((1, c_s)),          # b1
                inv((c_s, c_s)),        # w2
                inv((1, c_s)),          # b2
            ],
            out_specs=pl.BlockSpec((tm, c_s), lambda i, k: (i, 0)),
            scratch_shapes=[pltpu.VMEM((tm, E), jnp.float32)],
            compiler_params=pltpu.CompilerParams(
                # rows shard across v7x's two TensorCores; the layer-chunk
                # (accumulator) axis must stay "arbitrary".
                dimension_semantics=("parallel", "arbitrary"),
                vmem_limit_bytes=budget),
            cost_estimate=cost,
        )

    args = (wsm_pad, x, gamma.reshape(1, E), beta.reshape(1, E),
            w1, b1.reshape(1, c_s), w2, b2.reshape(1, c_s))
    try:
        out = build(True)(*args)
    except Exception:
        out = build(False)(*args)          # single-buffering hint rejected
    return out.reshape(B, S, L, c_s)


# -----------------------------------------------------------------------------
# Kernel 2: pairwise head
#   rows = B * seq_nums * L * L ;  y = x @ Wp + bp    (heads*layers) -> c_z
# -----------------------------------------------------------------------------
def _esm_p_head_kernel(p_ref, w_ref, b_ref, o_ref):
    y = jnp.dot(p_ref[...].astype(w_ref.dtype), w_ref[...],
                preferred_element_type=jnp.float32)
    o_ref[...] = (y + b_ref[...].astype(jnp.float32)).astype(o_ref.dtype)


def esm_p_head(esm_p, w, b, *, desired_tm=2048, out_dtype=jnp.float32):
    B, S, L, L2, C = esm_p.shape
    C_w, c_z = w.shape
    assert C_w == C
    M = B * S * L * L2
    x = esm_p.reshape(M, C)                # pure view; no host-side upcast

    in_isz = jnp.dtype(esm_p.dtype).itemsize
    w_isz = jnp.dtype(w.dtype).itemsize
    out_isz = jnp.dtype(out_dtype).itemsize
    budget = _vmem_limit_bytes()
    per_row = 2 * C * in_isz + 2 * c_z * out_isz
    resident = (C * c_z + c_z) * w_isz
    tm = _pick_tm(desired_tm, M, per_row, 2 * resident, budget)

    cost = pl.CostEstimate(
        flops=int(2 * M * C * c_z),
        transcendentals=0,
        bytes_accessed=int(M * C * in_isz + resident + M * c_z * out_isz),
    )

    def build(single_buffer):
        return pl.pallas_call(
            _esm_p_head_kernel,
            out_shape=jax.ShapeDtypeStruct((M, c_z), out_dtype),
            grid=(pl.cdiv(M, tm),),
            in_specs=[
                pl.BlockSpec((tm, C), lambda i: (i, 0)),
                _invariant_spec((C, c_z), lambda i: (0, 0), single_buffer),
                _invariant_spec((1, c_z), lambda i: (0, 0), single_buffer),
            ],
            out_specs=pl.BlockSpec((tm, c_z), lambda i: (i, 0)),
            compiler_params=pltpu.CompilerParams(
                dimension_semantics=("parallel",),
                vmem_limit_bytes=budget),
            cost_estimate=cost,
        )

    try:
        out = build(True)(x, w, b.reshape(1, c_z))
    except Exception:
        out = build(False)(x, w, b.reshape(1, c_z))
    return out.reshape(B, S, L, L2, c_z)


# -----------------------------------------------------------------------------
# Pure-JAX reference (mirrors the PyTorch head) for correctness checks.
# -----------------------------------------------------------------------------
def reference_head(esm_s, esm_p, params):
    w = jax.nn.softmax(params["esm_s_combine"].astype(jnp.float32), axis=0)
    s = jnp.einsum("l,bqnle->bqne", w, esm_s.astype(jnp.float32))
    mu = jnp.mean(s, axis=-1, keepdims=True)
    var = jnp.mean((s - mu) ** 2, axis=-1, keepdims=True)
    s = (s - mu) / jnp.sqrt(var + 1e-5) * params["ln_gamma"] + params["ln_beta"]
    s = jnp.maximum(s @ params["w1"] + params["b1"], 0.0)
    s = s @ params["w2"] + params["b2"]
    p = esm_p.astype(jnp.float32) @ params["wp"] + params["bp"]
    return s, p


if __name__ == "__main__":
    # Small synthetic shapes consistent with the module:
    #   batch B=2, seq_nums=2, residues L=8, ESM num_layers=12 (=> 13 repr
    #   layers, so the chunked layer-reduction axis and its masked tail are
    #   exercised: lc=8, nk=2), embed_dim=32, attention_heads=4
    #   (=> heads*layers = 48), c_s=32, c_z=16.
    B, SEQ_NUMS, L = 2, 2, 8
    NUM_LAYERS, EMBED_DIM, HEADS = 12, 32, 4
    C_S, C_Z = 32, 16
    NL1 = NUM_LAYERS + 1
    C_IN_P = HEADS * NUM_LAYERS

    key = jax.random.PRNGKey(0)
    keys = jax.random.split(key, 9)

    # Synthetic stand-ins for the frozen ESM-2 outputs across seq_nums samples.
    esm_s_in = jax.random.normal(keys[0], (B, SEQ_NUMS, L, NL1, EMBED_DIM),
                                 dtype=jnp.float32)
    esm_p_in = jax.random.normal(keys[1], (B, SEQ_NUMS, L, L, C_IN_P),
                                 dtype=jnp.float32)

    # Head parameters (torch Linear weights are stored pre-transposed (in, out)).
    # esm_s_combine is zero-initialised in __init__; a random (trained-like)
    # value is used here so a mis-indexed layer combine can't hide behind a
    # uniform softmax.
    params = {
        "esm_s_combine": jax.random.normal(keys[2], (NL1,), jnp.float32),
        "ln_gamma": jnp.ones((EMBED_DIM,), jnp.float32),
        "ln_beta": jnp.zeros((EMBED_DIM,), jnp.float32),
        "w1": jax.random.normal(keys[3], (EMBED_DIM, C_S), jnp.float32) * 0.05,
        "b1": jax.random.normal(keys[4], (C_S,), jnp.float32) * 0.05,
        "w2": jax.random.normal(keys[5], (C_S, C_S), jnp.float32) * 0.05,
        "b2": jax.random.normal(keys[6], (C_S,), jnp.float32) * 0.05,
        "wp": jax.random.normal(keys[7], (C_IN_P, C_Z), jnp.float32) * 0.05,
        "bp": jax.random.normal(keys[8], (C_Z,), jnp.float32) * 0.05,
    }
    # NOTE: esm_p_combine is declared in __init__ but unused in forward; omitted.

    # --- fp32 path (tight tolerance vs. the fp32 reference) -----------------
    s_out = esm_s_head(esm_s_in, params["esm_s_combine"],
                       params["ln_gamma"], params["ln_beta"],
                       params["w1"], params["b1"], params["w2"], params["b2"])
    p_out = esm_p_head(esm_p_in, params["wp"], params["bp"])
    s_out, p_out = jax.block_until_ready((s_out, p_out))

    s_ref, p_ref = reference_head(esm_s_in, esm_p_in, params)
    assert s_out.shape == (B, SEQ_NUMS, L, C_S)
    assert p_out.shape == (B, SEQ_NUMS, L, L, C_Z)
    assert jnp.allclose(s_out, s_ref, atol=1e-4, rtol=1e-4)
    assert jnp.allclose(p_out, p_ref, atol=1e-4, rtol=1e-4)

    # --- bf16-in-HBM path (halves HBM bytes; fp32 accumulation in-kernel) ---
    q = lambda v: v.astype(jnp.bfloat16)
    s_out_bf = esm_s_head(q(esm_s_in), params["esm_s_combine"],
                          q(params["ln_gamma"]), q(params["ln_beta"]),
                          q(params["w1"]), q(params["b1"]),
                          q(params["w2"]), q(params["b2"]))
    p_out_bf = esm_p_head(q(esm_p_in), q(params["wp"]), q(params["bp"]))
    s_out_bf, p_out_bf = jax.block_until_ready((s_out_bf, p_out_bf))

    # Reference on the same bf16-quantized values (math in fp32).
    params_q = {k: (v if k == "esm_s_combine" else q(v).astype(jnp.float32))
                for k, v in params.items()}
    s_ref_bf, p_ref_bf = reference_head(q(esm_s_in).astype(jnp.float32),
                                        q(esm_p_in).astype(jnp.float32),
                                        params_q)
    assert jnp.allclose(s_out_bf, s_ref_bf, atol=2e-2, rtol=2e-2)
    assert jnp.allclose(p_out_bf, p_ref_bf, atol=2e-2, rtol=2e-2)

    print("KERNEL_OK")
</pallas_src>

<mosaic_0001>
module attributes {stable_mosaic.version = 11 : i64} {
  func.func @_esm_s_head_kernel(%arg0: i32, %arg1: i32, %arg2: memref<16xf32, #tpu.memory_space<smem>>, %arg3: memref<32x8x32xf32, #tpu.memory_space<vmem>>, %arg4: memref<1x32xf32, #tpu.memory_space<vmem>>, %arg5: memref<1x32xf32, #tpu.memory_space<vmem>>, %arg6: memref<32x32xf32, #tpu.memory_space<vmem>>, %arg7: memref<1x32xf32, #tpu.memory_space<vmem>>, %arg8: memref<32x32xf32, #tpu.memory_space<vmem>>, %arg9: memref<1x32xf32, #tpu.memory_space<vmem>>, %arg10: memref<32x32xf32, #tpu.memory_space<vmem>>, %arg11: memref<32x32xf32, #tpu.memory_space<vmem>>) attributes {dimension_semantics = [#tpu.dimension_semantics<parallel>, #tpu.dimension_semantics<arbitrary>], iteration_bounds = array<i64: 1, 2>, scalar_prefetch = 0 : i64, scratch_operands = 1 : i64, tpu.core_type = #tpu.core_type<tc>, window_params = [{transform_indices = @transform_0, window_bounds = array<i64: 16>}, {transform_indices = @transform_1, window_bounds = array<i64: 32, 8, 32>}, {pipeline_mode = #tpu.pipeline_mode<synchronous>, transform_indices = @transform_2, window_bounds = array<i64: 1, 32>}, {pipeline_mode = #tpu.pipeline_mode<synchronous>, transform_indices = @transform_3, window_bounds = array<i64: 1, 32>}, {pipeline_mode = #tpu.pipeline_mode<synchronous>, transform_indices = @transform_4, window_bounds = array<i64: 32, 32>}, {pipeline_mode = #tpu.pipeline_mode<synchronous>, transform_indices = @transform_5, window_bounds = array<i64: 1, 32>}, {pipeline_mode = #tpu.pipeline_mode<synchronous>, transform_indices = @transform_6, window_bounds = array<i64: 32, 32>}, {pipeline_mode = #tpu.pipeline_mode<synchronous>, transform_indices = @transform_7, window_bounds = array<i64: 1, 32>}, {transform_indices = @transform_8, window_bounds = array<i64: 32, 32>}]} {
    %cst = arith.constant 0.000000e+00 : f32
    %0 = vector.broadcast %cst : f32 to vector<32x32xf32>
    %c8_i32 = arith.constant 8 : i32
    %1 = arith.muli %arg1, %c8_i32 : i32
    %c0_i32 = arith.constant 0 : i32
    %2 = arith.addi %1, %c0_i32 : i32
    %3 = arith.index_cast %2 : i32 to index
    %4 = memref.load %arg2[%3] : memref<16xf32, #tpu.memory_space<smem>>
    %c0 = arith.constant 0 : index
    %c0_0 = arith.constant 0 : index
    %c0_1 = arith.constant 0 : index
    %5 = vector.load %arg3[%c0, %c0_0, %c0_1] : memref<32x8x32xf32, #tpu.memory_space<vmem>>, vector<32x1x32xf32>
    %6 = vector.shape_cast %5 : vector<32x1x32xf32> to vector<32x32xf32>
    %7 = vector.broadcast %4 : f32 to vector<32x32xf32>
    %8 = arith.mulf %7, %6 : vector<32x32xf32>
    %9 = arith.addf %0, %8 : vector<32x32xf32>
    %c8_i32_2 = arith.constant 8 : i32
    %10 = arith.muli %arg1, %c8_i32_2 : i32
    %c1_i32 = arith.constant 1 : i32
    %11 = arith.addi %10, %c1_i32 : i32
    %12 = arith.index_cast %11 : i32 to index
    %13 = memref.load %arg2[%12] : memref<16xf32, #tpu.memory_space<smem>>
    %c0_3 = arith.constant 0 : index
    %c1 = arith.constant 1 : index
    %c0_4 = arith.constant 0 : index
    %14 = vector.load %arg3[%c0_3, %c1, %c0_4] : memref<32x8x32xf32, #tpu.memory_space<vmem>>, vector<32x1x32xf32>
    %15 = vector.shape_cast %14 : vector<32x1x32xf32> to vector<32x32xf32>
    %16 = vector.broadcast %13 : f32 to vector<32x32xf32>
    %17 = arith.mulf %16, %15 : vector<32x32xf32>
    %c13_i32 = arith.constant 13 : i32
    %18 = arith.cmpi slt, %11, %c13_i32 : i32
    %cst_5 = arith.constant 0.000000e+00 : f32
    %19 = vector.broadcast %cst_5 : f32 to vector<32x32xf32>
    %20 = arith.select %18, %17, %19 : vector<32x32xf32>
    %21 = arith.addf %9, %20 : vector<32x32xf32>
    %c8_i32_6 = arith.constant 8 : i32
    %22 = arith.muli %arg1, %c8_i32_6 : i32
    %c2_i32 = arith.constant 2 : i32
    %23 = arith.addi %22, %c2_i32 : i32
    %24 = arith.index_cast %23 : i32 to index
    %25 = memref.load %arg2[%24] : memref<16xf32, #tpu.memory_space<smem>>
    %c0_7 = arith.constant 0 : index
    %c2 = arith.constant 2 : index
    %c0_8 = arith.constant 0 : index
    %26 = vector.load %arg3[%c0_7, %c2, %c0_8] : memref<32x8x32xf32, #tpu.memory_space<vmem>>, vector<32x1x32xf32>
    %27 = vector.shape_cast %26 : vector<32x1x32xf32> to vector<32x32xf32>
    %28 = vector.broadcast %25 : f32 to vector<32x32xf32>
    %29 = arith.mulf %28, %27 : vector<32x32xf32>
    %c13_i32_9 = arith.constant 13 : i32
    %30 = arith.cmpi slt, %23, %c13_i32_9 : i32
    %cst_10 = arith.constant 0.000000e+00 : f32
    %31 = vector.broadcast %cst_10 : f32 to vector<32x32xf32>
    %32 = arith.select %30, %29, %31 : vector<32x32xf32>
    %33 = arith.addf %21, %32 : vector<32x32xf32>
    %c8_i32_11 = arith.constant 8 : i32
    %34 = arith.muli %arg1, %c8_i32_11 : i32
    %c3_i32 = arith.constant 3 : i32
    %35 = arith.addi %34, %c3_i32 : i32
    %36 = arith.index_cast %35 : i32 to index
    %37 = memref.load %arg2[%36] : memref<16xf32, #tpu.memory_space<smem>>
    %c0_12 = arith.constant 0 : index
    %c3 = arith.constant 3 : index
    %c0_13 = arith.constant 0 : index
    %38 = vector.load %arg3[%c0_12, %c3, %c0_13] : memref<32x8x32xf32, #tpu.memory_space<vmem>>, vector<32x1x32xf32>
    %39 = vector.shape_cast %38 : vector<32x1x32xf32> to vector<32x32xf32>
    %40 = vector.broadcast %37 : f32 to vector<32x32xf32>
    %41 = arith.mulf %40, %39 : vector<32x32xf32>
    %c13_i32_14 = arith.constant 13 : i32
    %42 = arith.cmpi slt, %35, %c13_i32_14 : i32
    %cst_15 = arith.constant 0.000000e+00 : f32
    %43 = vector.broadcast %cst_15 : f32 to vector<32x32xf32>
    %44 = arith.select %42, %41, %43 : vector<32x32xf32>
    %45 = arith.addf %33, %44 : vector<32x32xf32>
    %c8_i32_16 = arith.constant 8 : i32
    %46 = arith.muli %arg1, %c8_i32_16 : i32
    %c4_i32 = arith.constant 4 : i32
    %47 = arith.addi %46, %c4_i32 : i32
    %48 = arith.index_cast %47 : i32 to index
    %49 = memref.load %arg2[%48] : memref<16xf32, #tpu.memory_space<smem>>
    %c0_17 = arith.constant 0 : index
    %c4 = arith.constant 4 : index
    %c0_18 = arith.constant 0 : index
    %50 = vector.load %arg3[%c0_17, %c4, %c0_18] : memref<32x8x32xf32, #tpu.memory_space<vmem>>, vector<32x1x32xf32>
    %51 = vector.shape_cast %50 : vector<32x1x32xf32> to vector<32x32xf32>
    %52 = vector.broadcast %49 : f32 to vector<32x32xf32>
    %53 = arith.mulf %52, %51 : vector<32x32xf32>
    %c13_i32_19 = arith.constant 13 : i32
    %54 = arith.cmpi slt, %47, %c13_i32_19 : i32
    %cst_20 = arith.constant 0.000000e+00 : f32
    %55 = vector.broadcast %cst_20 : f32 to vector<32x32xf32>
    %56 = arith.select %54, %53, %55 : vector<32x32xf32>
    %57 = arith.addf %45, %56 : vector<32x32xf32>
    %c8_i32_21 = arith.constant 8 : i32
    %58 = arith.muli %arg1, %c8_i32_21 : i32
    %c5_i32 = arith.constant 5 : i32
    %59 = arith.addi %58, %c5_i32 : i32
    %60 = arith.index_cast %59 : i32 to index
    %61 = memref.load %arg2[%60] : memref<16xf32, #tpu.memory_space<smem>>
    %c0_22 = arith.constant 0 : index
    %c5 = arith.constant 5 : index
    %c0_23 = arith.constant 0 : index
    %62 = vector.load %arg3[%c0_22, %c5, %c0_23] : memref<32x8x32xf32, #tpu.memory_space<vmem>>, vector<32x1x32xf32>
    %63 = vector.shape_cast %62 : vector<32x1x32xf32> to vector<32x32xf32>
    %64 = vector.broadcast %61 : f32 to vector<32x32xf32>
    %65 = arith.mulf %64, %63 : vector<32x32xf32>
    %c13_i32_24 = arith.constant 13 : i32
    %66 = arith.cmpi slt, %59, %c13_i32_24 : i32
    %cst_25 = arith.constant 0.000000e+00 : f32
    %67 = vector.broadcast %cst_25 : f32 to vector<32x32xf32>
    %68 = arith.select %66, %65, %67 : vector<32x32xf32>
    %69 = arith.addf %57, %68 : vector<32x32xf32>
    %c8_i32_26 = arith.constant 8 : i32
    %70 = arith.muli %arg1, %c8_i32_26 : i32
    %c6_i32 = arith.constant 6 : i32
    %71 = arith.addi %70, %c6_i32 : i32
    %72 = arith.index_cast %71 : i32 to index
    %73 = memref.load %arg2[%72] : memref<16xf32, #tpu.memory_space<smem>>
    %c0_27 = arith.constant 0 : index
    %c6 = arith.constant 6 : index
    %c0_28 = arith.constant 0 : index
    %74 = vector.load %arg3[%c0_27, %c6, %c0_28] : memref<32x8x32xf32, #tpu.memory_space<vmem>>, vector<32x1x32xf32>
    %75 = vector.shape_cast %74 : vector<32x1x32xf32> to vector<32x32xf32>
    %76 = vector.broadcast %73 : f32 to vector<32x32xf32>
    %77 = arith.mulf %76, %75 : vector<32x32xf32>
    %c13_i32_29 = arith.constant 13 : i32
    %78 = arith.cmpi slt, %71, %c13_i32_29 : i32
    %cst_30 = arith.constant 0.000000e+00 : f32
    %79 = vector.broadcast %cst_30 : f32 to vector<32x32xf32>
    %80 = arith.select %78, %77, %79 : vector<32x32xf32>
    %81 = arith.addf %69, %80 : vector<32x32xf32>
    %c8_i32_31 = arith.constant 8 : i32
    %82 = arith.muli %arg1, %c8_i32_31 : i32
    %c7_i32 = arith.constant 7 : i32
    %83 = arith.addi %82, %c7_i32 : i32
    %84 = arith.index_cast %83 : i32 to index
    %85 = memref.load %arg2[%84] : memref<16xf32, #tpu.memory_space<smem>>
    %c0_32 = arith.constant 0 : index
    %c7 = arith.constant 7 : index
    %c0_33 = arith.constant 0 : index
    %86 = vector.load %arg3[%c0_32, %c7, %c0_33] : memref<32x8x32xf32, #tpu.memory_space<vmem>>, vector<32x1x32xf32>
    %87 = vector.shape_cast %86 : vector<32x1x32xf32> to vector<32x32xf32>
    %88 = vector.broadcast %85 : f32 to vector<32x32xf32>
    %89 = arith.mulf %88, %87 : vector<32x32xf32>
    %c13_i32_34 = arith.constant 13 : i32
    %90 = arith.cmpi slt, %83, %c13_i32_34 : i32
    %cst_35 = arith.constant 0.000000e+00 : f32
    %91 = vector.broadcast %cst_35 : f32 to vector<32x32xf32>
    %92 = arith.select %90, %89, %91 : vector<32x32xf32>
    %93 = arith.addf %81, %92 : vector<32x32xf32>
    %c0_i32_36 = arith.constant 0 : i32
    %94 = arith.cmpi eq, %arg1, %c0_i32_36 : i32
    %95 = arith.extui %94 : i1 to i32
    %c0_i32_37 = arith.constant 0 : i32
    %96 = arith.cmpi ne, %95, %c0_i32_37 : i32
    scf.if %96 {
      %c0_42 = arith.constant 0 : index
      %c0_43 = arith.constant 0 : index
      %103 = vector.load %arg11[%c0_42, %c0_43] : memref<32x32xf32, #tpu.memory_space<vmem>>, vector<32x32xf32>
      tpu.vector_store %arg11[%c0_42, %c0_43], %93 {strides = array<i32>} : memref<32x32xf32, #tpu.memory_space<vmem>>, vector<32x32xf32>,
    } else {
    }
    %c0_i32_38 = arith.constant 0 : i32
    %97 = arith.cmpi sgt, %arg1, %c0_i32_38 : i32
    %98 = arith.extui %97 : i1 to i32
    %c0_i32_39 = arith.constant 0 : i32
    %99 = arith.cmpi ne, %98, %c0_i32_39 : i32
    scf.if %99 {
      %c0_42 = arith.constant 0 : index
      %c0_43 = arith.constant 0 : index
      %103 = vector.load %arg11[%c0_42, %c0_43] : memref<32x32xf32, #tpu.memory_space<vmem>>, vector<32x32xf32>
      %104 = arith.addf %103, %93 : vector<32x32xf32>
      %c0_44 = arith.constant 0 : index
      %c0_45 = arith.constant 0 : index
      %105 = vector.load %arg11[%c0_44, %c0_45] : memref<32x32xf32, #tpu.memory_space<vmem>>, vector<32x32xf32>
      tpu.vector_store %arg11[%c0_44, %c0_45], %104 {strides = array<i32>} : memref<32x32xf32, #tpu.memory_space<vmem>>, vector<32x32xf32>,
    } else {
    }
    %c1_i32_40 = arith.constant 1 : i32
    %100 = arith.cmpi eq, %arg1, %c1_i32_40 : i32
    %101 = arith.extui %100 : i1 to i32
    %c0_i32_41 = arith.constant 0 : i32
    %102 = arith.cmpi ne, %101, %c0_i32_41 : i32
    scf.if %102 {
      %c0_42 = arith.constant 0 : index
      %c0_43 = arith.constant 0 : index
      %103 = vector.load %arg11[%c0_42, %c0_43] : memref<32x32xf32, #tpu.memory_space<vmem>>, vector<32x32xf32>
      %cst_44 = arith.constant dense<0.000000e+00> : vector<32xf32>
      %104 = vector.multi_reduction <add>, %103, %cst_44 [1] : vector<32x32xf32> to vector<32xf32>
      %105 = vector.shape_cast %104 : vector<32xf32> to vector<32x1xf32>
      %cst_45 = arith.constant 3.200000e+01 : f32
      %106 = vector.broadcast %cst_45 : f32 to vector<32x1xf32>
      %107 = arith.divf %105, %106 : vector<32x1xf32>
      %108 = vector.broadcast %107 : vector<32x1xf32> to vector<32x32xf32>
      %109 = arith.subf %103, %108 : vector<32x32xf32>
      %110 = arith.mulf %109, %109 : vector<32x32xf32>
      %cst_46 = arith.constant dense<0.000000e+00> : vector<32xf32>
      %111 = vector.multi_reduction <add>, %110, %cst_46 [1] : vector<32x32xf32> to vector<32xf32>
      %112 = vector.shape_cast %111 : vector<32xf32> to vector<32x1xf32>
      %cst_47 = arith.constant 3.200000e+01 : f32
      %113 = vector.broadcast %cst_47 : f32 to vector<32x1xf32>
      %114 = arith.divf %112, %113 : vector<32x1xf32>
      %115 = vector.broadcast %107 : vector<32x1xf32> to vector<32x32xf32>
      %116 = arith.subf %103, %115 : vector<32x32xf32>
      %cst_48 = arith.constant 9.99999974E-6 : f32
      %117 = vector.broadcast %cst_48 : f32 to vector<32x1xf32>
      %118 = arith.addf %114, %117 : vector<32x1xf32>
      %119 = math.rsqrt %118 : vector<32x1xf32>
      %120 = vector.broadcast %119 : vector<32x1xf32> to vector<32x32xf32>
      %121 = arith.mulf %116, %120 : vector<32x32xf32>
      %c0_49 = arith.constant 0 : index
      %c0_50 = arith.constant 0 : index
      %122 = vector.load %arg4[%c0_49, %c0_50] : memref<1x32xf32, #tpu.memory_space<vmem>>, vector<1x32xf32>
      %123 = vector.broadcast %122 : vector<1x32xf32> to vector<32x32xf32>
      %124 = arith.mulf %121, %123 : vector<32x32xf32>
      %c0_51 = arith.constant 0 : index
      %c0_52 = arith.constant 0 : index
      %125 = vector.load %arg5[%c0_51, %c0_52] : memref<1x32xf32, #tpu.memory_space<vmem>>, vector<1x32xf32>
      %126 = vector.broadcast %125 : vector<1x32xf32> to vector<32x32xf32>
      %127 = arith.addf %124, %126 : vector<32x32xf32>
      %c0_53 = arith.constant 0 : index
      %c0_54 = arith.constant 0 : index
      %128 = vector.load %arg6[%c0_53, %c0_54] : memref<32x32xf32, #tpu.memory_space<vmem>>, vector<32x32xf32>
      %cst_55 = arith.constant dense<0.000000e+00> : vector<32x32xf32>
      %129 = tpu.matmul %127, %128, %cst_55 {dimension_numbers = #tpu.dot_dimension_numbers<[1], [0], [0], [1], [0, 0, 1, 1], [], []>} : vector<32x32xf32>, vector<32x32xf32>, vector<32x32xf32> -> vector<32x32xf32>
      %c0_56 = arith.constant 0 : index
      %c0_57 = arith.constant 0 : index
      %130 = vector.load %arg7[%c0_56, %c0_57] : memref<1x32xf32, #tpu.memory_space<vmem>>, vector<1x32xf32>
      %131 = vector.broadcast %130 : vector<1x32xf32> to vector<32x32xf32>
      %132 = arith.addf %129, %131 : vector<32x32xf32>
      %cst_58 = arith.constant 0.000000e+00 : f32
      %133 = vector.broadcast %cst_58 : f32 to vector<32x32xf32>
      %134 = arith.maximumf %132, %133 : vector<32x32xf32>
      %c0_59 = arith.constant 0 : index
      %c0_60 = arith.constant 0 : index
      %135 = vector.load %arg8[%c0_59, %c0_60] : memref<32x32xf32, #tpu.memory_space<vmem>>, vector<32x32xf32>
      %cst_61 = arith.constant dense<0.000000e+00> : vector<32x32xf32>
      %136 = tpu.matmul %134, %135, %cst_61 {dimension_numbers = #tpu.dot_dimension_numbers<[1], [0], [0], [1], [0, 0, 1, 1], [], []>} : vector<32x32xf32>, vector<32x32xf32>, vector<32x32xf32> -> vector<32x32xf32>
      %c0_62 = arith.constant 0 : index
      %c0_63 = arith.constant 0 : index
      %137 = vector.load %arg9[%c0_62, %c0_63] : memref<1x32xf32, #tpu.memory_space<vmem>>, vector<1x32xf32>
      %138 = vector.broadcast %137 : vector<1x32xf32> to vector<32x32xf32>
      %139 = arith.addf %136, %138 : vector<32x32xf32>
      %c0_64 = arith.constant 0 : index
      %c0_65 = arith.constant 0 : index
      %140 = vector.load %arg10[%c0_64, %c0_65] : memref<32x32xf32, #tpu.memory_space<vmem>>, vector<32x32xf32>
      tpu.vector_store %arg10[%c0_64, %c0_65], %139 {strides = array<i32>} : memref<32x32xf32, #tpu.memory_space<vmem>>, vector<32x32xf32>,
    } else {
    }
    return
  }
  func.func @transform_0(%arg0: i32, %arg1: i32) -> i32 {
    %c0_i32 = arith.constant 0 : i32
    %c0_i32_0 = arith.constant 0 : i32
    return %c0_i32 : i32
  }
  func.func @transform_1(%arg0: i32, %arg1: i32) -> (i32, i32, i32) {
    %c0_i32 = arith.constant 0 : i32
    %c0_i32_0 = arith.constant 0 : i32
    return %arg0, %arg1, %c0_i32 : i32, i32, i32
  }
  func.func @transform_2(%arg0: i32, %arg1: i32) -> (i32, i32) {
    %c0_i32 = arith.constant 0 : i32
    %c0_i32_0 = arith.constant 0 : i32
    %c0_i32_1 = arith.constant 0 : i32
    return %c0_i32, %c0_i32_0 : i32, i32
  }
  func.func @transform_3(%arg0: i32, %arg1: i32) -> (i32, i32) {
    %c0_i32 = arith.constant 0 : i32
    %c0_i32_0 = arith.constant 0 : i32
    %c0_i32_1 = arith.constant 0 : i32
    return %c0_i32, %c0_i32_0 : i32, i32
  }
  func.func @transform_4(%arg0: i32, %arg1: i32) -> (i32, i32) {
    %c0_i32 = arith.constant 0 : i32
    %c0_i32_0 = arith.constant 0 : i32
    %c0_i32_1 = arith.constant 0 : i32
    return %c0_i32, %c0_i32_0 : i32, i32
  }
  func.func @transform_5(%arg0: i32, %arg1: i32) -> (i32, i32) {
    %c0_i32 = arith.constant 0 : i32
    %c0_i32_0 = arith.constant 0 : i32
    %c0_i32_1 = arith.constant 0 : i32
    return %c0_i32, %c0_i32_0 : i32, i32
  }
  func.func @transform_6(%arg0: i32, %arg1: i32) -> (i32, i32) {
    %c0_i32 = arith.constant 0 : i32
    %c0_i32_0 = arith.constant 0 : i32
    %c0_i32_1 = arith.constant 0 : i32
    return %c0_i32, %c0_i32_0 : i32, i32
  }
  func.func @transform_7(%arg0: i32, %arg1: i32) -> (i32, i32) {
    %c0_i32 = arith.constant 0 : i32
    %c0_i32_0 = arith.constant 0 : i32
    %c0_i32_1 = arith.constant 0 : i32
    return %c0_i32, %c0_i32_0 : i32, i32
  }
  func.func @transform_8(%arg0: i32, %arg1: i32) -> (i32, i32) {
    %c0_i32 = arith.constant 0 : i32
    %c0_i32_0 = arith.constant 0 : i32
    return %arg0, %c0_i32 : i32, i32
  }
}

module attributes {stable_mosaic.version = 11 : i64} {
  func.func @_esm_s_head_kernel(%arg0: i32, %arg1: i32, %arg2: memref<16xf32, #tpu.memory_space<smem>>, %arg3: memref<32x8x32xf32, #tpu.memory_space<vmem>>, %arg4: memref<1x32xf32, #tpu.memory_space<vmem>>, %arg5: memref<1x32xf32, #tpu.memory_space<vmem>>, %arg6: memref<32x32xf32, #tpu.memory_space<vmem>>, %arg7: memref<1x32xf32, #tpu.memory_space<vmem>>, %arg8: memref<32x32xf32, #tpu.memory_space<vmem>>, %arg9: memref<1x32xf32, #tpu.memory_space<vmem>>, %arg10: memref<32x32xf32, #tpu.memory_space<vmem>>, %arg11: memref<32x32xf32, #tpu.memory_space<vmem>>) attributes {dimension_semantics = [#tpu.dimension_semantics<parallel>, #tpu.dimension_semantics<arbitrary>], iteration_bounds = array<i64: 1, 2>, scalar_prefetch = 0 : i64, scratch_operands = 1 : i64, tpu.core_type = #tpu.core_type<tc>, window_params = [{transform_indices = @transform_0, window_bounds = array<i64: 16>}, {transform_indices = @transform_1, window_bounds = array<i64: 32, 8, 32>}, {pipeline_mode = #tpu.pipeline_mode<synchronous>, transform_indices = @transform_2, window_bounds = array<i64: 1, 32>}, {pipeline_mode = #tpu.pipeline_mode<synchronous>, transform_indices = @transform_3, window_bounds = array<i64: 1, 32>}, {pipeline_mode = #tpu.pipeline_mode<synchronous>, transform_indices = @transform_4, window_bounds = array<i64: 32, 32>}, {pipeline_mode = #tpu.pipeline_mode<synchronous>, transform_indices = @transform_5, window_bounds = array<i64: 1, 32>}, {pipeline_mode = #tpu.pipeline_mode<synchronous>, transform_indices = @transform_6, window_bounds = array<i64: 32, 32>}, {pipeline_mode = #tpu.pipeline_mode<synchronous>, transform_indices = @transform_7, window_bounds = array<i64: 1, 32>}, {transform_indices = @transform_8, window_bounds = array<i64: 32, 32>}]} {
    %cst = arith.constant 0.000000e+00 : f32
    %0 = vector.broadcast %cst : f32 to vector<32x32xf32>
    %c8_i32 = arith.constant 8 : i32
    %1 = arith.muli %arg1, %c8_i32 : i32
    %c0_i32 = arith.constant 0 : i32
    %2 = arith.addi %1, %c0_i32 : i32
    %3 = arith.index_cast %2 : i32 to index
    %4 = memref.load %arg2[%3] : memref<16xf32, #tpu.memory_space<smem>>
    %c0 = arith.constant 0 : index
    %c0_0 = arith.constant 0 : index
    %c0_1 = arith.constant 0 : index
    %5 = vector.load %arg3[%c0, %c0_0, %c0_1] : memref<32x8x32xf32, #tpu.memory_space<vmem>>, vector<32x1x32xf32>
    %6 = vector.shape_cast %5 : vector<32x1x32xf32> to vector<32x32xf32>
    %7 = vector.broadcast %4 : f32 to vector<32x32xf32>
    %8 = arith.mulf %7, %6 : vector<32x32xf32>
    %9 = arith.addf %0, %8 : vector<32x32xf32>
    %c8_i32_2 = arith.constant 8 : i32
    %10 = arith.muli %arg1, %c8_i32_2 : i32
    %c1_i32 = arith.constant 1 : i32
    %11 = arith.addi %10, %c1_i32 : i32
    %12 = arith.index_cast %11 : i32 to index
    %13 = memref.load %arg2[%12] : memref<16xf32, #tpu.memory_space<smem>>
    %c0_3 = arith.constant 0 : index
    %c1 = arith.constant 1 : index
    %c0_4 = arith.constant 0 : index
    %14 = vector.load %arg3[%c0_3, %c1, %c0_4] : memref<32x8x32xf32, #tpu.memory_space<vmem>>, vector<32x1x32xf32>
    %15 = vector.shape_cast %14 : vector<32x1x32xf32> to vector<32x32xf32>
    %16 = vector.broadcast %13 : f32 to vector<32x32xf32>
    %17 = arith.mulf %16, %15 : vector<32x32xf32>
    %c13_i32 = arith.constant 13 : i32
    %18 = arith.cmpi slt, %11, %c13_i32 : i32
    %cst_5 = arith.constant 0.000000e+00 : f32
    %19 = vector.broadcast %cst_5 : f32 to vector<32x32xf32>
    %20 = arith.select %18, %17, %19 : vector<32x32xf32>
    %21 = arith.addf %9, %20 : vector<32x32xf32>
    %c8_i32_6 = arith.constant 8 : i32
    %22 = arith.muli %arg1, %c8_i32_6 : i32
    %c2_i32 = arith.constant 2 : i32
    %23 = arith.addi %22, %c2_i32 : i32
    %24 = arith.index_cast %23 : i32 to index
    %25 = memref.load %arg2[%24] : memref<16xf32, #tpu.memory_space<smem>>
    %c0_7 = arith.constant 0 : index
    %c2 = arith.constant 2 : index
    %c0_8 = arith.constant 0 : index
    %26 = vector.load %arg3[%c0_7, %c2, %c0_8] : memref<32x8x32xf32, #tpu.memory_space<vmem>>, vector<32x1x32xf32>
    %27 = vector.shape_cast %26 : vector<32x1x32xf32> to vector<32x32xf32>
    %28 = vector.broadcast %25 : f32 to vector<32x32xf32>
    %29 = arith.mulf %28, %27 : vector<32x32xf32>
    %c13_i32_9 = arith.constant 13 : i32
    %30 = arith.cmpi slt, %23, %c13_i32_9 : i32
    %cst_10 = arith.constant 0.000000e+00 : f32
    %31 = vector.broadcast %cst_10 : f32 to vector<32x32xf32>
    %32 = arith.select %30, %29, %31 : vector<32x32xf32>
    %33 = arith.addf %21, %32 : vector<32x32xf32>
    %c8_i32_11 = arith.constant 8 : i32
    %34 = arith.muli %arg1, %c8_i32_11 : i32
    %c3_i32 = arith.constant 3 : i32
    %35 = arith.addi %34, %c3_i32 : i32
    %36 = arith.index_cast %35 : i32 to index
    %37 = memref.load %arg2[%36] : memref<16xf32, #tpu.memory_space<smem>>
    %c0_12 = arith.constant 0 : index
    %c3 = arith.constant 3 : index
    %c0_13 = arith.constant 0 : index
    %38 = vector.load %arg3[%c0_12, %c3, %c0_13] : memref<32x8x32xf32, #tpu.memory_space<vmem>>, vector<32x1x32xf32>
    %39 = vector.shape_cast %38 : vector<32x1x32xf32> to vector<32x32xf32>
    %40 = vector.broadcast %37 : f32 to vector<32x32xf32>
    %41 = arith.mulf %40, %39 : vector<32x32xf32>
    %c13_i32_14 = arith.constant 13 : i32
    %42 = arith.cmpi slt, %35, %c13_i32_14 : i32
    %cst_15 = arith.constant 0.000000e+00 : f32
    %43 = vector.broadcast %cst_15 : f32 to vector<32x32xf32>
    %44 = arith.select %42, %41, %43 : vector<32x32xf32>
    %45 = arith.addf %33, %44 : vector<32x32xf32>
    %c8_i32_16 = arith.constant 8 : i32
    %46 = arith.muli %arg1, %c8_i32_16 : i32
    %c4_i32 = arith.constant 4 : i32
    %47 = arith.addi %46, %c4_i32 : i32
    %48 = arith.index_cast %47 : i32 to index
    %49 = memref.load %arg2[%48] : memref<16xf32, #tpu.memory_space<smem>>
    %c0_17 = arith.constant 0 : index
    %c4 = arith.constant 4 : index
    %c0_18 = arith.constant 0 : index
    %50 = vector.load %arg3[%c0_17, %c4, %c0_18] : memref<32x8x32xf32, #tpu.memory_space<vmem>>, vector<32x1x32xf32>
    %51 = vector.shape_cast %50 : vector<32x1x32xf32> to vector<32x32xf32>
    %52 = vector.broadcast %49 : f32 to vector<32x32xf32>
    %53 = arith.mulf %52, %51 : vector<32x32xf32>
    %c13_i32_19 = arith.constant 13 : i32
    %54 = arith.cmpi slt, %47, %c13_i32_19 : i32
    %cst_20 = arith.constant 0.000000e+00 : f32
    %55 = vector.broadcast %cst_20 : f32 to vector<32x32xf32>
    %56 = arith.select %54, %53, %55 : vector<32x32xf32>
    %57 = arith.addf %45, %56 : vector<32x32xf32>
    %c8_i32_21 = arith.constant 8 : i32
    %58 = arith.muli %arg1, %c8_i32_21 : i32
    %c5_i32 = arith.constant 5 : i32
    %59 = arith.addi %58, %c5_i32 : i32
    %60 = arith.index_cast %59 : i32 to index
    %61 = memref.load %arg2[%60] : memref<16xf32, #tpu.memory_space<smem>>
    %c0_22 = arith.constant 0 : index
    %c5 = arith.constant 5 : index
    %c0_23 = arith.constant 0 : index
    %62 = vector.load %arg3[%c0_22, %c5, %c0_23] : memref<32x8x32xf32, #tpu.memory_space<vmem>>, vector<32x1x32xf32>
    %63 = vector.shape_cast %62 : vector<32x1x32xf32> to vector<32x32xf32>
    %64 = vector.broadcast %61 : f32 to vector<32x32xf32>
    %65 = arith.mulf %64, %63 : vector<32x32xf32>
    %c13_i32_24 = arith.constant 13 : i32
    %66 = arith.cmpi slt, %59, %c13_i32_24 : i32
    %cst_25 = arith.constant 0.000000e+00 : f32
    %67 = vector.broadcast %cst_25 : f32 to vector<32x32xf32>
    %68 = arith.select %66, %65, %67 : vector<32x32xf32>
    %69 = arith.addf %57, %68 : vector<32x32xf32>
    %c8_i32_26 = arith.constant 8 : i32
    %70 = arith.muli %arg1, %c8_i32_26 : i32
    %c6_i32 = arith.constant 6 : i32
    %71 = arith.addi %70, %c6_i32 : i32
    %72 = arith.index_cast %71 : i32 to index
    %73 = memref.load %arg2[%72] : memref<16xf32, #tpu.memory_space<smem>>
    %c0_27 = arith.constant 0 : index
    %c6 = arith.constant 6 : index
    %c0_28 = arith.constant 0 : index
    %74 = vector.load %arg3[%c0_27, %c6, %c0_28] : memref<32x8x32xf32, #tpu.memory_space<vmem>>, vector<32x1x32xf32>
    %75 = vector.shape_cast %74 : vector<32x1x32xf32> to vector<32x32xf32>
    %76 = vector.broadcast %73 : f32 to vector<32x32xf32>
    %77 = arith.mulf %76, %75 : vector<32x32xf32>
    %c13_i32_29 = arith.constant 13 : i32
    %78 = arith.cmpi slt, %71, %c13_i32_29 : i32
    %cst_30 = arith.constant 0.000000e+00 : f32
    %79 = vector.broadcast %cst_30 : f32 to vector<32x32xf32>
    %80 = arith.select %78, %77, %79 : vector<32x32xf32>
    %81 = arith.addf %69, %80 : vector<32x32xf32>
    %c8_i32_31 = arith.constant 8 : i32
    %82 = arith.muli %arg1, %c8_i32_31 : i32
    %c7_i32 = arith.constant 7 : i32
    %83 = arith.addi %82, %c7_i32 : i32
    %84 = arith.index_cast %83 : i32 to index
    %85 = memref.load %arg2[%84] : memref<16xf32, #tpu.memory_space<smem>>
    %c0_32 = arith.constant 0 : index
    %c7 = arith.constant 7 : index
    %c0_33 = arith.constant 0 : index
    %86 = vector.load %arg3[%c0_32, %c7, %c0_33] : memref<32x8x32xf32, #tpu.memory_space<vmem>>, vector<32x1x32xf32>
    %87 = vector.shape_cast %86 : vector<32x1x32xf32> to vector<32x32xf32>
    %88 = vector.broadcast %85 : f32 to vector<32x32xf32>
    %89 = arith.mulf %88, %87 : vector<32x32xf32>
    %c13_i32_34 = arith.constant 13 : i32
    %90 = arith.cmpi slt, %83, %c13_i32_34 : i32
    %cst_35 = arith.constant 0.000000e+00 : f32
    %91 = vector.broadcast %cst_35 : f32 to vector<32x32xf32>
    %92 = arith.select %90, %89, %91 : vector<32x32xf32>
    %93 = arith.addf %81, %92 : vector<32x32xf32>
    %c0_i32_36 = arith.constant 0 : i32
    %94 = arith.cmpi eq, %arg1, %c0_i32_36 : i32
    %95 = arith.extui %94 : i1 to i32
    %c0_i32_37 = arith.constant 0 : i32
    %96 = arith.cmpi ne, %95, %c0_i32_37 : i32
    scf.if %96 {
      %c0_42 = arith.constant 0 : index
      %c0_43 = arith.constant 0 : index
      %103 = vector.load %arg11[%c0_42, %c0_43] : memref<32x32xf32, #tpu.memory_space<vmem>>, vector<32x32xf32>
      tpu.vector_store %arg11[%c0_42, %c0_43], %93 {strides = array<i32>} : memref<32x32xf32, #tpu.memory_space<vmem>>, vector<32x32xf32>,
    } else {
    }
    %c0_i32_38 = arith.constant 0 : i32
    %97 = arith.cmpi sgt, %arg1, %c0_i32_38 : i32
    %98 = arith.extui %97 : i1 to i32
    %c0_i32_39 = arith.constant 0 : i32
    %99 = arith.cmpi ne, %98, %c0_i32_39 : i32
    scf.if %99 {
      %c0_42 = arith.constant 0 : index
      %c0_43 = arith.constant 0 : index
      %103 = vector.load %arg11[%c0_42, %c0_43] : memref<32x32xf32, #tpu.memory_space<vmem>>, vector<32x32xf32>
      %104 = arith.addf %103, %93 : vector<32x32xf32>
      %c0_44 = arith.constant 0 : index
      %c0_45 = arith.constant 0 : index
      %105 = vector.load %arg11[%c0_44, %c0_45] : memref<32x32xf32, #tpu.memory_space<vmem>>, vector<32x32xf32>
      tpu.vector_store %arg11[%c0_44, %c0_45], %104 {strides = array<i32>} : memref<32x32xf32, #tpu.memory_space<vmem>>, vector<32x32xf32>,
    } else {
    }
    %c1_i32_40 = arith.constant 1 : i32
    %100 = arith.cmpi eq, %arg1, %c1_i32_40 : i32
    %101 = arith.extui %100 : i1 to i32
    %c0_i32_41 = arith.constant 0 : i32
    %102 = arith.cmpi ne, %101, %c0_i32_41 : i32
    scf.if %102 {
      %c0_42 = arith.constant 0 : index
      %c0_43 = arith.constant 0 : index
      %103 = vector.load %arg11[%c0_42, %c0_43] : memref<32x32xf32, #tpu.memory_space<vmem>>, vector<32x32xf32>
      %cst_44 = arith.constant dense<0.000000e+00> : vector<32xf32>
      %104 = vector.multi_reduction <add>, %103, %cst_44 [1] : vector<32x32xf32> to vector<32xf32>
      %105 = vector.shape_cast %104 : vector<32xf32> to vector<32x1xf32>
      %cst_45 = arith.constant 3.200000e+01 : f32
      %106 = vector.broadcast %cst_45 : f32 to vector<32x1xf32>
      %107 = arith.divf %105, %106 : vector<32x1xf32>
      %108 = vector.broadcast %107 : vector<32x1xf32> to vector<32x32xf32>
      %109 = arith.subf %103, %108 : vector<32x32xf32>
      %110 = arith.mulf %109, %109 : vector<32x32xf32>
      %cst_46 = arith.constant dense<0.000000e+00> : vector<32xf32>
      %111 = vector.multi_reduction <add>, %110, %cst_46 [1] : vector<32x32xf32> to vector<32xf32>
      %112 = vector.shape_cast %111 : vector<32xf32> to vector<32x1xf32>
      %cst_47 = arith.constant 3.200000e+01 : f32
      %113 = vector.broadcast %cst_47 : f32 to vector<32x1xf32>
      %114 = arith.divf %112, %113 : vector<32x1xf32>
      %115 = vector.broadcast %107 : vector<32x1xf32> to vector<32x32xf32>
      %116 = arith.subf %103, %115 : vector<32x32xf32>
      %cst_48 = arith.constant 9.99999974E-6 : f32
      %117 = vector.broadcast %cst_48 : f32 to vector<32x1xf32>
      %118 = arith.addf %114, %117 : vector<32x1xf32>
      %119 = math.rsqrt %118 : vector<32x1xf32>
      %120 = vector.broadcast %119 : vector<32x1xf32> to vector<32x32xf32>
      %121 = arith.mulf %116, %120 : vector<32x32xf32>
      %c0_49 = arith.constant 0 : index
      %c0_50 = arith.constant 0 : index
      %122 = vector.load %arg4[%c0_49, %c0_50] : memref<1x32xf32, #tpu.memory_space<vmem>>, vector<1x32xf32>
      %123 = vector.broadcast %122 : vector<1x32xf32> to vector<32x32xf32>
      %124 = arith.mulf %121, %123 : vector<32x32xf32>
      %c0_51 = arith.constant 0 : index
      %c0_52 = arith.constant 0 : index
      %125 = vector.load %arg5[%c0_51, %c0_52] : memref<1x32xf32, #tpu.memory_space<vmem>>, vector<1x32xf32>
      %126 = vector.broadcast %125 : vector<1x32xf32> to vector<32x32xf32>
      %127 = arith.addf %124, %126 : vector<32x32xf32>
      %c0_53 = arith.constant 0 : index
      %c0_54 = arith.constant 0 : index
      %128 = vector.load %arg6[%c0_53, %c0_54] : memref<32x32xf32, #tpu.memory_space<vmem>>, vector<32x32xf32>
      %cst_55 = arith.constant dense<0.000000e+00> : vector<32x32xf32>
      %129 = tpu.matmul %127, %128, %cst_55 {dimension_numbers = #tpu.dot_dimension_numbers<[1], [0], [0], [1], [0, 0, 1, 1], [], []>} : vector<32x32xf32>, vector<32x32xf32>, vector<32x32xf32> -> vector<32x32xf32>
      %c0_56 = arith.constant 0 : index
      %c0_57 = arith.constant 0 : index
      %130 = vector.load %arg7[%c0_56, %c0_57] : memref<1x32xf32, #tpu.memory_space<vmem>>, vector<1x32xf32>
      %131 = vector.broadcast %130 : vector<1x32xf32> to vector<32x32xf32>
      %132 = arith.addf %129, %131 : vector<32x32xf32>
      %cst_58 = arith.constant 0.000000e+00 : f32
      %133 = vector.broadcast %cst_58 : f32 to vector<32x32xf32>
      %134 = arith.maximumf %132, %133 : vector<32x32xf32>
      %c0_59 = arith.constant 0 : index
      %c0_60 = arith.constant 0 : index
      %135 = vector.load %arg8[%c0_59, %c0_60] : memref<32x32xf32, #tpu.memory_space<vmem>>, vector<32x32xf32>
      %cst_61 = arith.constant dense<0.000000e+00> : vector<32x32xf32>
      %136 = tpu.matmul %134, %135, %cst_61 {dimension_numbers = #tpu.dot_dimension_numbers<[1], [0], [0], [1], [0, 0, 1, 1], [], []>} : vector<32x32xf32>, vector<32x32xf32>, vector<32x32xf32> -> vector<32x32xf32>
      %c0_62 = arith.constant 0 : index
      %c0_63 = arith.constant 0 : index
      %137 = vector.load %arg9[%c0_62, %c0_63] : memref<1x32xf32, #tpu.memory_space<vmem>>, vector<1x32xf32>
      %138 = vector.broadcast %137 : vector<1x32xf32> to vector<32x32xf32>
      %139 = arith.addf %136, %138 : vector<32x32xf32>
      %c0_64 = arith.constant 0 : index
      %c0_65 = arith.constant 0 : index
      %140 = vector.load %arg10[%c0_64, %c0_65] : memref<32x32xf32, #tpu.memory_space<vmem>>, vector<32x32xf32>
      tpu.vector_store %arg10[%c0_64, %c0_65], %139 {strides = array<i32>} : memref<32x32xf32, #tpu.memory_space<vmem>>, vector<32x32xf32>,
    } else {
    }
    return
  }
  func.func @transform_0(%arg0: i32, %arg1: i32) -> i32 {
    %c0_i32 = arith.constant 0 : i32
    %c0_i32_0 = arith.constant 0 : i32
    return %c0_i32 : i32
  }
  func.func @transform_1(%arg0: i32, %arg1: i32) -> (i32, i32, i32) {
    %c0_i32 = arith.constant 0 : i32
    %c0_i32_0 = arith.constant 0 : i32
    return %arg0, %arg1, %c0_i32 : i32, i32, i32
  }
  func.func @transform_2(%arg0: i32, %arg1: i32) -> (i32, i32) {
    %c0_i32 = arith.constant 0 : i32
    %c0_i32_0 = arith.constant 0 : i32
    %c0_i32_1 = arith.constant 0 : i32
    return %c0_i32, %c0_i32_0 : i32, i32
  }
  func.func @transform_3(%arg0: i32, %arg1: i32) -> (i32, i32) {
    %c0_i32 = arith.constant 0 : i32
    %c0_i32_0 = arith.constant 0 : i32
    %c0_i32_1 = arith.constant 0 : i32
    return %c0_i32, %c0_i32_0 : i32, i32
  }
  func.func @transform_4(%arg0: i32, %arg1: i32) -> (i32, i32) {
    %c0_i32 = arith.constant 0 : i32
    %c0_i32_0 = arith.constant 0 : i32
    %c0_i32_1 = arith.constant 0 : i32
    return %c0_i32, %c0_i32_0 : i32, i32
  }
  func.func @transform_5(%arg0: i32, %arg1: i32) -> (i32, i32) {
    %c0_i32 = arith.constant 0 : i32
    %c0_i32_0 = arith.constant 0 : i32
    %c0_i32_1 = arith.constant 0 : i32
    return %c0_i32, %c0_i32_0 : i32, i32
  }
  func.func @transform_6(%arg0: i32, %arg1: i32) -> (i32, i32) {
    %c0_i32 = arith.constant 0 : i32
    %c0_i32_0 = arith.constant 0 : i32
    %c0_i32_1 = arith.constant 0 : i32
    return %c0_i32, %c0_i32_0 : i32, i32
  }
  func.func @transform_7(%arg0: i32, %arg1: i32) -> (i32, i32) {
    %c0_i32 = arith.constant 0 : i32
    %c0_i32_0 = arith.constant 0 : i32
    %c0_i32_1 = arith.constant 0 : i32
    return %c0_i32, %c0_i32_0 : i32, i32
  }
  func.func @transform_8(%arg0: i32, %arg1: i32) -> (i32, i32) {
    %c0_i32 = arith.constant 0 : i32
    %c0_i32_0 = arith.constant 0 : i32
    return %arg0, %c0_i32 : i32, i32
  }
}

</mosaic_0001>

<bundles_post_ra>
// kernel: tpu_custom_call.1
= control target key start
LH: loop header
LB: loop body
LE: loop exit
PB: predicated region body
PF: predicated region fallthrough
CT: control target
= control target key end

     0   :  { %13 = vsyncpa [#allocation5], 0  ;;  %s4533_s0 = inlined_call_operand.vmem [shape: f32[16], index: 0, kind: input, shape index: {}]   ;;  %s4534_s1 = inlined_call_operand.vmem [shape: f32[32,13,32], index: 1, kind: input, shape index: {}]   ;;  %s4535_s2 = inlined_call_operand.vmem [shape: f32[1,32], index: 2, kind: input, shape index: {}]   ;;  %s4536_s3 = inlined_call_operand.vmem [shape: f32[1,32], index: 3, kind: input, shape index: {}]   ;;  %s4537_s4 = inlined_call_operand.vmem [shape: f32[32,32], index: 4, kind: input, shape index: {}]   ;;  %s4538_s5 = inlined_call_operand.vmem [shape: f32[1,32], index: 5, kind: input, shape index: {}]   ;;  %s4539_s6 = inlined_call_operand.vmem [shape: f32[32,32], index: 6, kind: input, shape index: {}]   ;;  %s4540_s7 = inlined_call_operand.vmem [shape: f32[1,32], index: 7, kind: input, shape index: {}]   ;;  %s4541_s8 = inlined_call_operand.hbm [shape: f32[32,32], index: 8, kind: output, shape index: {}]  }
   0x1   :  { %14 = vsyncpa [#allocation4], 0  ;;  %s2424_s27 = smov 0   ;;  %s2426_s28 = smov 0  }
   0x2   :  { %s2428_s29 = smov 0   ;;  %s2430_s30 = smov 0  }
   0x3   :  { %s2432_s9 = smov 0  }
   0x4 LB: > { %s2147_s10 = sadd.s32 4294967295, %s2373_s9   ;;  %s29_s11 = sadd.s32 1, %s2369_s30  ;;  %s2373_s9 = sphi %s2432_s9, %s20_s9   ;;  %s2369_s30 = sphi %s2430_s30, %s4744_s30   ;;  %s2365_s29 = sphi %s2428_s29, %s4743_s29   ;;  %s2361_s28 = sphi %s2426_s28, %s4742_s28   ;;  %s2357_s27 = sphi %s2424_s27, %s4741_s27  }
   0x5   : > { %p30_p0 = scmp.ge.s32.totalorder %s29_s11, 2  ;;  %s62_s12 = sadd.s32 1, %s2361_s28 }
   0x6   : > { %p69_p1 = scmp.ne.s32.totalorder %s2361_s28, %s2357_s27  ;;  %p70_p2 = scmp.eq.s32.totalorder %s2373_s9, 0 }
   0x7   : > { %s4746_s11 = smov (%p30_p0, %s29_s11), 0  ;;  %p2148_p4 = scmp.ge.s32.totalorder %s2373_s9, 1 }
   0x8   : > { %p2457_p3 = por %p70_p2, %p69_p1  ;;  %s58_s14 = ssub.s32 %s2369_s30, %s4746_s11 }
   0x9   : > { %p238_p5 = scmp.lt.s32.totalorder %s2373_s9, 3  ;;  %p60_p6 = scmp.eq.s32.totalorder %s58_s14, 0 }
   0xa   : > { %p2471_p8 = scmp.eq.s32.totalorder %s2147_s10, 0  ;;  %s251_s20 = sshll.u32 %s4533_s0, 4  ;;  %s252_s20 = int_to_ptr.vmem [resolvable:$true] %s251_s20 }
   0xb   : > { %p2465_p7 = pnand %p2148_p4, %p238_p5  ;;  %s2288_s21 = scalar_lea.vmem %s252_s20, 16 }
   0xc   : > { %s2476_s17 = scalar_select %p60_p6, %s2361_s28, %s62_s12  }
   0xd   : > { %p2228_p9 = pneg %p2465_p7  ;;  %p2289_p11 = scmp.ne.s32.totalorder %s252_s20, %s2288_s21 }
   0xe   : > { %p2296_p1 = scmp.lt.s32.totalorder %s252_s20, %s252_s20  ;;  %p2297_p2 = scmp.lt.s32.totalorder %s2288_s21, %s2288_s21 }
   0xf   : > { %p2229_p10 = pnand %p2471_p8, %p2228_p9 }
  0x10   : > { %p2298_p4 = por %p2297_p2, %p2296_p1 }
  0x11   : > { %p2290_p12 = pneg %p2229_p10 }
  0x13   : > { %p2291_p13 = pnand %p2290_p12, %p2289_p11 }
  0x15   : > { %p2292_p0 = pneg %p2291_p13 }
  0x17   : > { %p2299_p5 = pnand %p2298_p4, %p2292_p0 }
  0x19   : > { %2302 = shalt.err (!%p2299_p5)
}
  0x1a   : > { %s2375_s22 = smov [#allocation3]   ;;  %p2150_p6 = scmp.ge.s32.totalorder %s2373_s9, 2 }
  0x1b   : > { %2231 = dma.vmem_to_smem (!%p2229_p10), %s252_s20, 16, %s2375_s22, [#allocation5]  }
  0x1c   : > { %276 = sbr.rel (%p2150_p6) target bundleno = 53 (0x35), region = 44 }
  0x21   : > { %279 = sbr.rel (!%p2457_p3) target bundleno = 53 (0x35), region = 48  ;;  %s281_s23 = sand.u32 (%p2457_p3), 1, %s2361_s28  }
  0x22   : > { %s2152_s24 = sshll.u32 (%p2457_p3), %s2369_s30, 3  ;;  %s2151_s25 = sshll.u32 (%p2457_p3), %s281_s23, 8 }
  0x23   : > { %s2493_s14 = scalar_lea.vmem (%p2457_p3), %s4534_s1, %s2152_s24  ;;  %s2498_s13 = scalar_lea.vmem (%p2457_p3), [#allocation6], %s2151_s25 }
  0x24   : > { %v379_v0 = vld [vmem:[%s2493_s14] sm:$0xff] (%p2457_p3)  ;;  %v381_v1 = vld [vmem:[%s2493_s14 + $0x10] sm:$0xff] (%p2457_p3) }
  0x25   : > { %v383_v2 = vld [vmem:[%s2493_s14 + $0x20] sm:$0xff] (%p2457_p3)  ;;  %380 = vst [vmem:[%s2498_s13] sm:$0xff] (%p2457_p3), %v379_v0  ;;  %382 = vst [vmem:[%s2498_s13 + $0x8] sm:$0xff] (%p2457_p3), %v381_v1  ;;  %v385_v3 = vld [vmem:[%s2493_s14 + $0x30] sm:$0xff] (%p2457_p3) }
  0x26   : > { %384 = vst [vmem:[%s2498_s13 + $0x10] sm:$0xff] %v383_v2  ;;  %v387_v4 = vld [vmem:[%s2493_s14 + $0x40] sm:$0xff]  ;;  %v389_v5 = vld [vmem:[%s2493_s14 + $0x50] sm:$0xff]  ;;  %386 = vst [vmem:[%s2498_s13 + $0x18] sm:$0xff] %v385_v3 }
  0x27   : > { %388 = vst [vmem:[%s2498_s13 + $0x20] sm:$0xff] %v387_v4  ;;  %390 = vst [vmem:[%s2498_s13 + $0x28] sm:$0xff] %v389_v5  ;;  %v391_v6 = vld [vmem:[%s2493_s14 + $0x60] sm:$0xff]  ;;  %v393_v7 = vld [vmem:[%s2493_s14 + $0x70] sm:$0xff] }
  0x28   : > { %v395_v8 = vld [vmem:[%s2493_s14 + $0x80] sm:$0xff]  ;;  %392 = vst [vmem:[%s2498_s13 + $0x30] sm:$0xff] %v391_v6  ;;  %394 = vst [vmem:[%s2498_s13 + $0x38] sm:$0xff] %v393_v7  ;;  %v397_v9 = vld [vmem:[%s2493_s14 + $0x90] sm:$0xff] }
  0x29   : > { %396 = vst [vmem:[%s2498_s13 + $0x40] sm:$0xff] %v395_v8  ;;  %v399_v10 = vld [vmem:[%s2493_s14 + $0xa0] sm:$0xff]  ;;  %v401_v11 = vld [vmem:[%s2493_s14 + $0xb0] sm:$0xff]  ;;  %398 = vst [vmem:[%s2498_s13 + $0x48] sm:$0xff] %v397_v9 }
  0x2a   : > { %400 = vst [vmem:[%s2498_s13 + $0x50] sm:$0xff] %v399_v10  ;;  %402 = vst [vmem:[%s2498_s13 + $0x58] sm:$0xff] %v401_v11  ;;  %v403_v12 = vld [vmem:[%s2493_s14 + $0xc0] sm:$0xff]  ;;  %v405_v13 = vld [vmem:[%s2493_s14 + $0xd0] sm:$0xff] }
  0x2b   : > { %v407_v14 = vld [vmem:[%s2493_s14 + $0xe0] sm:$0xff]  ;;  %404 = vst [vmem:[%s2498_s13 + $0x60] sm:$0xff] %v403_v12  ;;  %406 = vst [vmem:[%s2498_s13 + $0x68] sm:$0xff] %v405_v13  ;;  %v409_v15 = vld [vmem:[%s2493_s14 + $0xf0] sm:$0xff] }
  0x2c   : > { %408 = vst [vmem:[%s2498_s13 + $0x70] sm:$0xff] %v407_v14  ;;  %v411_v16 = vld [vmem:[%s2493_s14 + $0x100] sm:$0xff]  ;;  %v413_v17 = vld [vmem:[%s2493_s14 + $0x110] sm:$0xff]  ;;  %410 = vst [vmem:[%s2498_s13 + $0x78] sm:$0xff] %v409_v15 }
  0x2d   : > { %412 = vst [vmem:[%s2498_s13 + $0x80] sm:$0xff] %v411_v16  ;;  %414 = vst [vmem:[%s2498_s13 + $0x88] sm:$0xff] %v413_v17  ;;  %v415_v18 = vld [vmem:[%s2493_s14 + $0x120] sm:$0xff]  ;;  %v417_v19 = vld [vmem:[%s2493_s14 + $0x130] sm:$0xff] }
  0x2e   : > { %v419_v20 = vld [vmem:[%s2493_s14 + $0x140] sm:$0xff]  ;;  %416 = vst [vmem:[%s2498_s13 + $0x90] sm:$0xff] %v415_v18  ;;  %418 = vst [vmem:[%s2498_s13 + $0x98] sm:$0xff] %v417_v19  ;;  %v421_v21 = vld [vmem:[%s2493_s14 + $0x150] sm:$0xff] }
  0x2f   : > { %420 = vst [vmem:[%s2498_s13 + $0xa0] sm:$0xff] %v419_v20  ;;  %v423_v22 = vld [vmem:[%s2493_s14 + $0x160] sm:$0xff]  ;;  %v425_v23 = vld [vmem:[%s2493_s14 + $0x170] sm:$0xff]  ;;  %422 = vst [vmem:[%s2498_s13 + $0xa8] sm:$0xff] %v421_v21 }
  0x30   : > { %424 = vst [vmem:[%s2498_s13 + $0xb0] sm:$0xff] %v423_v22  ;;  %426 = vst [vmem:[%s2498_s13 + $0xb8] sm:$0xff] %v425_v23  ;;  %v427_v24 = vld [vmem:[%s2493_s14 + $0x180] sm:$0xff]  ;;  %v429_v25 = vld [vmem:[%s2493_s14 + $0x190] sm:$0xff] }
  0x31   : > { %v431_v26 = vld [vmem:[%s2493_s14 + $0x1a0] sm:$0xff]  ;;  %428 = vst [vmem:[%s2498_s13 + $0xc0] sm:$0xff] %v427_v24  ;;  %430 = vst [vmem:[%s2498_s13 + $0xc8] sm:$0xff] %v429_v25  ;;  %v433_v27 = vld [vmem:[%s2493_s14 + $0x1b0] sm:$0xff] }
  0x32   : > { %432 = vst [vmem:[%s2498_s13 + $0xd0] sm:$0xff] %v431_v26  ;;  %v435_v28 = vld [vmem:[%s2493_s14 + $0x1c0] sm:$0xff]  ;;  %v437_v29 = vld [vmem:[%s2493_s14 + $0x1d0] sm:$0xff]  ;;  %434 = vst [vmem:[%s2498_s13 + $0xd8] sm:$0xff] %v433_v27 }
  0x33   : > { %436 = vst [vmem:[%s2498_s13 + $0xe0] sm:$0xff] %v435_v28  ;;  %438 = vst [vmem:[%s2498_s13 + $0xe8] sm:$0xff] %v437_v29  ;;  %v439_v30 = vld [vmem:[%s2493_s14 + $0x1e0] sm:$0xff]  ;;  %v441_v31 = vld [vmem:[%s2493_s14 + $0x1f0] sm:$0xff] }
  0x34   : > { %440 = vst [vmem:[%s2498_s13 + $0xf0] sm:$0xff] %v439_v30  ;;  %442 = vst [vmem:[%s2498_s13 + $0xf8] sm:$0xff] %v441_v31 }
  0x35 PF: > { %451 = sbr.rel (%p2465_p7) target bundleno = 1051 (0x41b), region = 86 }
  0x3a   : > { %2348 = dma.done.wait (%p2471_p8), [#allocation5], 16  }
  0x3b   : > { %2350 = vsyncadd (%p2471_p8), [#allocation5], 4294967280  ;;  %s458_s18 = sand.u32 1, %s2357_s27  }
  0x3c   : > { %s2155_s19 = sshll.u32 %s458_s18, 8 }
  0x3d   : > { %s2568_s20 = scalar_lea.vmem [#allocation6], %s2155_s19 }
  0x3e   : > { %464 = sfence }
  0x3f   : > { %s2571_s15 = sshll.u32 %s2365_s29, 3  ;;  %v491_v32 = vld [vmem:[%s2568_s20] sm:$0x1]  ;;  %v492_v33 = vld [vmem:[%s2568_s20 + $0x8] sm:$0x1]  ;;  %p2157_p13 = scmp.ne.s32.totalorder %s2365_s29, 0 }
  0x40   : > { %s490_s27 = sld [smem:[#allocation3 + %s2571_s15]]  ;;  %v493_v34 = vld [vmem:[%s2568_s20 + $0x10] sm:$0x1]  ;;  %v494_v35 = vld [vmem:[%s2568_s20 + $0x18] sm:$0x1]  ;;  %s588_s16 = sadd.s32 1, %s2571_s15 }
  0x41   : > { %v495_v36 = vld [vmem:[%s2568_s20 + $0x20] sm:$0x1]  ;;  %v496_v37 = vld [vmem:[%s2568_s20 + $0x28] sm:$0x1]  ;;  %v497_v38 = vld [vmem:[%s2568_s20 + $0x30] sm:$0x1] }
  0x42   : > { %v498_v39 = vld [vmem:[%s2568_s20 + $0x38] sm:$0x1]  ;;  %v499_v40 = vld [vmem:[%s2568_s20 + $0x40] sm:$0x1]  ;;  %v500_v42 = vld [vmem:[%s2568_s20 + $0x48] sm:$0x1] }
  0x43   : > { %v501_v43 = vld [vmem:[%s2568_s20 + $0x50] sm:$0x1]  ;;  %v502_v44 = vld [vmem:[%s2568_s20 + $0x58] sm:$0x1]  ;;  %v503_v45 = vld [vmem:[%s2568_s20 + $0x60] sm:$0x1] }
  0x44   : > { %v504_v46 = vld [vmem:[%s2568_s20 + $0x68] sm:$0x1]  ;;  %v505_v47 = vld [vmem:[%s2568_s20 + $0x70] sm:$0x1]  ;;  %v506_v48 = vld [vmem:[%s2568_s20 + $0x78] sm:$0x1] }
  0x45   : > { %v507_v49 = vld [vmem:[%s2568_s20 + $0x80] sm:$0x1]  ;;  %s2596_s21 = sld [smem:[#allocation3 + %s588_s16]]  ;;  %v508_v50 = vld [vmem:[%s2568_s20 + $0x88] sm:$0x1]  ;;  %p2654_p3 = scmp.lt.s32.totalorder %s588_s16, 13 }
  0x46   : > { %v2584_v41 = vstv %s490_s27  ;;  %v509_v51 = vld [vmem:[%s2568_s20 + $0x90] sm:$0x1]  ;;  %v510_v52 = vld [vmem:[%s2568_s20 + $0x98] sm:$0x1]  ;;  %v511_v53 = vld [vmem:[%s2568_s20 + $0xa0] sm:$0x1] }
  0x47   : > { %v2603_v54 = vmul.f32 %v2584_v41, %v491_v32  ;;  %v512_v55 = vld [vmem:[%s2568_s20 + $0xa8] sm:$0x1]  ;;  %v513_v56 = vld [vmem:[%s2568_s20 + $0xb0] sm:$0x1]  ;;  %v514_v57 = vld [vmem:[%s2568_s20 + $0xb8] sm:$0x1]  ;;  %v2609_v58 = vmul.f32 %v2584_v41, %v492_v33  ;;  %v2612_v59 = vmul.f32 %v2584_v41, %v493_v34  ;;  %v2615_v60 = vmul.f32 %v2584_v41, %v494_v35 }
  0x48   : > { %v2618_v61 = vmul.f32 %v2584_v41, %v495_v36  ;;  %v515_v62 = vld [vmem:[%s2568_s20 + $0xc0] sm:$0x1]  ;;  %v516_v63 = vld [vmem:[%s2568_s20 + $0xc8] sm:$0x1]  ;;  %v517_v0 = vld [vmem:[%s2568_s20 + $0xd0] sm:$0x1]  ;;  %v2625_v2 = vmul.f32 %v2584_v41, %v496_v37  ;;  %v2628_v3 = vmul.f32 %v2584_v41, %v497_v38  ;;  %v2631_v4 = vmul.f32 %v2584_v41, %v498_v39 }
  0x49   : > { %v518_v1 = vld [vmem:[%s2568_s20 + $0xd8] sm:$0x1]  ;;  %v2634_v5 = vmul.f32 %v2584_v41, %v499_v40  ;;  %v519_v6 = vld [vmem:[%s2568_s20 + $0xe0] sm:$0x1]  ;;  %v520_v7 = vld [vmem:[%s2568_s20 + $0xe8] sm:$0x1]  ;;  %v2641_v10 = vmul.f32 %v2584_v41, %v500_v42  ;;  %v2644_v11 = vmul.f32 %v2584_v41, %v501_v43  ;;  %v2647_v12 = vmul.f32 %v2584_v41, %v502_v44 }
  0x4a   : > { %v521_v8 = vld [vmem:[%s2568_s20 + $0xf0] sm:$0x1]  ;;  %v522_v9 = vld [vmem:[%s2568_s20 + $0xf8] sm:$0x1]  ;;  %v2650_v13 = vmul.f32 %v2584_v41, %v503_v45  ;;  %v2659_v14 = vmul.f32 %v2584_v41, %v504_v46  ;;  %v2662_v15 = vmul.f32 %v2584_v41, %v505_v47  ;;  %v2665_v16 = vmul.f32 %v2584_v41, %v506_v48  ;;  %v590_v18 = vld [vmem:[%s2568_s20 + $0x1] sm:$0x1] }
  0x4b   : > { %v2668_v17 = vmul.f32 %v2584_v41, %v507_v49  ;;  %v591_v19 = vld [vmem:[%s2568_s20 + $0x9] sm:$0x1]  ;;  %v592_v20 = vld [vmem:[%s2568_s20 + $0x11] sm:$0x1]  ;;  %v593_v21 = vld [vmem:[%s2568_s20 + $0x19] sm:$0x1]  ;;  %v2675_v22 = vmul.f32 %v2584_v41, %v508_v50  ;;  %v2678_v23 = vmul.f32 %v2584_v41, %v509_v51  ;;  %v2681_v24 = vmul.f32 %v2584_v41, %v510_v52 }
  0x4c   : > { %v2684_v25 = vmul.f32 %v2584_v41, %v511_v53  ;;  %v594_v26 = vld [vmem:[%s2568_s20 + $0x21] sm:$0x1]  ;;  %v595_v27 = vld [vmem:[%s2568_s20 + $0x29] sm:$0x1]  ;;  %v596_v28 = vld [vmem:[%s2568_s20 + $0x31] sm:$0x1]  ;;  %v2690_v29 = vmul.f32 %v2584_v41, %v512_v55  ;;  %v2693_v30 = vmul.f32 %v2584_v41, %v513_v56  ;;  %v2696_v31 = vmul.f32 %v2584_v41, %v514_v57 }
  0x4d   : > { %v597_v32 = vld [vmem:[%s2568_s20 + $0x39] sm:$0x1]  ;;  %v598_v33 = vld [vmem:[%s2568_s20 + $0x41] sm:$0x1]  ;;  %v599_v34 = vld [vmem:[%s2568_s20 + $0x49] sm:$0x1]  ;;  %v2702_v35 = vstv %s2596_s21  ;;  %v2705_v36 = vmul.f32 %v2584_v41, %v515_v62  ;;  %v2708_v37 = vmul.f32 %v2584_v41, %v516_v63  ;;  %v2711_v38 = vmul.f32 %v2584_v41, %v517_v0 }
  0x4e   : > { %4546 = vst [vmem:[#allocation10_spill] sm:$0xff] %v2684_v25  ;;  %4547 = vst [vmem:[#allocation11_spill] sm:$0xff] %v2690_v29  ;;  %v2714_v39 = vmul.f32 %v2584_v41, %v518_v1  ;;  %v600_v40 = vld [vmem:[%s2568_s20 + $0x51] sm:$0x1]  ;;  %v601_v42 = vld [vmem:[%s2568_s20 + $0x59] sm:$0x1]  ;;  %v2720_v44 = vmul.f32 %v2584_v41, %v519_v6  ;;  %v2723_v45 = vmul.f32 %v2584_v41, %v520_v7 }
  0x4f   : > { %4548 = vst [vmem:[#allocation12_spill] sm:$0xff] %v2693_v30  ;;  %4549 = vst [vmem:[#allocation13_spill] sm:$0xff] %v2696_v31  ;;  %v602_v43 = vld [vmem:[%s2568_s20 + $0x61] sm:$0x1]  ;;  %v2726_v46 = vmul.f32 %v2584_v41, %v521_v8  ;;  %v2729_v47 = vmul.f32 %v2584_v41, %v522_v9  ;;  %v603_v48 = vld [vmem:[%s2568_s20 + $0x69] sm:$0x1]  ;;  %v623_v55 = vmul.f32 %v2702_v35, %v590_v18 }
  0x50   : > { %4550 = vst [vmem:[#allocation14_spill] sm:$0xff] %v2705_v36  ;;  %4551 = vst [vmem:[#allocation15_spill] sm:$0xff] %v2708_v37  ;;  %v604_v49 = vld [vmem:[%s2568_s20 + $0x71] sm:$0x1]  ;;  %v605_v50 = vld [vmem:[%s2568_s20 + $0x79] sm:$0x1]  ;;  %v624_v56 = vmul.f32 %v2702_v35, %v591_v19  ;;  %v625_v57 = vmul.f32 %v2702_v35, %v592_v20  ;;  %v626_v41 = vmul.f32 %v2702_v35, %v593_v21 }
  0x51   : > { %4552 = vst [vmem:[#allocation16_spill] sm:$0xff] %v2711_v38  ;;  %4553 = vst [vmem:[#allocation17_spill] sm:$0xff] %v2714_v39  ;;  %v606_v51 = vld [vmem:[%s2568_s20 + $0x81] sm:$0x1]  ;;  %v607_v52 = vld [vmem:[%s2568_s20 + $0x89] sm:$0x1]  ;;  %v627_v0 = vmul.f32 %v2702_v35, %v594_v26  ;;  %v628_v1 = vmul.f32 %v2702_v35, %v595_v27  ;;  %v629_v6 = vmul.f32 %v2702_v35, %v596_v28 }
  0x52   : > { %4554 = vst [vmem:[#allocation18_spill] sm:$0xff] %v2720_v44  ;;  %4555 = vst [vmem:[#allocation19_spill] sm:$0xff] %v2723_v45  ;;  %v608_v53 = vld [vmem:[%s2568_s20 + $0x91] sm:$0x1]  ;;  %v609_v62 = vld [vmem:[%s2568_s20 + $0x99] sm:$0x1]  ;;  %v630_v7 = vmul.f32 %v2702_v35, %v597_v32  ;;  %v631_v19 = vmul.f32 %v2702_v35, %v598_v33  ;;  %v632_v20 = vmul.f32 %v2702_v35, %v599_v34 }
  0x53   : > { %4556 = vst [vmem:[#allocation20_spill] sm:$0xff] %v2726_v46  ;;  %4557 = vst [vmem:[#allocation21_spill] sm:$0xff] %v2729_v47  ;;  %v610_v63 = vld [vmem:[%s2568_s20 + $0xa1] sm:$0x1]  ;;  %s656_s23 = scalar_select %p2654_p3, 1, 0  ;;  %v633_v21 = vmul.f32 %v2702_v35, %v600_v40  ;;  %v634_v26 = vmul.f32 %v2702_v35, %v601_v42  ;;  %v635_v47 = vmul.f32 %v2702_v35, %v602_v43 }
  0x54   : > { %v611_v8 = vld [vmem:[%s2568_s20 + $0xa9] sm:$0x1]  ;;  %v612_v9 = vld [vmem:[%s2568_s20 + $0xb1] sm:$0x1]  ;;  %v613_v18 = vld [vmem:[%s2568_s20 + $0xb9] sm:$0x1]  ;;  %v636_v46 = vmul.f32 %v2702_v35, %v603_v48  ;;  %v637_v45 = vmul.f32 %v2702_v35, %v604_v49  ;;  %v638_v44 = vmul.f32 %v2702_v35, %v605_v50  ;;  %v639_v40 = vmul.f32 %v2702_v35, %v606_v51 }
  0x55   : > { %v614_v27 = vld [vmem:[%s2568_s20 + $0xc1] sm:$0x1]  ;;  %v615_v28 = vld [vmem:[%s2568_s20 + $0xc9] sm:$0x1]  ;;  %v616_v32 = vld [vmem:[%s2568_s20 + $0xd1] sm:$0x1]  ;;  %v640_v38 = vmul.f32 %v2702_v35, %v607_v52  ;;  %v641_v42 = vmul.f32 %v2702_v35, %v608_v53  ;;  %v642_v37 = vmul.f32 %v2702_v35, %v609_v62  ;;  %v643_v43 = vmul.f32 %v2702_v35, %v610_v63 }
  0x56   : > { %v617_v33 = vld [vmem:[%s2568_s20 + $0xd9] sm:$0x1]  ;;  %v618_v39 = vld [vmem:[%s2568_s20 + $0xe1] sm:$0x1]  ;;  %v619_v34 = vld [vmem:[%s2568_s20 + $0xe9] sm:$0x1]  ;;  %v644_v48 = vmul.f32 %v2702_v35, %v611_v8  ;;  %v645_v49 = vmul.f32 %v2702_v35, %v612_v9  ;;  %v657_v50 = vstv %s656_s23  ;;  %v646_v30 = vmul.f32 %v2702_v35, %v613_v18 }
  0x57   : > { %v620_v36 = vld [vmem:[%s2568_s20 + $0xf1] sm:$0x1]  ;;  %v621_v31 = vld [vmem:[%s2568_s20 + $0xf9] sm:$0x1]  ;;  %v647_v29 = vmul.f32 %v2702_v35, %v614_v27  ;;  %v648_v51 = vmul.f32 %v2702_v35, %v615_v28  ;;  %vm658_vm0 = vcmp.eq.s32.totalorder %v657_v50, 1  ;;  %v649_v52 = vmul.f32 %v2702_v35, %v616_v32  ;;  %s723_s24 = sadd.s32 2, %s2571_s15 }
  0x58   : > { %v650_v53 = vmul.f32 %v2702_v35, %v617_v33  ;;  %v651_v62 = vmul.f32 %v2702_v35, %v618_v39  ;;  %v652_v63 = vmul.f32 %v2702_v35, %v619_v34  ;;  %v653_v8 = vmul.f32 %v2702_v35, %v620_v36  ;;  %s2815_s25 = sld [smem:[#allocation3 + %s723_s24]]  ;;  %p2825_p7 = scmp.lt.s32.totalorder %s723_s24, 13 }
  0x59   : > { %v654_v9 = vmul.f32 %v2702_v35, %v621_v31  ;;  %v659_v25 = vsel %vm658_vm0, %v623_v55, 0.0  ;;  %v660_v18 = vsel %vm658_vm0, %v624_v56, 0.0  ;;  %v661_v27 = vsel %vm658_vm0, %v625_v57, 0.0  ;;  %s858_s12 = sadd.s32 3, %s2571_s15  ;;  %s993_s27 = sadd.s32 4, %s2571_s15 }
  0x5a   : > { %v662_v28 = vsel %vm658_vm0, %v626_v41, 0.0  ;;  %v663_v32 = vsel %vm658_vm0, %v627_v0, 0.0  ;;  %v664_v33 = vsel %vm658_vm0, %v628_v1, 0.0  ;;  %v665_v39 = vsel %vm658_vm0, %v629_v6, 0.0  ;;  %s791_s14 = scalar_select %p2825_p7, 1, 0 }
  0x5b   : > { %v666_v34 = vsel %vm658_vm0, %v630_v7, 0.0  ;;  %v667_v36 = vsel %vm658_vm0, %v631_v19, 0.0  ;;  %v668_v31 = vsel %vm658_vm0, %v632_v20, 0.0  ;;  %v669_v35 = vsel %vm658_vm0, %v633_v21, 0.0  ;;  %s2930_s13 = sld [smem:[#allocation3 + %s858_s12]]  ;;  %p2956_p8 = scmp.lt.s32.totalorder %s858_s12, 13 }
  0x5c   : > { %v670_v55 = vsel %vm658_vm0, %v634_v26, 0.0  ;;  %v671_v56 = vsel %vm658_vm0, %v635_v47, 0.0  ;;  %v672_v57 = vsel %vm658_vm0, %v636_v46, 0.0  ;;  %v673_v41 = vsel %vm658_vm0, %v637_v45, 0.0  ;;  %s3165_s16 = sld [smem:[#allocation3 + %s993_s27]]  ;;  %p3167_p9 = scmp.lt.s32.totalorder %s993_s27, 13 }
  0x5d   : > { %v674_v0 = vsel %vm658_vm0, %v638_v44, 0.0  ;;  %v675_v1 = vsel %vm658_vm0, %v639_v40, 0.0  ;;  %v676_v6 = vsel %vm658_vm0, %v640_v38, 0.0  ;;  %v677_v7 = vsel %vm658_vm0, %v641_v42, 0.0  ;;  %s926_s19 = scalar_select %p2956_p8, 1, 0 }
  0x5e   : > { %v678_v19 = vsel %vm658_vm0, %v642_v37, 0.0  ;;  %v679_v20 = vsel %vm658_vm0, %v643_v43, 0.0  ;;  %v680_v21 = vsel %vm658_vm0, %v644_v48, 0.0  ;;  %v681_v47 = vsel %vm658_vm0, %v645_v49, 0.0  ;;  %s1061_s22 = scalar_select %p3167_p9, 1, 0 }
  0x5f   : > { %v682_v46 = vsel %vm658_vm0, %v646_v30, 0.0  ;;  %v683_v45 = vsel %vm658_vm0, %v647_v29, 0.0  ;;  %v684_v44 = vsel %vm658_vm0, %v648_v51, 0.0  ;;  %v685_v26 = vsel %vm658_vm0, %v649_v52, 0.0  ;;  %v726_v51 = vld [vmem:[%s2568_s20 + $0xa] sm:$0x1] }
  0x60   : > { %v686_v38 = vsel %vm658_vm0, %v650_v53, 0.0  ;;  %v687_v40 = vsel %vm658_vm0, %v651_v62, 0.0  ;;  %v688_v37 = vsel %vm658_vm0, %v652_v63, 0.0  ;;  %v689_v42 = vsel %vm658_vm0, %v653_v8, 0.0  ;;  %v728_v52 = vld [vmem:[%s2568_s20 + $0x1a] sm:$0x1] }
  0x61   : > { %v690_v43 = vsel %vm658_vm0, %v654_v9, 0.0  ;;  %v2820_v30 = vadd.f32 %v659_v25, %v2603_v54  ;;  %v2823_v29 = vadd.f32 %v660_v18, %v2609_v58  ;;  %v2830_v48 = vadd.f32 %v661_v27, %v2612_v59  ;;  %v729_v63 = vld [vmem:[%s2568_s20 + $0x22] sm:$0x1]  ;;  %v730_v8 = vld [vmem:[%s2568_s20 + $0x2a] sm:$0x1]  ;;  %v4568_v27 = vld [vmem:[#allocation12_spill] sm:$0xff] }
  0x62   : > { %v2833_v49 = vadd.f32 %v662_v28, %v2615_v60  ;;  %v2836_v50 = vadd.f32 %v663_v32, %v2618_v61  ;;  %v2839_v54 = vadd.f32 %v664_v33, %v2625_v2  ;;  %v2842_v58 = vadd.f32 %v665_v39, %v2628_v3  ;;  %v731_v9 = vld [vmem:[%s2568_s20 + $0x32] sm:$0x1]  ;;  %v732_v18 = vld [vmem:[%s2568_s20 + $0x3a] sm:$0x1]  ;;  %v4572_v32 = vld [vmem:[#allocation14_spill] sm:$0xff]  ;;  %s1128_s23 = sadd.s32 5, %s2571_s15 }
  0x63   : > { %v2845_v25 = vadd.f32 %v666_v34, %v2631_v4  ;;  %v2848_v59 = vadd.f32 %v667_v36, %v2634_v5  ;;  %v2851_v60 = vadd.f32 %v668_v31, %v2641_v10  ;;  %v2854_v61 = vadd.f32 %v669_v35, %v2644_v11  ;;  %v4570_v28 = vld [vmem:[#allocation13_spill] sm:$0xff]  ;;  %v4574_v39 = vld [vmem:[#allocation15_spill] sm:$0xff]  ;;  %v733_v36 = vld [vmem:[%s2568_s20 + $0x42] sm:$0x1]  ;;  %s1263_s24 = sadd.s32 6, %s2571_s15  ;;  %p3412_p10 = scmp.lt.s32.totalorder %s1128_s23, 13 }
  0x64   : > { %v2857_v2 = vadd.f32 %v670_v55, %v2647_v12  ;;  %v2860_v3 = vadd.f32 %v671_v56, %v2650_v13  ;;  %v2863_v4 = vadd.f32 %v672_v57, %v2659_v14  ;;  %v2867_v5 = vadd.f32 %v673_v41, %v2662_v15  ;;  %v725_v13 = vld [vmem:[%s2568_s20 + $0x2] sm:$0x1]  ;;  %v727_v14 = vld [vmem:[%s2568_s20 + $0x12] sm:$0x1]  ;;  %v734_v31 = vld [vmem:[%s2568_s20 + $0x4a] sm:$0x1] }
  0x65   : > { %v2870_v10 = vadd.f32 %v674_v0, %v2665_v16  ;;  %v2873_v11 = vadd.f32 %v675_v1, %v2668_v17  ;;  %v2876_v12 = vadd.f32 %v676_v6, %v2675_v22  ;;  %v2885_v15 = vadd.f32 %v677_v7, %v2678_v23  ;;  %v4564_v17 = vld [vmem:[#allocation10_spill] sm:$0xff]  ;;  %v4566_v22 = vld [vmem:[#allocation11_spill] sm:$0xff]  ;;  %v735_v35 = vld [vmem:[%s2568_s20 + $0x52] sm:$0x1]  ;;  %s3418_s12 = sld [smem:[#allocation3 + %s1263_s24]]  ;;  %p3878_p11 = scmp.lt.s32.totalorder %s1263_s24, 13 }
  0x66   : > { %v2888_v16 = vadd.f32 %v678_v19, %v2681_v24  ;;  %v2891_v53 = vadd.f32 %v679_v20, %v4564_v17  ;;  %v2894_v62 = vadd.f32 %v680_v21, %v4566_v22  ;;  %v2901_v23 = vadd.f32 %v681_v47, %v4568_v27  ;;  %v736_v55 = vld [vmem:[%s2568_s20 + $0x5a] sm:$0x1]  ;;  %v4576_v56 = vld [vmem:[#allocation16_spill] sm:$0xff]  ;;  %v4580_v1 = vld [vmem:[#allocation18_spill] sm:$0xff] }
  0x67   : > { %4559 = vst [vmem:[#allocation22_spill] sm:$0xff] %v2870_v10  ;;  %4560 = vst [vmem:[#allocation23_spill] sm:$0xff] %v2873_v11  ;;  %v2904_v24 = vadd.f32 %v682_v46, %v4570_v28  ;;  %v2907_v33 = vadd.f32 %v683_v45, %v4572_v32  ;;  %v2910_v34 = vadd.f32 %v684_v44, %v4574_v39  ;;  %v4578_v41 = vld [vmem:[#allocation17_spill] sm:$0xff]  ;;  %v737_v7 = vld [vmem:[%s2568_s20 + $0x62] sm:$0x1]  ;;  %v757_v20 = vstv %s2815_s25  ;;  %s3402_s25 = sld [smem:[#allocation3 + %s1128_s23]] }
  0x68   : > { %4561 = vst [vmem:[#allocation24_spill] sm:$0xff] %v2876_v12  ;;  %4562 = vst [vmem:[#allocation25_spill] sm:$0xff] %v2885_v15  ;;  %v2917_v57 = vadd.f32 %v685_v26, %v4576_v56  ;;  %v2920_v0 = vadd.f32 %v686_v38, %v4578_v41  ;;  %v2923_v6 = vadd.f32 %v687_v40, %v4580_v1  ;;  %v738_v19 = vld [vmem:[%s2568_s20 + $0x6a] sm:$0x1]  ;;  %v4584_v46 = vld [vmem:[#allocation20_spill] sm:$0xff]  ;;  %v2947_v22 = vstv %s791_s14 }
  0x69   : > { %4563 = vst [vmem:[#allocation26_spill] sm:$0xff] %v2888_v16  ;;  %4565 = vst [vmem:[#allocation10_spill] sm:$0xff] %v2891_v53  ;;  %v4582_v21 = vld [vmem:[#allocation19_spill] sm:$0xff]  ;;  %v2936_v45 = vadd.f32 %v689_v42, %v4584_v46  ;;  %v4586_v44 = vld [vmem:[#allocation21_spill] sm:$0xff]  ;;  %v758_v32 = vmul.f32 %v757_v20, %v725_v13  ;;  %v759_v42 = vmul.f32 %v757_v20, %v726_v51  ;;  %vm793_vm1 = vcmp.eq.s32.totalorder %v2947_v22, 1 }
  0x6a   : > { %4567 = vst [vmem:[#allocation11_spill] sm:$0xff] %v2894_v62  ;;  %4569 = vst [vmem:[#allocation12_spill] sm:$0xff] %v2901_v23  ;;  %v2933_v47 = vadd.f32 %v688_v37, %v4582_v21  ;;  %v2939_v26 = vadd.f32 %v690_v43, %v4586_v44  ;;  %v739_v38 = vld [vmem:[%s2568_s20 + $0x72] sm:$0x1]  ;;  %v740_v40 = vld [vmem:[%s2568_s20 + $0x7a] sm:$0x1]  ;;  %v760_v39 = vmul.f32 %v757_v20, %v727_v14 }
  0x6b   : > { %4571 = vst [vmem:[#allocation13_spill] sm:$0xff] %v2904_v24  ;;  %4573 = vst [vmem:[#allocation14_spill] sm:$0xff] %v2907_v33  ;;  %v741_v17 = vld [vmem:[%s2568_s20 + $0x82] sm:$0x1]  ;;  %v742_v27 = vld [vmem:[%s2568_s20 + $0x8a] sm:$0x1]  ;;  %v761_v43 = vmul.f32 %v757_v20, %v728_v52  ;;  %v762_v1 = vmul.f32 %v757_v20, %v729_v63  ;;  %v763_v21 = vmul.f32 %v757_v20, %v730_v8 }
  0x6c   : > { %4575 = vst [vmem:[#allocation15_spill] sm:$0xff] %v2910_v34  ;;  %4577 = vst [vmem:[#allocation16_spill] sm:$0xff] %v2917_v57  ;;  %v743_v37 = vld [vmem:[%s2568_s20 + $0x92] sm:$0x1]  ;;  %v744_v28 = vld [vmem:[%s2568_s20 + $0x9a] sm:$0x1]  ;;  %v764_v46 = vmul.f32 %v757_v20, %v731_v9  ;;  %v765_v44 = vmul.f32 %v757_v20, %v732_v18  ;;  %v766_v52 = vmul.f32 %v757_v20, %v733_v36 }
  0x6d   : > { %4579 = vst [vmem:[#allocation17_spill] sm:$0xff] %v2920_v0  ;;  %4581 = vst [vmem:[#allocation18_spill] sm:$0xff] %v2923_v6  ;;  %v745_v56 = vld [vmem:[%s2568_s20 + $0xa2] sm:$0x1]  ;;  %v746_v41 = vld [vmem:[%s2568_s20 + $0xaa] sm:$0x1]  ;;  %v770_v18 = vmul.f32 %v757_v20, %v737_v7  ;;  %v771_v6 = vmul.f32 %v757_v20, %v738_v19  ;;  %v772_v0 = vmul.f32 %v757_v20, %v739_v38 }
  0x6e   : > { %4583 = vst [vmem:[#allocation19_spill] sm:$0xff] %v2933_v47  ;;  %4585 = vst [vmem:[#allocation20_spill] sm:$0xff] %v2936_v45  ;;  %v747_v13 = vld [vmem:[%s2568_s20 + $0xb2] sm:$0x1]  ;;  %v748_v51 = vld [vmem:[%s2568_s20 + $0xba] sm:$0x1]  ;;  %v768_v45 = vmul.f32 %v757_v20, %v735_v35  ;;  %v769_v47 = vmul.f32 %v757_v20, %v736_v55  ;;  %v773_v57 = vmul.f32 %v757_v20, %v740_v40 }
  0x6f   : > { %4587 = vst [vmem:[#allocation21_spill] sm:$0xff] %v2939_v26  ;;  %v749_v14 = vld [vmem:[%s2568_s20 + $0xc2] sm:$0x1]  ;;  %v767_v26 = vmul.f32 %v757_v20, %v734_v31  ;;  %v750_v63 = vld [vmem:[%s2568_s20 + $0xca] sm:$0x1]  ;;  %v774_v23 = vmul.f32 %v757_v20, %v741_v17  ;;  %v775_v62 = vmul.f32 %v757_v20, %v742_v27  ;;  %v776_v53 = vmul.f32 %v757_v20, %v743_v37 }
  0x70   : > { %v751_v8 = vld [vmem:[%s2568_s20 + $0xd2] sm:$0x1]  ;;  %v752_v9 = vld [vmem:[%s2568_s20 + $0xda] sm:$0x1]  ;;  %v753_v34 = vld [vmem:[%s2568_s20 + $0xe2] sm:$0x1]  ;;  %v777_v16 = vmul.f32 %v757_v20, %v744_v28  ;;  %v778_v31 = vmul.f32 %v757_v20, %v745_v56  ;;  %v779_v35 = vmul.f32 %v757_v20, %v746_v41  ;;  %v780_v55 = vmul.f32 %v757_v20, %v747_v13 }
  0x71   : > { %v754_v33 = vld [vmem:[%s2568_s20 + $0xea] sm:$0x1]  ;;  %v755_v24 = vld [vmem:[%s2568_s20 + $0xf2] sm:$0x1]  ;;  %v756_v36 = vld [vmem:[%s2568_s20 + $0xfa] sm:$0x1]  ;;  %v781_v15 = vmul.f32 %v757_v20, %v748_v51  ;;  %v782_v7 = vmul.f32 %v757_v20, %v749_v14  ;;  %v783_v12 = vmul.f32 %v757_v20, %v750_v63  ;;  %v784_v19 = vmul.f32 %v757_v20, %v751_v8 }
  0x72   : > { %v785_v38 = vmul.f32 %v757_v20, %v752_v9  ;;  %v786_v40 = vmul.f32 %v757_v20, %v753_v34  ;;  %v787_v11 = vmul.f32 %v757_v20, %v754_v33  ;;  %v788_v10 = vmul.f32 %v757_v20, %v755_v24  ;;  %v4589_v22 = vld [vmem:[#allocation22_spill] sm:$0xff]  ;;  %s1196_s14 = scalar_select %p3412_p10, 1, 0 }
  0x73   : > { %v789_v17 = vmul.f32 %v757_v20, %v756_v36  ;;  %v794_v27 = vsel %vm793_vm1, %v758_v32, 0.0  ;;  %v2976_v37 = vstv %s2930_s13  ;;  %v2978_v28 = vstv %s926_s19  ;;  %s1398_s13 = sadd.s32 7, %s2571_s15 }
  0x74   : > { %v795_v56 = vsel %vm793_vm1, %v759_v42, 0.0  ;;  %v796_v41 = vsel %vm793_vm1, %v760_v39, 0.0  ;;  %v797_v33 = vsel %vm793_vm1, %v761_v43, 0.0  ;;  %v798_v24 = vsel %vm793_vm1, %v762_v1, 0.0  ;;  %s3884_s19 = sld [smem:[#allocation3 + %s1398_s13]]  ;;  %p3898_p12 = scmp.lt.s32.totalorder %s1398_s13, 13 }
  0x75   : > { %v799_v34 = vsel %vm793_vm1, %v763_v21, 0.0  ;;  %v800_v20 = vsel %vm793_vm1, %v764_v46, 0.0  ;;  %v801_v32 = vsel %vm793_vm1, %v765_v44, 0.0  ;;  %v802_v42 = vsel %vm793_vm1, %v766_v52, 0.0  ;;  %s1331_s15 = scalar_select %p3878_p11, 1, 0 }
  0x76   : > { %v803_v39 = vsel %vm793_vm1, %v767_v26, 0.0  ;;  %v804_v43 = vsel %vm793_vm1, %v768_v45, 0.0  ;;  %v805_v1 = vsel %vm793_vm1, %v769_v47, 0.0  ;;  %v806_v21 = vsel %vm793_vm1, %v770_v18, 0.0 }
  0x77   : > { %v807_v46 = vsel %vm793_vm1, %v771_v6, 0.0  ;;  %v808_v44 = vsel %vm793_vm1, %v772_v0, 0.0  ;;  %v809_v13 = vsel %vm793_vm1, %v773_v57, 0.0  ;;  %v810_v26 = vsel %vm793_vm1, %v774_v23, 0.0 }
  0x78   : > { %v811_v45 = vsel %vm793_vm1, %v775_v62, 0.0  ;;  %v812_v47 = vsel %vm793_vm1, %v776_v53, 0.0  ;;  %v813_v51 = vsel %vm793_vm1, %v777_v16, 0.0  ;;  %v814_v6 = vsel %vm793_vm1, %v778_v31, 0.0  ;;  %v4590_v31 = vld [vmem:[#allocation23_spill] sm:$0xff] }
  0x79   : > { %v815_v0 = vsel %vm793_vm1, %v779_v35, 0.0  ;;  %v816_v57 = vsel %vm793_vm1, %v780_v55, 0.0  ;;  %v817_v23 = vsel %vm793_vm1, %v781_v15, 0.0  ;;  %v818_v62 = vsel %vm793_vm1, %v782_v7, 0.0  ;;  %v862_v55 = vld [vmem:[%s2568_s20 + $0x13] sm:$0x1] }
  0x7a   : > { %v819_v53 = vsel %vm793_vm1, %v783_v12, 0.0  ;;  %v820_v16 = vsel %vm793_vm1, %v784_v19, 0.0  ;;  %v821_v14 = vsel %vm793_vm1, %v785_v38, 0.0  ;;  %v822_v52 = vsel %vm793_vm1, %v786_v40, 0.0  ;;  %v864_v7 = vld [vmem:[%s2568_s20 + $0x23] sm:$0x1] }
  0x7b   : > { %v823_v63 = vsel %vm793_vm1, %v787_v11, 0.0  ;;  %v824_v15 = vsel %vm793_vm1, %v788_v10, 0.0  ;;  %v825_v8 = vsel %vm793_vm1, %v789_v17, 0.0  ;;  %v3043_v12 = vadd.f32 %v794_v27, %v2820_v30  ;;  %v4591_v19 = vld [vmem:[#allocation24_spill] sm:$0xff]  ;;  %v4592_v38 = vld [vmem:[#allocation25_spill] sm:$0xff]  ;;  %v4593_v40 = vld [vmem:[#allocation26_spill] sm:$0xff] }
  0x7c   : > { %v3046_v9 = vadd.f32 %v795_v56, %v2823_v29  ;;  %v3049_v18 = vadd.f32 %v796_v41, %v2830_v48  ;;  %v3052_v36 = vadd.f32 %v797_v33, %v2833_v49  ;;  %v3055_v11 = vadd.f32 %v798_v24, %v2836_v50  ;;  %v4594_v27 = vld [vmem:[#allocation10_spill] sm:$0xff]  ;;  %v865_v41 = vld [vmem:[%s2568_s20 + $0x2b] sm:$0x1]  ;;  %v866_v33 = vld [vmem:[%s2568_s20 + $0x33] sm:$0x1] }
  0x7d   : > { %v3058_v10 = vadd.f32 %v799_v34, %v2839_v54  ;;  %v3061_v30 = vadd.f32 %v800_v20, %v2842_v58  ;;  %v3064_v29 = vadd.f32 %v801_v32, %v2845_v25  ;;  %v3067_v48 = vadd.f32 %v802_v42, %v2848_v59  ;;  %v860_v25 = vld [vmem:[%s2568_s20 + $0x3] sm:$0x1]  ;;  %v867_v24 = vld [vmem:[%s2568_s20 + $0x3b] sm:$0x1]  ;;  %v4596_v20 = vld [vmem:[#allocation11_spill] sm:$0xff] }
  0x7e   : > { %v3070_v49 = vadd.f32 %v803_v39, %v2851_v60  ;;  %v3073_v50 = vadd.f32 %v804_v43, %v2854_v61  ;;  %v3076_v54 = vadd.f32 %v805_v1, %v2857_v2  ;;  %v3079_v58 = vadd.f32 %v806_v21, %v2860_v3  ;;  %v861_v2 = vld [vmem:[%s2568_s20 + $0xb] sm:$0x1]  ;;  %v863_v3 = vld [vmem:[%s2568_s20 + $0x1b] sm:$0x1]  ;;  %v868_v34 = vld [vmem:[%s2568_s20 + $0x43] sm:$0x1] }
  0x7f   : > { %v3083_v59 = vadd.f32 %v807_v46, %v2863_v4  ;;  %v3086_v60 = vadd.f32 %v808_v44, %v2867_v5  ;;  %v3089_v61 = vadd.f32 %v809_v13, %v4589_v22  ;;  %v3092_v35 = vadd.f32 %v810_v26, %v4590_v31  ;;  %v4598_v42 = vld [vmem:[#allocation12_spill] sm:$0xff]  ;;  %v4600_v43 = vld [vmem:[#allocation13_spill] sm:$0xff]  ;;  %v4602_v21 = vld [vmem:[#allocation14_spill] sm:$0xff] }
  0x80   : > { %v3099_v4 = vadd.f32 %v811_v45, %v4591_v19  ;;  %v3102_v5 = vadd.f32 %v812_v47, %v4592_v38  ;;  %v3105_v17 = vadd.f32 %v813_v51, %v4593_v40  ;;  %v3108_v56 = vadd.f32 %v814_v6, %v4594_v27  ;;  %v869_v44 = vld [vmem:[%s2568_s20 + $0x4b] sm:$0x1]  ;;  %v870_v13 = vld [vmem:[%s2568_s20 + $0x53] sm:$0x1]  ;;  %v871_v26 = vld [vmem:[%s2568_s20 + $0x5b] sm:$0x1] }
  0x81   : > { %v3115_v32 = vadd.f32 %v815_v0, %v4596_v20  ;;  %v3118_v39 = vadd.f32 %v816_v57, %v4598_v42  ;;  %v3121_v1 = vadd.f32 %v817_v23, %v4600_v43  ;;  %v3124_v46 = vadd.f32 %v818_v62, %v4602_v21  ;;  %v872_v45 = vld [vmem:[%s2568_s20 + $0x63] sm:$0x1]  ;;  %v4604_v47 = vld [vmem:[#allocation15_spill] sm:$0xff]  ;;  %v4606_v6 = vld [vmem:[#allocation16_spill] sm:$0xff] }
  0x82   : > { %4595 = vst [vmem:[#allocation22_spill] sm:$0xff] %v3108_v56  ;;  %v3132_v51 = vadd.f32 %v819_v53, %v4604_v47  ;;  %v3135_v0 = vadd.f32 %v820_v16, %v4606_v6  ;;  %v4608_v57 = vld [vmem:[#allocation17_spill] sm:$0xff]  ;;  %v4610_v62 = vld [vmem:[#allocation18_spill] sm:$0xff]  ;;  %v873_v31 = vld [vmem:[%s2568_s20 + $0x6b] sm:$0x1]  ;;  %vm928_vm2 = vcmp.eq.s32.totalorder %v2978_v28, 1 }
  0x83   : > { %4597 = vst [vmem:[#allocation23_spill] sm:$0xff] %v3115_v32  ;;  %4599 = vst [vmem:[#allocation24_spill] sm:$0xff] %v3118_v39  ;;  %v3138_v23 = vadd.f32 %v821_v14, %v4608_v57  ;;  %v3141_v22 = vadd.f32 %v822_v52, %v4610_v62  ;;  %v874_v19 = vld [vmem:[%s2568_s20 + $0x73] sm:$0x1]  ;;  %v875_v38 = vld [vmem:[%s2568_s20 + $0x7b] sm:$0x1]  ;;  %v893_v52 = vmul.f32 %v2976_v37, %v860_v25 }
  0x84   : > { %4601 = vst [vmem:[#allocation25_spill] sm:$0xff] %v3121_v1  ;;  %4603 = vst [vmem:[#allocation26_spill] sm:$0xff] %v3124_v46  ;;  %v4612_v40 = vld [vmem:[#allocation19_spill] sm:$0xff]  ;;  %v4614_v20 = vld [vmem:[#allocation20_spill] sm:$0xff]  ;;  %v895_v57 = vmul.f32 %v2976_v37, %v862_v55  ;;  %v897_v62 = vmul.f32 %v2976_v37, %v864_v7  ;;  %v899_v55 = vmul.f32 %v2976_v37, %v866_v33 }
  0x85   : > { %4605 = vst [vmem:[#allocation10_spill] sm:$0xff] %v3132_v51  ;;  %4607 = vst [vmem:[#allocation11_spill] sm:$0xff] %v3135_v0  ;;  %v3147_v27 = vadd.f32 %v823_v63, %v4612_v40  ;;  %v3150_v53 = vadd.f32 %v824_v15, %v4614_v20  ;;  %v4616_v42 = vld [vmem:[#allocation21_spill] sm:$0xff]  ;;  %v876_v14 = vld [vmem:[%s2568_s20 + $0x83] sm:$0x1]  ;;  %v894_v63 = vmul.f32 %v2976_v37, %v861_v2 }
  0x86   : > { %4609 = vst [vmem:[#allocation12_spill] sm:$0xff] %v3138_v23  ;;  %4611 = vst [vmem:[#allocation13_spill] sm:$0xff] %v3141_v22  ;;  %v3153_v16 = vadd.f32 %v825_v8, %v4616_v42  ;;  %v877_v43 = vld [vmem:[%s2568_s20 + $0x8b] sm:$0x1]  ;;  %v878_v21 = vld [vmem:[%s2568_s20 + $0x93] sm:$0x1]  ;;  %v896_v15 = vmul.f32 %v2976_v37, %v863_v3  ;;  %v898_v2 = vmul.f32 %v2976_v37, %v865_v41 }
  0x87   : > { %4613 = vst [vmem:[#allocation14_spill] sm:$0xff] %v3147_v27  ;;  %4615 = vst [vmem:[#allocation15_spill] sm:$0xff] %v3150_v53  ;;  %v879_v47 = vld [vmem:[%s2568_s20 + $0x9b] sm:$0x1]  ;;  %v880_v6 = vld [vmem:[%s2568_s20 + $0xa3] sm:$0x1]  ;;  %v900_v3 = vmul.f32 %v2976_v37, %v867_v24  ;;  %v901_v7 = vmul.f32 %v2976_v37, %v868_v34  ;;  %v902_v53 = vmul.f32 %v2976_v37, %v869_v44 }
  0x88   : > { %4617 = vst [vmem:[#allocation16_spill] sm:$0xff] %v3153_v16  ;;  %v881_v8 = vld [vmem:[%s2568_s20 + $0xab] sm:$0x1]  ;;  %v882_v25 = vld [vmem:[%s2568_s20 + $0xb3] sm:$0x1]  ;;  %v903_v27 = vmul.f32 %v2976_v37, %v870_v13  ;;  %v904_v22 = vmul.f32 %v2976_v37, %v871_v26  ;;  %v905_v41 = vmul.f32 %v2976_v37, %v872_v45  ;;  %v906_v24 = vmul.f32 %v2976_v37, %v873_v31 }
  0x89   : > { %v883_v40 = vld [vmem:[%s2568_s20 + $0xbb] sm:$0x1]  ;;  %v884_v20 = vld [vmem:[%s2568_s20 + $0xc3] sm:$0x1]  ;;  %v885_v42 = vld [vmem:[%s2568_s20 + $0xcb] sm:$0x1]  ;;  %v907_v34 = vmul.f32 %v2976_v37, %v874_v19  ;;  %v908_v51 = vmul.f32 %v2976_v37, %v875_v38  ;;  %v909_v46 = vmul.f32 %v2976_v37, %v876_v14  ;;  %v910_v13 = vmul.f32 %v2976_v37, %v877_v43 }
  0x8a   : > { %v886_v16 = vld [vmem:[%s2568_s20 + $0xd3] sm:$0x1]  ;;  %v887_v23 = vld [vmem:[%s2568_s20 + $0xdb] sm:$0x1]  ;;  %v888_v33 = vld [vmem:[%s2568_s20 + $0xe3] sm:$0x1]  ;;  %v911_v39 = vmul.f32 %v2976_v37, %v878_v21  ;;  %v912_v26 = vmul.f32 %v2976_v37, %v879_v47  ;;  %v913_v45 = vmul.f32 %v2976_v37, %v880_v6  ;;  %v914_v31 = vmul.f32 %v2976_v37, %v881_v8 }
  0x8b   : > { %v889_v0 = vld [vmem:[%s2568_s20 + $0xeb] sm:$0x1]  ;;  %v890_v1 = vld [vmem:[%s2568_s20 + $0xf3] sm:$0x1]  ;;  %v891_v44 = vld [vmem:[%s2568_s20 + $0xfb] sm:$0x1]  ;;  %v915_v19 = vmul.f32 %v2976_v37, %v882_v25  ;;  %v916_v38 = vmul.f32 %v2976_v37, %v883_v40  ;;  %v917_v14 = vmul.f32 %v2976_v37, %v884_v20  ;;  %v918_v32 = vmul.f32 %v2976_v37, %v885_v42 }
  0x8c   : > { %v919_v43 = vmul.f32 %v2976_v37, %v886_v16  ;;  %v920_v21 = vmul.f32 %v2976_v37, %v887_v23  ;;  %v921_v47 = vmul.f32 %v2976_v37, %v888_v33  ;;  %v922_v6 = vmul.f32 %v2976_v37, %v889_v0 }
  0x8d   : > { %v923_v56 = vmul.f32 %v2976_v37, %v890_v1  ;;  %v924_v8 = vmul.f32 %v2976_v37, %v891_v44  ;;  %v929_v25 = vsel %vm928_vm2, %v893_v52, 0.0  ;;  %v930_v40 = vsel %vm928_vm2, %v894_v63, 0.0 }
  0x8e   : > { %v3217_v20 = vstv %s3165_s16  ;;  %v3219_v16 = vstv %s1061_s22  ;;  %v931_v23 = vsel %vm928_vm2, %v895_v57, 0.0  ;;  %v932_v1 = vsel %vm928_vm2, %v896_v15, 0.0  ;;  %s1466_s16 = scalar_select %p3898_p12, 1, 0 }
  0x8f   : > { %v933_v37 = vsel %vm928_vm2, %v897_v62, 0.0  ;;  %v934_v0 = vsel %vm928_vm2, %v898_v2, 0.0  ;;  %v935_v52 = vsel %vm928_vm2, %v899_v55, 0.0  ;;  %v936_v63 = vsel %vm928_vm2, %v900_v3, 0.0 }
  0x90   : > { %v937_v42 = vsel %vm928_vm2, %v901_v7, 0.0  ;;  %v938_v57 = vsel %vm928_vm2, %v902_v53, 0.0  ;;  %v939_v15 = vsel %vm928_vm2, %v903_v27, 0.0  ;;  %v940_v62 = vsel %vm928_vm2, %v904_v22, 0.0 }
  0x91   : > { %v941_v2 = vsel %vm928_vm2, %v905_v41, 0.0  ;;  %v942_v55 = vsel %vm928_vm2, %v906_v24, 0.0  ;;  %v943_v3 = vsel %vm928_vm2, %v907_v34, 0.0  ;;  %v944_v7 = vsel %vm928_vm2, %v908_v51, 0.0 }
  0x92   : > { %v945_v53 = vsel %vm928_vm2, %v909_v46, 0.0  ;;  %v946_v27 = vsel %vm928_vm2, %v910_v13, 0.0  ;;  %v947_v22 = vsel %vm928_vm2, %v911_v39, 0.0  ;;  %v948_v41 = vsel %vm928_vm2, %v912_v26, 0.0 }
  0x93   : > { %v949_v33 = vsel %vm928_vm2, %v913_v45, 0.0  ;;  %v950_v24 = vsel %vm928_vm2, %v914_v31, 0.0  ;;  %v951_v51 = vsel %vm928_vm2, %v915_v19, 0.0  ;;  %v952_v46 = vsel %vm928_vm2, %v916_v38, 0.0 }
  0x94   : > { %v953_v34 = vsel %vm928_vm2, %v917_v14, 0.0  ;;  %v954_v39 = vsel %vm928_vm2, %v918_v32, 0.0  ;;  %v955_v44 = vsel %vm928_vm2, %v919_v43, 0.0  ;;  %v956_v13 = vsel %vm928_vm2, %v920_v21, 0.0 }
  0x95   : > { %v957_v26 = vsel %vm928_vm2, %v921_v47, 0.0  ;;  %v958_v45 = vsel %vm928_vm2, %v922_v6, 0.0  ;;  %v959_v31 = vsel %vm928_vm2, %v923_v56, 0.0  ;;  %v960_v19 = vsel %vm928_vm2, %v924_v8, 0.0  ;;  %v995_v56 = vld [vmem:[%s2568_s20 + $0x4] sm:$0x1] }
  0x96   : > { %v3282_v32 = vadd.f32 %v929_v25, %v3043_v12  ;;  %v3285_v38 = vadd.f32 %v930_v40, %v3046_v9  ;;  %v3288_v14 = vadd.f32 %v931_v23, %v3049_v18  ;;  %v3291_v43 = vadd.f32 %v932_v1, %v3052_v36  ;;  %v998_v47 = vld [vmem:[%s2568_s20 + $0x1c] sm:$0x1]  ;;  %v999_v6 = vld [vmem:[%s2568_s20 + $0x24] sm:$0x1]  ;;  %v1000_v8 = vld [vmem:[%s2568_s20 + $0x2c] sm:$0x1] }
  0x97   : > { %v3294_v21 = vadd.f32 %v933_v37, %v3055_v11  ;;  %v3297_v28 = vadd.f32 %v934_v0, %v3058_v10  ;;  %v3300_v12 = vadd.f32 %v935_v52, %v3061_v30  ;;  %v3303_v9 = vadd.f32 %v936_v63, %v3064_v29  ;;  %v1001_v23 = vld [vmem:[%s2568_s20 + $0x34] sm:$0x1]  ;;  %v1002_v1 = vld [vmem:[%s2568_s20 + $0x3c] sm:$0x1]  ;;  %v1003_v37 = vld [vmem:[%s2568_s20 + $0x44] sm:$0x1] }
  0x98   : > { %v3306_v18 = vadd.f32 %v937_v42, %v3067_v48  ;;  %v3309_v36 = vadd.f32 %v938_v57, %v3070_v49  ;;  %v3312_v11 = vadd.f32 %v939_v15, %v3073_v50  ;;  %v3315_v10 = vadd.f32 %v940_v62, %v3076_v54  ;;  %v996_v48 = vld [vmem:[%s2568_s20 + $0xc] sm:$0x1]  ;;  %v4623_v52 = vld [vmem:[#allocation24_spill] sm:$0xff]  ;;  %v4625_v63 = vld [vmem:[#allocation25_spill] sm:$0xff] }
  0x99   : > { %v3318_v30 = vadd.f32 %v941_v2, %v3079_v58  ;;  %v3321_v29 = vadd.f32 %v942_v55, %v3083_v59  ;;  %v3326_v49 = vadd.f32 %v943_v3, %v3086_v60  ;;  %v3329_v50 = vadd.f32 %v944_v7, %v3089_v61  ;;  %v997_v59 = vld [vmem:[%s2568_s20 + $0x14] sm:$0x1]  ;;  %v1004_v0 = vld [vmem:[%s2568_s20 + $0x4c] sm:$0x1]  ;;  %v4629_v15 = vld [vmem:[#allocation10_spill] sm:$0xff] }
  0x9a   : > { %v3332_v54 = vadd.f32 %v945_v53, %v3092_v35  ;;  %v3335_v58 = vadd.f32 %v946_v27, %v3099_v4  ;;  %v3343_v60 = vadd.f32 %v947_v22, %v3102_v5  ;;  %v3346_v61 = vadd.f32 %v948_v41, %v3105_v17  ;;  %v4619_v35 = vld [vmem:[#allocation22_spill] sm:$0xff]  ;;  %v4621_v4 = vld [vmem:[#allocation23_spill] sm:$0xff]  ;;  %v1005_v2 = vld [vmem:[%s2568_s20 + $0x54] sm:$0x1] }
  0x9b   : > { %v3349_v25 = vadd.f32 %v949_v33, %v4619_v35  ;;  %v3352_v40 = vadd.f32 %v950_v24, %v4621_v4  ;;  %v3359_v5 = vadd.f32 %v951_v51, %v4623_v52  ;;  %v3362_v42 = vadd.f32 %v952_v46, %v4625_v63  ;;  %v4627_v17 = vld [vmem:[#allocation26_spill] sm:$0xff]  ;;  %v1006_v55 = vld [vmem:[%s2568_s20 + $0x5c] sm:$0x1]  ;;  %v1008_v7 = vld [vmem:[%s2568_s20 + $0x6c] sm:$0x1] }
  0x9c   : > { %v3365_v57 = vadd.f32 %v953_v34, %v4627_v17  ;;  %v3368_v62 = vadd.f32 %v954_v39, %v4629_v15  ;;  %v1007_v3 = vld [vmem:[%s2568_s20 + $0x64] sm:$0x1]  ;;  %v4631_v53 = vld [vmem:[#allocation11_spill] sm:$0xff]  ;;  %v4633_v22 = vld [vmem:[#allocation12_spill] sm:$0xff]  ;;  %v1028_v17 = vmul.f32 %v3217_v20, %v995_v56  ;;  %vm1063_vm3 = vcmp.eq.s32.totalorder %v3219_v16, 1 }
  0x9d   : > { %4620 = vst [vmem:[#allocation17_spill] sm:$0xff] %v3349_v25  ;;  %4622 = vst [vmem:[#allocation18_spill] sm:$0xff] %v3352_v40  ;;  %v3376_v27 = vadd.f32 %v955_v44, %v4631_v53  ;;  %v3379_v41 = vadd.f32 %v956_v13, %v4633_v22  ;;  %v4635_v33 = vld [vmem:[#allocation13_spill] sm:$0xff]  ;;  %v4637_v51 = vld [vmem:[#allocation14_spill] sm:$0xff]  ;;  %v1032_v22 = vmul.f32 %v3217_v20, %v999_v6 }
  0x9e   : > { %4624 = vst [vmem:[#allocation19_spill] sm:$0xff] %v3359_v5  ;;  %4626 = vst [vmem:[#allocation20_spill] sm:$0xff] %v3362_v42  ;;  %v3382_v24 = vadd.f32 %v957_v26, %v4635_v33  ;;  %v3385_v46 = vadd.f32 %v958_v45, %v4637_v51  ;;  %v1009_v34 = vld [vmem:[%s2568_s20 + $0x74] sm:$0x1]  ;;  %v1010_v39 = vld [vmem:[%s2568_s20 + $0x7c] sm:$0x1]  ;;  %v1029_v45 = vmul.f32 %v3217_v20, %v996_v48 }
  0x9f   : > { %4628 = vst [vmem:[#allocation21_spill] sm:$0xff] %v3365_v57  ;;  %4630 = vst [vmem:[#allocation22_spill] sm:$0xff] %v3368_v62  ;;  %v1011_v35 = vld [vmem:[%s2568_s20 + $0x84] sm:$0x1]  ;;  %v4639_v4 = vld [vmem:[#allocation15_spill] sm:$0xff]  ;;  %v1033_v33 = vmul.f32 %v3217_v20, %v1000_v8  ;;  %v1035_v6 = vmul.f32 %v3217_v20, %v1002_v1  ;;  %v1036_v8 = vmul.f32 %v3217_v20, %v1003_v37 }
  0xa0   : > { %4632 = vst [vmem:[#allocation23_spill] sm:$0xff] %v3376_v27  ;;  %4634 = vst [vmem:[#allocation24_spill] sm:$0xff] %v3379_v41  ;;  %v3391_v52 = vadd.f32 %v959_v31, %v4639_v4  ;;  %v4641_v44 = vld [vmem:[#allocation16_spill] sm:$0xff]  ;;  %v1012_v13 = vld [vmem:[%s2568_s20 + $0x8c] sm:$0x1]  ;;  %v1030_v31 = vmul.f32 %v3217_v20, %v997_v59  ;;  %v1037_v51 = vmul.f32 %v3217_v20, %v1004_v0 }
  0xa1   : > { %4636 = vst [vmem:[#allocation25_spill] sm:$0xff] %v3382_v24  ;;  %4638 = vst [vmem:[#allocation26_spill] sm:$0xff] %v3385_v46  ;;  %v3394_v63 = vadd.f32 %v960_v19, %v4641_v44  ;;  %v1013_v26 = vld [vmem:[%s2568_s20 + $0x94] sm:$0x1]  ;;  %v1014_v15 = vld [vmem:[%s2568_s20 + $0x9c] sm:$0x1]  ;;  %v1031_v19 = vmul.f32 %v3217_v20, %v998_v47  ;;  %v1034_v47 = vmul.f32 %v3217_v20, %v1001_v23 }
  0xa2   : > { %4640 = vst [vmem:[#allocation10_spill] sm:$0xff] %v3391_v52  ;;  %v1015_v53 = vld [vmem:[%s2568_s20 + $0xa4] sm:$0x1]  ;;  %v1016_v56 = vld [vmem:[%s2568_s20 + $0xac] sm:$0x1]  ;;  %v1038_v52 = vmul.f32 %v3217_v20, %v1005_v2  ;;  %v1039_v46 = vmul.f32 %v3217_v20, %v1006_v55  ;;  %v1040_v24 = vmul.f32 %v3217_v20, %v1007_v3  ;;  %v1041_v23 = vmul.f32 %v3217_v20, %v1008_v7 }
  0xa3   : > { %4642 = vst [vmem:[#allocation11_spill] sm:$0xff] %v3394_v63  ;;  %v1017_v48 = vld [vmem:[%s2568_s20 + $0xb4] sm:$0x1]  ;;  %v1018_v59 = vld [vmem:[%s2568_s20 + $0xbc] sm:$0x1]  ;;  %v1042_v37 = vmul.f32 %v3217_v20, %v1009_v34  ;;  %v1043_v0 = vmul.f32 %v3217_v20, %v1010_v39  ;;  %v1044_v62 = vmul.f32 %v3217_v20, %v1011_v35  ;;  %v1045_v57 = vmul.f32 %v3217_v20, %v1012_v13 }
  0xa4   : > { %v1019_v4 = vld [vmem:[%s2568_s20 + $0xc4] sm:$0x1]  ;;  %v1020_v44 = vld [vmem:[%s2568_s20 + $0xcc] sm:$0x1]  ;;  %v1021_v63 = vld [vmem:[%s2568_s20 + $0xd4] sm:$0x1]  ;;  %v1046_v55 = vmul.f32 %v3217_v20, %v1013_v26  ;;  %v1047_v3 = vmul.f32 %v3217_v20, %v1014_v15  ;;  %v1048_v7 = vmul.f32 %v3217_v20, %v1015_v53  ;;  %v1049_v5 = vmul.f32 %v3217_v20, %v1016_v56 }
  0xa5   : > { %v1022_v41 = vld [vmem:[%s2568_s20 + $0xdc] sm:$0x1]  ;;  %v1023_v1 = vld [vmem:[%s2568_s20 + $0xe4] sm:$0x1]  ;;  %v1024_v27 = vld [vmem:[%s2568_s20 + $0xec] sm:$0x1]  ;;  %v1050_v34 = vmul.f32 %v3217_v20, %v1017_v48  ;;  %v1051_v39 = vmul.f32 %v3217_v20, %v1018_v59  ;;  %v1052_v35 = vmul.f32 %v3217_v20, %v1019_v4  ;;  %v1053_v13 = vmul.f32 %v3217_v20, %v1020_v44 }
  0xa6   : > { %v1025_v42 = vld [vmem:[%s2568_s20 + $0xf4] sm:$0x1]  ;;  %v1026_v2 = vld [vmem:[%s2568_s20 + $0xfc] sm:$0x1]  ;;  %v1054_v26 = vmul.f32 %v3217_v20, %v1021_v63  ;;  %v1055_v40 = vmul.f32 %v3217_v20, %v1022_v41  ;;  %v1056_v15 = vmul.f32 %v3217_v20, %v1023_v1  ;;  %v1057_v53 = vmul.f32 %v3217_v20, %v1024_v27 }
  0xa7   : > { %v1058_v56 = vmul.f32 %v3217_v20, %v1025_v42  ;;  %v1059_v25 = vmul.f32 %v3217_v20, %v1026_v2  ;;  %v3461_v48 = vstv %s3402_s25  ;;  %v1064_v59 = vsel %vm1063_vm3, %v1028_v17, 0.0 }
  0xa8   : > { %v1065_v63 = vsel %vm1063_vm3, %v1029_v45, 0.0  ;;  %v3467_v4 = vstv %s1196_s14  ;;  %v3470_v41 = vstv %s3418_s12  ;;  %v1066_v27 = vsel %vm1063_vm3, %v1030_v31, 0.0 }
  0xa9   : > { %v1067_v20 = vsel %vm1063_vm3, %v1031_v19, 0.0  ;;  %v1068_v42 = vsel %vm1063_vm3, %v1032_v22, 0.0  ;;  %v1069_v44 = vsel %vm1063_vm3, %v1033_v33, 0.0  ;;  %v1070_v17 = vsel %vm1063_vm3, %v1034_v47, 0.0 }
  0xaa   : > { %v1071_v45 = vsel %vm1063_vm3, %v1035_v6, 0.0  ;;  %v1072_v1 = vsel %vm1063_vm3, %v1036_v8, 0.0  ;;  %v1073_v31 = vsel %vm1063_vm3, %v1037_v51, 0.0  ;;  %v1074_v19 = vsel %vm1063_vm3, %v1038_v52, 0.0 }
  0xab   : > { %v1075_v22 = vsel %vm1063_vm3, %v1039_v46, 0.0  ;;  %v1076_v33 = vsel %vm1063_vm3, %v1040_v24, 0.0  ;;  %v1077_v47 = vsel %vm1063_vm3, %v1041_v23, 0.0  ;;  %v1078_v6 = vsel %vm1063_vm3, %v1042_v37, 0.0 }
  0xac   : > { %v1079_v8 = vsel %vm1063_vm3, %v1043_v0, 0.0  ;;  %v1080_v51 = vsel %vm1063_vm3, %v1044_v62, 0.0  ;;  %v1081_v52 = vsel %vm1063_vm3, %v1045_v57, 0.0  ;;  %v1082_v46 = vsel %vm1063_vm3, %v1046_v55, 0.0 }
  0xad   : > { %v1083_v24 = vsel %vm1063_vm3, %v1047_v3, 0.0  ;;  %v1084_v23 = vsel %vm1063_vm3, %v1048_v7, 0.0  ;;  %v1085_v37 = vsel %vm1063_vm3, %v1049_v5, 0.0  ;;  %v1086_v0 = vsel %vm1063_vm3, %v1050_v34, 0.0 }
  0xae   : > { %v1087_v62 = vsel %vm1063_vm3, %v1051_v39, 0.0  ;;  %v1088_v57 = vsel %vm1063_vm3, %v1052_v35, 0.0  ;;  %v1089_v2 = vsel %vm1063_vm3, %v1053_v13, 0.0  ;;  %v1090_v55 = vsel %vm1063_vm3, %v1054_v26, 0.0 }
  0xaf   : > { %v1091_v3 = vsel %vm1063_vm3, %v1055_v40, 0.0  ;;  %v1092_v5 = vsel %vm1063_vm3, %v1056_v15, 0.0  ;;  %v1093_v7 = vsel %vm1063_vm3, %v1057_v53, 0.0  ;;  %v1094_v34 = vsel %vm1063_vm3, %v1058_v56, 0.0  ;;  %v1132_v53 = vld [vmem:[%s2568_s20 + $0x15] sm:$0x1] }
  0xb0   : > { %v1095_v39 = vsel %vm1063_vm3, %v1059_v25, 0.0  ;;  %v3533_v35 = vadd.f32 %v1064_v59, %v3282_v32  ;;  %v3536_v13 = vadd.f32 %v1065_v63, %v3285_v38  ;;  %v3539_v40 = vadd.f32 %v1066_v27, %v3288_v14  ;;  %v1130_v25 = vld [vmem:[%s2568_s20 + $0x5] sm:$0x1]  ;;  %v1135_v59 = vld [vmem:[%s2568_s20 + $0x2d] sm:$0x1] }
  0xb1   : > { %v3542_v26 = vadd.f32 %v1067_v20, %v3291_v43  ;;  %v3545_v15 = vadd.f32 %v1068_v42, %v3294_v21  ;;  %v3548_v16 = vadd.f32 %v1069_v44, %v3297_v28  ;;  %v3551_v32 = vadd.f32 %v1070_v17, %v3300_v12  ;;  %v1134_v56 = vld [vmem:[%s2568_s20 + $0x25] sm:$0x1]  ;;  %v1136_v20 = vld [vmem:[%s2568_s20 + $0x35] sm:$0x1]  ;;  %v1137_v42 = vld [vmem:[%s2568_s20 + $0x3d] sm:$0x1] }
  0xb2   : > { %v3554_v38 = vadd.f32 %v1071_v45, %v3303_v9  ;;  %v3557_v14 = vadd.f32 %v1072_v1, %v3306_v18  ;;  %v3560_v43 = vadd.f32 %v1073_v31, %v3309_v36  ;;  %v3563_v21 = vadd.f32 %v1074_v19, %v3312_v11  ;;  %v1131_v18 = vld [vmem:[%s2568_s20 + $0xd] sm:$0x1]  ;;  %v1138_v44 = vld [vmem:[%s2568_s20 + $0x45] sm:$0x1] }
  0xb3   : > { %v3566_v28 = vadd.f32 %v1075_v22, %v3315_v10  ;;  %v3569_v12 = vadd.f32 %v1076_v33, %v3318_v30  ;;  %v3572_v9 = vadd.f32 %v1077_v47, %v3321_v29  ;;  %v3577_v36 = vadd.f32 %v1078_v6, %v3326_v49  ;;  %v1133_v29 = vld [vmem:[%s2568_s20 + $0x1d] sm:$0x1]  ;;  %v4651_v17 = vld [vmem:[#allocation19_spill] sm:$0xff]  ;;  %v4657_v19 = vld [vmem:[#allocation22_spill] sm:$0xff] }
  0xb4   : > { %v3580_v11 = vadd.f32 %v1079_v8, %v3329_v50  ;;  %v3583_v10 = vadd.f32 %v1080_v51, %v3332_v54  ;;  %v3586_v30 = vadd.f32 %v1081_v52, %v3335_v58  ;;  %v3593_v63 = vadd.f32 %v1082_v46, %v3343_v60  ;;  %v4647_v50 = vld [vmem:[#allocation17_spill] sm:$0xff]  ;;  %v4649_v54 = vld [vmem:[#allocation18_spill] sm:$0xff]  ;;  %v4653_v60 = vld [vmem:[#allocation20_spill] sm:$0xff] }
  0xb5   : > { %v3596_v49 = vadd.f32 %v1083_v24, %v3346_v61  ;;  %v3599_v27 = vadd.f32 %v1084_v23, %v4647_v50  ;;  %v3602_v58 = vadd.f32 %v1085_v37, %v4649_v54  ;;  %v3608_v45 = vadd.f32 %v1086_v0, %v4651_v17  ;;  %v4655_v61 = vld [vmem:[#allocation21_spill] sm:$0xff]  ;;  %v1139_v33 = vld [vmem:[%s2568_s20 + $0x4d] sm:$0x1]  ;;  %v1140_v47 = vld [vmem:[%s2568_s20 + $0x55] sm:$0x1] }
  0xb6   : > { %4644 = vst [vmem:[#allocation12_spill] sm:$0xff] %v3586_v30  ;;  %4645 = vst [vmem:[#allocation13_spill] sm:$0xff] %v3593_v63  ;;  %v3611_v1 = vadd.f32 %v1087_v62, %v4653_v60  ;;  %v3614_v31 = vadd.f32 %v1088_v57, %v4655_v61  ;;  %v3617_v22 = vadd.f32 %v1089_v2, %v4657_v19  ;;  %v1141_v6 = vld [vmem:[%s2568_s20 + $0x5d] sm:$0x1]  ;;  %v4659_v8 = vld [vmem:[#allocation23_spill] sm:$0xff]  ;;  %vm1198_vm4 = vcmp.eq.s32.totalorder %v3467_v4, 1 }
  0xb7   : > { %4646 = vst [vmem:[#allocation14_spill] sm:$0xff] %v3596_v49  ;;  %4648 = vst [vmem:[#allocation15_spill] sm:$0xff] %v3599_v27  ;;  %v3623_v51 = vadd.f32 %v1090_v55, %v4659_v8  ;;  %v4661_v52 = vld [vmem:[#allocation24_spill] sm:$0xff]  ;;  %v4663_v24 = vld [vmem:[#allocation25_spill] sm:$0xff] }
  0xb8   : > { %4650 = vst [vmem:[#allocation16_spill] sm:$0xff] %v3602_v58  ;;  %4652 = vst [vmem:[#allocation17_spill] sm:$0xff] %v3608_v45  ;;  %v3626_v46 = vadd.f32 %v1091_v3, %v4661_v52  ;;  %v3629_v23 = vadd.f32 %v1092_v5, %v4663_v24  ;;  %v4665_v37 = vld [vmem:[#allocation26_spill] sm:$0xff]  ;;  %v1143_v57 = vld [vmem:[%s2568_s20 + $0x6d] sm:$0x1]  ;;  %v1163_v5 = vmul.f32 %v3461_v48, %v1130_v25 }
  0xb9   : > { %4654 = vst [vmem:[#allocation18_spill] sm:$0xff] %v3611_v1  ;;  %4656 = vst [vmem:[#allocation19_spill] sm:$0xff] %v3614_v31  ;;  %v3632_v0 = vadd.f32 %v1093_v7, %v4665_v37  ;;  %v1142_v62 = vld [vmem:[%s2568_s20 + $0x65] sm:$0x1]  ;;  %v1144_v2 = vld [vmem:[%s2568_s20 + $0x75] sm:$0x1]  ;;  %v1164_v7 = vmul.f32 %v3461_v48, %v1131_v18  ;;  %v1166_v24 = vmul.f32 %v3461_v48, %v1133_v29 }
  0xba   : > { %4658 = vst [vmem:[#allocation20_spill] sm:$0xff] %v3617_v22  ;;  %4660 = vst [vmem:[#allocation21_spill] sm:$0xff] %v3623_v51  ;;  %v4667_v50 = vld [vmem:[#allocation10_spill] sm:$0xff]  ;;  %v4669_v55 = vld [vmem:[#allocation11_spill] sm:$0xff]  ;;  %v1168_v37 = vmul.f32 %v3461_v48, %v1135_v59  ;;  %v1169_v18 = vmul.f32 %v3461_v48, %v1136_v20  ;;  %v1173_v59 = vmul.f32 %v3461_v48, %v1140_v47 }
  0xbb   : > { %4662 = vst [vmem:[#allocation22_spill] sm:$0xff] %v3626_v46  ;;  %4664 = vst [vmem:[#allocation23_spill] sm:$0xff] %v3629_v23  ;;  %v3638_v54 = vadd.f32 %v1094_v34, %v4667_v50  ;;  %v3641_v17 = vadd.f32 %v1095_v39, %v4669_v55  ;;  %v1145_v3 = vld [vmem:[%s2568_s20 + $0x7d] sm:$0x1]  ;;  %v1146_v60 = vld [vmem:[%s2568_s20 + $0x85] sm:$0x1]  ;;  %v1165_v34 = vmul.f32 %v3461_v48, %v1132_v53 }
  0xbc   : > { %4666 = vst [vmem:[#allocation24_spill] sm:$0xff] %v3632_v0  ;;  %v1147_v61 = vld [vmem:[%s2568_s20 + $0x8d] sm:$0x1]  ;;  %v1148_v19 = vld [vmem:[%s2568_s20 + $0x95] sm:$0x1]  ;;  %v1167_v39 = vmul.f32 %v3461_v48, %v1134_v56  ;;  %v1172_v53 = vmul.f32 %v3461_v48, %v1139_v33  ;;  %v1174_v23 = vmul.f32 %v3461_v48, %v1141_v6  ;;  %v1175_v46 = vmul.f32 %v3461_v48, %v1142_v62 }
  0xbd   : > { %4668 = vst [vmem:[#allocation25_spill] sm:$0xff] %v3638_v54  ;;  %4670 = vst [vmem:[#allocation26_spill] sm:$0xff] %v3641_v17  ;;  %v1149_v8 = vld [vmem:[%s2568_s20 + $0x9d] sm:$0x1]  ;;  %v1150_v52 = vld [vmem:[%s2568_s20 + $0xa5] sm:$0x1]  ;;  %v1170_v17 = vmul.f32 %v3461_v48, %v1137_v42  ;;  %v1171_v54 = vmul.f32 %v3461_v48, %v1138_v44  ;;  %v1176_v20 = vmul.f32 %v3461_v48, %v1143_v57 }
  0xbe   : > { %v1151_v50 = vld [vmem:[%s2568_s20 + $0xad] sm:$0x1]  ;;  %v1152_v25 = vld [vmem:[%s2568_s20 + $0xb5] sm:$0x1]  ;;  %v1153_v55 = vld [vmem:[%s2568_s20 + $0xbd] sm:$0x1]  ;;  %v1177_v44 = vmul.f32 %v3461_v48, %v1144_v2  ;;  %v1178_v33 = vmul.f32 %v3461_v48, %v1145_v3  ;;  %v1179_v31 = vmul.f32 %v3461_v48, %v1146_v60  ;;  %v1180_v47 = vmul.f32 %v3461_v48, %v1147_v61 }
  0xbf   : > { %v1154_v29 = vld [vmem:[%s2568_s20 + $0xc5] sm:$0x1]  ;;  %v1155_v56 = vld [vmem:[%s2568_s20 + $0xcd] sm:$0x1]  ;;  %v1156_v0 = vld [vmem:[%s2568_s20 + $0xd5] sm:$0x1]  ;;  %v1181_v45 = vmul.f32 %v3461_v48, %v1148_v19  ;;  %v1182_v62 = vmul.f32 %v3461_v48, %v1149_v8  ;;  %v1183_v57 = vmul.f32 %v3461_v48, %v1150_v52  ;;  %v1184_v58 = vmul.f32 %v3461_v48, %v1151_v50 }
  0xc0   : > { %v1157_v51 = vld [vmem:[%s2568_s20 + $0xdd] sm:$0x1]  ;;  %v1158_v42 = vld [vmem:[%s2568_s20 + $0xe5] sm:$0x1]  ;;  %v1159_v22 = vld [vmem:[%s2568_s20 + $0xed] sm:$0x1]  ;;  %v1185_v2 = vmul.f32 %v3461_v48, %v1152_v25  ;;  %v1186_v49 = vmul.f32 %v3461_v48, %v1153_v55  ;;  %v1187_v3 = vmul.f32 %v3461_v48, %v1154_v29  ;;  %v1188_v60 = vmul.f32 %v3461_v48, %v1155_v56 }
  0xc1   : > { %v1160_v1 = vld [vmem:[%s2568_s20 + $0xf5] sm:$0x1]  ;;  %v1161_v6 = vld [vmem:[%s2568_s20 + $0xfd] sm:$0x1]  ;;  %v1265_v27 = vld [vmem:[%s2568_s20 + $0x6] sm:$0x1]  ;;  %v1189_v30 = vmul.f32 %v3461_v48, %v1156_v0  ;;  %v1190_v19 = vmul.f32 %v3461_v48, %v1157_v51  ;;  %v1191_v8 = vmul.f32 %v3461_v48, %v1158_v42  ;;  %v1192_v52 = vmul.f32 %v3461_v48, %v1159_v22 }
  0xc2   : > { %v1266_v61 = vld [vmem:[%s2568_s20 + $0xe] sm:$0x1]  ;;  %v1267_v63 = vld [vmem:[%s2568_s20 + $0x16] sm:$0x1]  ;;  %v1193_v50 = vmul.f32 %v3461_v48, %v1160_v1  ;;  %v1194_v25 = vmul.f32 %v3461_v48, %v1161_v6  ;;  %v3697_v55 = vmul.f32 %v3470_v41, %v1265_v27  ;;  %v1199_v29 = vsel %vm1198_vm4, %v1163_v5, 0.0 }
  0xc3   : > { %v1200_v0 = vsel %vm1198_vm4, %v1164_v7, 0.0  ;;  %v3704_v51 = vmul.f32 %v3470_v41, %v1266_v61  ;;  %v3707_v22 = vmul.f32 %v3470_v41, %v1267_v63  ;;  %v1201_v48 = vsel %vm1198_vm4, %v1165_v34, 0.0 }
  0xc4   : > { %v1202_v1 = vsel %vm1198_vm4, %v1166_v24, 0.0  ;;  %v1203_v27 = vsel %vm1198_vm4, %v1167_v39, 0.0  ;;  %v1204_v5 = vsel %vm1198_vm4, %v1168_v37, 0.0  ;;  %v1205_v7 = vsel %vm1198_vm4, %v1169_v18, 0.0 }
  0xc5   : > { %v1206_v56 = vsel %vm1198_vm4, %v1170_v17, 0.0  ;;  %v1207_v63 = vsel %vm1198_vm4, %v1171_v54, 0.0  ;;  %v1208_v34 = vsel %vm1198_vm4, %v1172_v53, 0.0  ;;  %v1209_v24 = vsel %vm1198_vm4, %v1173_v59, 0.0 }
  0xc6   : > { %v1210_v39 = vsel %vm1198_vm4, %v1174_v23, 0.0  ;;  %v1211_v37 = vsel %vm1198_vm4, %v1175_v46, 0.0  ;;  %v1212_v18 = vsel %vm1198_vm4, %v1176_v20, 0.0  ;;  %v1213_v17 = vsel %vm1198_vm4, %v1177_v44, 0.0 }
  0xc7   : > { %v1214_v54 = vsel %vm1198_vm4, %v1178_v33, 0.0  ;;  %v1215_v53 = vsel %vm1198_vm4, %v1179_v31, 0.0  ;;  %v1216_v59 = vsel %vm1198_vm4, %v1180_v47, 0.0  ;;  %v1217_v23 = vsel %vm1198_vm4, %v1181_v45, 0.0 }
  0xc8   : > { %v1218_v46 = vsel %vm1198_vm4, %v1182_v62, 0.0  ;;  %v1219_v20 = vsel %vm1198_vm4, %v1183_v57, 0.0  ;;  %v1220_v42 = vsel %vm1198_vm4, %v1184_v58, 0.0  ;;  %v1221_v44 = vsel %vm1198_vm4, %v1185_v2, 0.0 }
  0xc9   : > { %v1222_v31 = vsel %vm1198_vm4, %v1186_v49, 0.0  ;;  %v1223_v33 = vsel %vm1198_vm4, %v1187_v3, 0.0  ;;  %v1224_v45 = vsel %vm1198_vm4, %v1188_v60, 0.0  ;;  %v1225_v47 = vsel %vm1198_vm4, %v1189_v30, 0.0 }
  0xca   : > { %v1226_v6 = vsel %vm1198_vm4, %v1190_v19, 0.0  ;;  %v1227_v58 = vsel %vm1198_vm4, %v1191_v8, 0.0  ;;  %v1228_v62 = vsel %vm1198_vm4, %v1192_v52, 0.0  ;;  %v1229_v49 = vsel %vm1198_vm4, %v1193_v50, 0.0  ;;  %v1268_v19 = vld [vmem:[%s2568_s20 + $0x1e] sm:$0x1] }
  0xcb   : > { %v1230_v57 = vsel %vm1198_vm4, %v1194_v25, 0.0  ;;  %v3770_v2 = vadd.f32 %v1199_v29, %v3533_v35  ;;  %v3773_v30 = vadd.f32 %v1200_v0, %v3536_v13  ;;  %v3776_v3 = vadd.f32 %v1201_v48, %v3539_v40  ;;  %v1271_v52 = vld [vmem:[%s2568_s20 + $0x36] sm:$0x1]  ;;  %v1272_v50 = vld [vmem:[%s2568_s20 + $0x3e] sm:$0x1] }
  0xcc   : > { %v3779_v60 = vadd.f32 %v1202_v1, %v3542_v26  ;;  %v3782_v61 = vadd.f32 %v1203_v27, %v3545_v15  ;;  %v3785_v4 = vadd.f32 %v1204_v5, %v3548_v16  ;;  %v3788_v35 = vadd.f32 %v1205_v7, %v3551_v32  ;;  %v1273_v25 = vld [vmem:[%s2568_s20 + $0x46] sm:$0x1]  ;;  %v4678_v1 = vld [vmem:[#allocation16_spill] sm:$0xff]  ;;  %v1274_v5 = vld [vmem:[%s2568_s20 + $0x4e] sm:$0x1] }
  0xcd   : > { %v3791_v13 = vadd.f32 %v1206_v56, %v3554_v38  ;;  %v3794_v40 = vadd.f32 %v1207_v63, %v3557_v14  ;;  %v3797_v26 = vadd.f32 %v1208_v34, %v3560_v43  ;;  %v3800_v15 = vadd.f32 %v1209_v24, %v3563_v21  ;;  %v1269_v14 = vld [vmem:[%s2568_s20 + $0x26] sm:$0x1]  ;;  %v1275_v7 = vld [vmem:[%s2568_s20 + $0x56] sm:$0x1]  ;;  %v1276_v56 = vld [vmem:[%s2568_s20 + $0x5e] sm:$0x1] }
  0xce   : > { %v3803_v16 = vadd.f32 %v1210_v39, %v3566_v28  ;;  %v3806_v32 = vadd.f32 %v1211_v37, %v3569_v12  ;;  %v3809_v38 = vadd.f32 %v1212_v18, %v3572_v9  ;;  %v3814_v43 = vadd.f32 %v1213_v17, %v3577_v36  ;;  %v4671_v12 = vld [vmem:[#allocation12_spill] sm:$0xff]  ;;  %v1270_v9 = vld [vmem:[%s2568_s20 + $0x2e] sm:$0x1]  ;;  %v4672_v36 = vld [vmem:[#allocation13_spill] sm:$0xff] }
  0xcf   : > { %v3817_v21 = vadd.f32 %v1214_v54, %v3580_v11  ;;  %v3820_v28 = vadd.f32 %v1215_v53, %v3583_v10  ;;  %v3823_v8 = vadd.f32 %v1216_v59, %v4671_v12  ;;  %v3831_v29 = vadd.f32 %v1217_v23, %v4672_v36  ;;  %v4674_v11 = vld [vmem:[#allocation14_spill] sm:$0xff]  ;;  %v4676_v10 = vld [vmem:[#allocation15_spill] sm:$0xff]  ;;  %v4680_v34 = vld [vmem:[#allocation17_spill] sm:$0xff] }
  0xd0   : > { %v3834_v0 = vadd.f32 %v1218_v46, %v4674_v11  ;;  %v3837_v48 = vadd.f32 %v1219_v20, %v4676_v10  ;;  %v3840_v27 = vadd.f32 %v1220_v42, %v4678_v1  ;;  %v1277_v63 = vld [vmem:[%s2568_s20 + $0x66] sm:$0x1]  ;;  %v3847_v24 = vadd.f32 %v1221_v44, %v4680_v34  ;;  %v4684_v18 = vld [vmem:[#allocation19_spill] sm:$0xff]  ;;  %v4686_v54 = vld [vmem:[#allocation20_spill] sm:$0xff] }
  0xd1   : > { %4673 = vst [vmem:[#allocation10_spill] sm:$0xff] %v3831_v29  ;;  %v4682_v39 = vld [vmem:[#allocation18_spill] sm:$0xff]  ;;  %v3853_v17 = vadd.f32 %v1223_v33, %v4684_v18  ;;  %v3856_v53 = vadd.f32 %v1224_v45, %v4686_v54  ;;  %v1278_v59 = vld [vmem:[%s2568_s20 + $0x6e] sm:$0x1]  ;;  %v1279_v23 = vld [vmem:[%s2568_s20 + $0x76] sm:$0x1]  ;;  %v1301_v18 = vmul.f32 %v3470_v41, %v1268_v19  ;;  %v1302_v54 = vmul.f32 %v3470_v41, %v1269_v14 }
  0xd2   : > { %4675 = vst [vmem:[#allocation11_spill] sm:$0xff] %v3834_v0  ;;  %4677 = vst [vmem:[#allocation12_spill] sm:$0xff] %v3837_v48  ;;  %v3850_v37 = vadd.f32 %v1222_v31, %v4682_v39  ;;  %v1280_v46 = vld [vmem:[%s2568_s20 + $0x7e] sm:$0x1]  ;;  %v1281_v20 = vld [vmem:[%s2568_s20 + $0x86] sm:$0x1]  ;;  %v1306_v19 = vmul.f32 %v3470_v41, %v1273_v25  ;;  %v1312_v25 = vmul.f32 %v3470_v41, %v1279_v23  ;;  %v3947_v29 = vstv %s3884_s19 }
  0xd3   : > { %4679 = vst [vmem:[#allocation13_spill] sm:$0xff] %v3840_v27  ;;  %4681 = vst [vmem:[#allocation14_spill] sm:$0xff] %v3847_v24  ;;  %v4688_v42 = vld [vmem:[#allocation21_spill] sm:$0xff]  ;;  %v4690_v12 = vld [vmem:[#allocation22_spill] sm:$0xff] }
  0xd4   : > { %4683 = vst [vmem:[#allocation15_spill] sm:$0xff] %v3850_v37  ;;  %4685 = vst [vmem:[#allocation16_spill] sm:$0xff] %v3853_v17  ;;  %v3863_v44 = vadd.f32 %v1225_v47, %v4688_v42  ;;  %v3866_v31 = vadd.f32 %v1226_v6, %v4690_v12  ;;  %v4692_v33 = vld [vmem:[#allocation23_spill] sm:$0xff]  ;;  %v4694_v45 = vld [vmem:[#allocation24_spill] sm:$0xff] }
  0xd5   : > { %4687 = vst [vmem:[#allocation17_spill] sm:$0xff] %v3856_v53  ;;  %v3869_v36 = vadd.f32 %v1227_v58, %v4692_v33  ;;  %v3872_v11 = vadd.f32 %v1228_v62, %v4694_v45  ;;  %v1282_v10 = vld [vmem:[%s2568_s20 + $0x8e] sm:$0x1]  ;;  %v1283_v1 = vld [vmem:[%s2568_s20 + $0x96] sm:$0x1]  ;;  %v4697_v47 = vld [vmem:[#allocation25_spill] sm:$0xff]  ;;  %v1303_v33 = vmul.f32 %v3470_v41, %v1270_v9  ;;  %v1305_v45 = vmul.f32 %v3470_v41, %v1272_v50 }
  0xd6   : > { %4689 = vst [vmem:[#allocation18_spill] sm:$0xff] %v3863_v44  ;;  %4691 = vst [vmem:[#allocation19_spill] sm:$0xff] %v3866_v31  ;;  %v3887_v6 = vadd.f32 %v1229_v49, %v4697_v47  ;;  %v4699_v58 = vld [vmem:[#allocation26_spill] sm:$0xff]  ;;  %v1284_v62 = vld [vmem:[%s2568_s20 + $0x9e] sm:$0x1]  ;;  %v1310_v9 = vmul.f32 %v3470_v41, %v1277_v63  ;;  %v1311_v50 = vmul.f32 %v3470_v41, %v1278_v59 }
  0xd7   : > { %4693 = vst [vmem:[#allocation20_spill] sm:$0xff] %v3869_v36  ;;  %4695 = vst [vmem:[#allocation21_spill] sm:$0xff] %v3872_v11  ;;  %v3890_v34 = vadd.f32 %v1230_v57, %v4699_v58  ;;  %v1285_v39 = vld [vmem:[%s2568_s20 + $0xa6] sm:$0x1]  ;;  %v1286_v42 = vld [vmem:[%s2568_s20 + $0xae] sm:$0x1]  ;;  %v1304_v57 = vmul.f32 %v3470_v41, %v1271_v52  ;;  %v1309_v11 = vmul.f32 %v3470_v41, %v1276_v56 }
  0xd8   : > { %4698 = vst [vmem:[#allocation22_spill] sm:$0xff] %v3887_v6  ;;  %v1287_v49 = vld [vmem:[%s2568_s20 + $0xb6] sm:$0x1]  ;;  %v1288_v12 = vld [vmem:[%s2568_s20 + $0xbe] sm:$0x1]  ;;  %v1308_v6 = vmul.f32 %v3470_v41, %v1275_v7  ;;  %v1313_v31 = vmul.f32 %v3470_v41, %v1280_v46  ;;  %v1314_v44 = vmul.f32 %v3470_v41, %v1281_v20  ;;  %v1315_v56 = vmul.f32 %v3470_v41, %v1282_v10 }
  0xd9   : > { %4700 = vst [vmem:[#allocation23_spill] sm:$0xff] %v3890_v34  ;;  %v1289_v14 = vld [vmem:[%s2568_s20 + $0xc6] sm:$0x1]  ;;  %v1290_v47 = vld [vmem:[%s2568_s20 + $0xce] sm:$0x1]  ;;  %v1307_v34 = vmul.f32 %v3470_v41, %v1274_v5  ;;  %v1316_v63 = vmul.f32 %v3470_v41, %v1283_v1  ;;  %v1317_v53 = vmul.f32 %v3470_v41, %v1284_v62  ;;  %v1318_v59 = vmul.f32 %v3470_v41, %v1285_v39 }
  0xda   : > { %v1291_v58 = vld [vmem:[%s2568_s20 + $0xd6] sm:$0x1]  ;;  %v1292_v52 = vld [vmem:[%s2568_s20 + $0xde] sm:$0x1]  ;;  %v1293_v36 = vld [vmem:[%s2568_s20 + $0xe6] sm:$0x1]  ;;  %v1319_v46 = vmul.f32 %v3470_v41, %v1286_v42  ;;  %v1320_v20 = vmul.f32 %v3470_v41, %v1287_v49  ;;  %v1321_v17 = vmul.f32 %v3470_v41, %v1288_v12  ;;  %v1322_v37 = vmul.f32 %v3470_v41, %v1289_v14 }
  0xdb   : > { %v1294_v5 = vld [vmem:[%s2568_s20 + $0xee] sm:$0x1]  ;;  %v1295_v7 = vld [vmem:[%s2568_s20 + $0xf6] sm:$0x1]  ;;  %v1296_v23 = vld [vmem:[%s2568_s20 + $0xfe] sm:$0x1]  ;;  %v1323_v24 = vmul.f32 %v3470_v41, %v1290_v47  ;;  %v1324_v1 = vmul.f32 %v3470_v41, %v1291_v58  ;;  %v1325_v62 = vmul.f32 %v3470_v41, %v1292_v52  ;;  %v1326_v39 = vmul.f32 %v3470_v41, %v1293_v36 }
  0xdc   : > { %v1400_v10 = vld [vmem:[%s2568_s20 + $0x7] sm:$0x1]  ;;  %v1401_v27 = vld [vmem:[%s2568_s20 + $0xf] sm:$0x1]  ;;  %v1402_v48 = vld [vmem:[%s2568_s20 + $0x17] sm:$0x1]  ;;  %v1327_v0 = vmul.f32 %v3470_v41, %v1294_v5  ;;  %v1328_v42 = vmul.f32 %v3470_v41, %v1295_v7  ;;  %v1332_v49 = vstv %s1331_s15  ;;  %v1329_v12 = vmul.f32 %v3470_v41, %v1296_v23 }
  0xdd   : > { %vm1333_vm5 = vcmp.eq.s32.totalorder %v1332_v49, 1  ;;  %v3951_v14 = vmul.f32 %v3947_v29, %v1400_v10  ;;  %v3953_v47 = vstv %s1466_s16  ;;  %v3960_v52 = vmul.f32 %v3947_v29, %v1401_v27  ;;  %v4704_v49 = vld [vmem:[#allocation10_spill] sm:$0xff] }
  0xde   : > { %v1334_v36 = vsel %vm1333_vm5, %v3697_v55, 0.0  ;;  %v1335_v58 = vsel %vm1333_vm5, %v3704_v51, 0.0  ;;  %v3963_v5 = vmul.f32 %v3947_v29, %v1402_v48  ;;  %v1336_v41 = vsel %vm1333_vm5, %v3707_v22, 0.0 }
  0xdf   : > { %4702 = vst [vmem:[#allocation24_spill] sm:$0xff] %v3951_v14  ;;  %v1337_v7 = vsel %vm1333_vm5, %v1301_v18, 0.0  ;;  %v1338_v23 = vsel %vm1333_vm5, %v1302_v54, 0.0  ;;  %v1339_v10 = vsel %vm1333_vm5, %v1303_v33, 0.0  ;;  %v1340_v55 = vsel %vm1333_vm5, %v1304_v57, 0.0 }
  0xe0   : > { %4703 = vst [vmem:[#allocation25_spill] sm:$0xff] %v3963_v5  ;;  %v1341_v14 = vsel %vm1333_vm5, %v1305_v45, 0.0  ;;  %v1342_v51 = vsel %vm1333_vm5, %v1306_v19, 0.0  ;;  %v1343_v27 = vsel %vm1333_vm5, %v1307_v34, 0.0  ;;  %v1344_v48 = vsel %vm1333_vm5, %v1308_v6, 0.0 }
  0xe1   : > { %v1345_v5 = vsel %vm1333_vm5, %v1309_v11, 0.0  ;;  %v1346_v22 = vsel %vm1333_vm5, %v1310_v9, 0.0  ;;  %v1347_v18 = vsel %vm1333_vm5, %v1311_v50, 0.0  ;;  %v1348_v54 = vsel %vm1333_vm5, %v1312_v25, 0.0 }
  0xe2   : > { %v1349_v33 = vsel %vm1333_vm5, %v1313_v31, 0.0  ;;  %v1350_v57 = vsel %vm1333_vm5, %v1314_v44, 0.0  ;;  %v1351_v45 = vsel %vm1333_vm5, %v1315_v56, 0.0  ;;  %v1352_v19 = vsel %vm1333_vm5, %v1316_v63, 0.0 }
  0xe3   : > { %v1353_v34 = vsel %vm1333_vm5, %v1317_v53, 0.0  ;;  %v1354_v6 = vsel %vm1333_vm5, %v1318_v59, 0.0  ;;  %v1355_v11 = vsel %vm1333_vm5, %v1319_v46, 0.0  ;;  %v1356_v9 = vsel %vm1333_vm5, %v1320_v20, 0.0 }
  0xe4   : > { %v1357_v50 = vsel %vm1333_vm5, %v1321_v17, 0.0  ;;  %v1358_v25 = vsel %vm1333_vm5, %v1322_v37, 0.0  ;;  %v1359_v31 = vsel %vm1333_vm5, %v1323_v24, 0.0  ;;  %v1360_v44 = vsel %vm1333_vm5, %v1324_v1, 0.0 }
  0xe5   : > { %v1361_v56 = vsel %vm1333_vm5, %v1325_v62, 0.0  ;;  %v1362_v63 = vsel %vm1333_vm5, %v1326_v39, 0.0  ;;  %v1363_v53 = vsel %vm1333_vm5, %v1327_v0, 0.0  ;;  %v1364_v59 = vsel %vm1333_vm5, %v1328_v42, 0.0  ;;  %v1404_v62 = vld [vmem:[%s2568_s20 + $0x27] sm:$0x1] }
  0xe6   : > { %v1365_v46 = vsel %vm1333_vm5, %v1329_v12, 0.0  ;;  %v3997_v17 = vadd.f32 %v1334_v36, %v3770_v2  ;;  %v4000_v37 = vadd.f32 %v1335_v58, %v3773_v30  ;;  %v4003_v24 = vadd.f32 %v1336_v41, %v3776_v3  ;;  %v1405_v39 = vld [vmem:[%s2568_s20 + $0x2f] sm:$0x1]  ;;  %v1407_v42 = vld [vmem:[%s2568_s20 + $0x3f] sm:$0x1] }
  0xe7   : > { %v4006_v20 = vadd.f32 %v1337_v7, %v3779_v60  ;;  %v4009_v0 = vadd.f32 %v1338_v23, %v3782_v61  ;;  %v4012_v1 = vadd.f32 %v1339_v10, %v3785_v4  ;;  %v4015_v2 = vadd.f32 %v1340_v55, %v3788_v35  ;;  %v1410_v41 = vld [vmem:[%s2568_s20 + $0x57] sm:$0x1]  ;;  %v4708_v7 = vld [vmem:[#allocation14_spill] sm:$0xff]  ;;  %v4710_v10 = vld [vmem:[#allocation15_spill] sm:$0xff] }
  0xe8   : > { %v4018_v30 = vadd.f32 %v1341_v14, %v3791_v13  ;;  %v4021_v3 = vadd.f32 %v1342_v51, %v3794_v40  ;;  %v4024_v60 = vadd.f32 %v1343_v27, %v3797_v26  ;;  %v4027_v61 = vadd.f32 %v1344_v48, %v3800_v15  ;;  %v1403_v40 = vld [vmem:[%s2568_s20 + $0x1f] sm:$0x1]  ;;  %v4712_v51 = vld [vmem:[#allocation16_spill] sm:$0xff] }
  0xe9   : > { %v4030_v4 = vadd.f32 %v1345_v5, %v3803_v16  ;;  %v4033_v35 = vadd.f32 %v1346_v22, %v3806_v32  ;;  %v4036_v13 = vadd.f32 %v1347_v18, %v3809_v38  ;;  %v4041_v26 = vadd.f32 %v1348_v54, %v3814_v43  ;;  %v1406_v38 = vld [vmem:[%s2568_s20 + $0x37] sm:$0x1]  ;;  %v4705_v43 = vld [vmem:[#allocation11_spill] sm:$0xff]  ;;  %v4714_v48 = vld [vmem:[#allocation17_spill] sm:$0xff] }
  0xea   : > { %v4044_v15 = vadd.f32 %v1349_v33, %v3817_v21  ;;  %v4047_v16 = vadd.f32 %v1350_v57, %v3820_v28  ;;  %v4050_v32 = vadd.f32 %v1351_v45, %v3823_v8  ;;  %v4056_v12 = vadd.f32 %v1352_v19, %v4704_v49  ;;  %v4706_v21 = vld [vmem:[#allocation12_spill] sm:$0xff]  ;;  %v4707_v28 = vld [vmem:[#allocation13_spill] sm:$0xff]  ;;  %v1408_v8 = vld [vmem:[%s2568_s20 + $0x47] sm:$0x1] }
  0xeb   : > { %v4059_v14 = vadd.f32 %v1353_v34, %v4705_v43  ;;  %v4062_v36 = vadd.f32 %v1354_v6, %v4706_v21  ;;  %v4065_v58 = vadd.f32 %v1355_v11, %v4707_v28  ;;  %v1409_v5 = vld [vmem:[%s2568_s20 + $0x4f] sm:$0x1]  ;;  %v4071_v23 = vadd.f32 %v1356_v9, %v4708_v7  ;;  %v1411_v18 = vld [vmem:[%s2568_s20 + $0x5f] sm:$0x1]  ;;  %v1412_v54 = vld [vmem:[%s2568_s20 + $0x67] sm:$0x1] }
  0xec   : > { %v4074_v55 = vadd.f32 %v1357_v50, %v4710_v10  ;;  %v4077_v27 = vadd.f32 %v1358_v25, %v4712_v51  ;;  %v4080_v22 = vadd.f32 %v1359_v31, %v4714_v48  ;;  %v1413_v33 = vld [vmem:[%s2568_s20 + $0x6f] sm:$0x1]  ;;  %v4716_v57 = vld [vmem:[#allocation18_spill] sm:$0xff]  ;;  %v4720_v6 = vld [vmem:[#allocation20_spill] sm:$0xff]  ;;  %vm1468_vm6 = vcmp.eq.s32.totalorder %v3953_v47, 1 }
  0xed   : > { %4709 = vst [vmem:[#allocation26_spill] sm:$0xff] %v4071_v23  ;;  %v4086_v45 = vadd.f32 %v1360_v44, %v4716_v57  ;;  %v4718_v19 = vld [vmem:[#allocation19_spill] sm:$0xff]  ;;  %v4092_v11 = vadd.f32 %v1362_v63, %v4720_v6  ;;  %v4722_v9 = vld [vmem:[#allocation21_spill] sm:$0xff]  ;;  %v1414_v25 = vld [vmem:[%s2568_s20 + $0x77] sm:$0x1]  ;;  %v1436_v63 = vmul.f32 %v3947_v29, %v1403_v40  ;;  %v1441_v6 = vmul.f32 %v3947_v29, %v1408_v8 }
  0xee   : > { %4711 = vst [vmem:[#allocation10_spill] sm:$0xff] %v4074_v55  ;;  %4713 = vst [vmem:[#allocation11_spill] sm:$0xff] %v4077_v27  ;;  %v4089_v34 = vadd.f32 %v1361_v56, %v4718_v19  ;;  %v4095_v50 = vadd.f32 %v1363_v53, %v4722_v9  ;;  %v1415_v31 = vld [vmem:[%s2568_s20 + $0x7f] sm:$0x1]  ;;  %v1416_v49 = vld [vmem:[%s2568_s20 + $0x87] sm:$0x1]  ;;  %v1437_v53 = vmul.f32 %v3947_v29, %v1404_v62 }
  0xef   : > { %4715 = vst [vmem:[#allocation12_spill] sm:$0xff] %v4080_v22  ;;  %4717 = vst [vmem:[#allocation13_spill] sm:$0xff] %v4086_v45  ;;  %v4724_v43 = vld [vmem:[#allocation22_spill] sm:$0xff]  ;;  %v4726_v44 = vld [vmem:[#allocation23_spill] sm:$0xff]  ;;  %v1439_v19 = vmul.f32 %v3947_v29, %v1406_v38  ;;  %v1442_v62 = vmul.f32 %v3947_v29, %v1409_v5  ;;  %v1447_v8 = vmul.f32 %v3947_v29, %v1414_v25 }
  0xf0   : > { %4719 = vst [vmem:[#allocation14_spill] sm:$0xff] %v4089_v34  ;;  %4721 = vst [vmem:[#allocation15_spill] sm:$0xff] %v4092_v11  ;;  %v4101_v21 = vadd.f32 %v1364_v59, %v4724_v43  ;;  %v4104_v28 = vadd.f32 %v1365_v46, %v4726_v44  ;;  %v1417_v56 = vld [vmem:[%s2568_s20 + $0x8f] sm:$0x1]  ;;  %v1418_v7 = vld [vmem:[%s2568_s20 + $0x97] sm:$0x1]  ;;  %v1438_v59 = vmul.f32 %v3947_v29, %v1405_v39 }
  0xf1   : > { %4723 = vst [vmem:[#allocation16_spill] sm:$0xff] %v4095_v50  ;;  %v1419_v10 = vld [vmem:[%s2568_s20 + $0x9f] sm:$0x1]  ;;  %v1420_v51 = vld [vmem:[%s2568_s20 + $0xa7] sm:$0x1]  ;;  %v1440_v46 = vmul.f32 %v3947_v29, %v1407_v42  ;;  %v1443_v44 = vmul.f32 %v3947_v29, %v1410_v41  ;;  %v1445_v39 = vmul.f32 %v3947_v29, %v1412_v54  ;;  %v1446_v42 = vmul.f32 %v3947_v29, %v1413_v33 }
  0xf2   : > { %4725 = vst [vmem:[#allocation17_spill] sm:$0xff] %v4101_v21  ;;  %4727 = vst [vmem:[#allocation18_spill] sm:$0xff] %v4104_v28  ;;  %v1421_v48 = vld [vmem:[%s2568_s20 + $0xaf] sm:$0x1]  ;;  %v1422_v57 = vld [vmem:[%s2568_s20 + $0xb7] sm:$0x1]  ;;  %v1444_v28 = vmul.f32 %v3947_v29, %v1411_v18  ;;  %v1448_v11 = vmul.f32 %v3947_v29, %v1415_v31  ;;  %v1449_v34 = vmul.f32 %v3947_v29, %v1416_v49 }
  0xf3   : > { %v1423_v9 = vld [vmem:[%s2568_s20 + $0xbf] sm:$0x1]  ;;  %v1424_v40 = vld [vmem:[%s2568_s20 + $0xc7] sm:$0x1]  ;;  %v1425_v43 = vld [vmem:[%s2568_s20 + $0xcf] sm:$0x1]  ;;  %v1450_v41 = vmul.f32 %v3947_v29, %v1417_v56  ;;  %v1451_v18 = vmul.f32 %v3947_v29, %v1418_v7  ;;  %v1452_v54 = vmul.f32 %v3947_v29, %v1419_v10  ;;  %v1453_v27 = vmul.f32 %v3947_v29, %v1420_v51 }
  0xf4   : > { %v1426_v21 = vld [vmem:[%s2568_s20 + $0xd7] sm:$0x1]  ;;  %v1427_v38 = vld [vmem:[%s2568_s20 + $0xdf] sm:$0x1]  ;;  %v1428_v50 = vld [vmem:[%s2568_s20 + $0xe7] sm:$0x1]  ;;  %v1454_v55 = vmul.f32 %v3947_v29, %v1421_v48  ;;  %v1455_v33 = vmul.f32 %v3947_v29, %v1422_v57  ;;  %v1456_v25 = vmul.f32 %v3947_v29, %v1423_v9  ;;  %v1457_v31 = vmul.f32 %v3947_v29, %v1424_v40 }
  0xf5   : > { %v1429_v45 = vld [vmem:[%s2568_s20 + $0xef] sm:$0x1]  ;;  %v1430_v22 = vld [vmem:[%s2568_s20 + $0xf7] sm:$0x1]  ;;  %v1431_v5 = vld [vmem:[%s2568_s20 + $0xff] sm:$0x1]  ;;  %v1458_v49 = vmul.f32 %v3947_v29, %v1425_v43  ;;  %v1459_v23 = vmul.f32 %v3947_v29, %v1426_v21  ;;  %v1460_v56 = vmul.f32 %v3947_v29, %v1427_v38  ;;  %v1461_v7 = vmul.f32 %v3947_v29, %v1428_v50 }
  0xf6   : > { %v1462_v10 = vmul.f32 %v3947_v29, %v1429_v45  ;;  %v1463_v51 = vmul.f32 %v3947_v29, %v1430_v22  ;;  %v1464_v48 = vmul.f32 %v3947_v29, %v1431_v5  ;;  %v4728_v57 = vld [vmem:[#allocation24_spill] sm:$0xff]  ;;  %v1470_v21 = vsel %vm1468_vm6, %v3960_v52, 0.0  ;;  %v4729_v40 = vld [vmem:[#allocation25_spill] sm:$0xff] }
  0xf7   : > { %v1469_v9 = vsel %vm1468_vm6, %v4728_v57, 0.0  ;;  %v1471_v50 = vsel %vm1468_vm6, %v4729_v40, 0.0  ;;  %v1472_v45 = vsel %vm1468_vm6, %v1436_v63, 0.0  ;;  %v1473_v29 = vsel %vm1468_vm6, %v1437_v53, 0.0 }
  0xf8   : > { %v1474_v22 = vsel %vm1468_vm6, %v1438_v59, 0.0  ;;  %v1475_v43 = vsel %vm1468_vm6, %v1439_v19, 0.0  ;;  %v1476_v38 = vsel %vm1468_vm6, %v1440_v46, 0.0  ;;  %v1477_v52 = vsel %vm1468_vm6, %v1441_v6, 0.0 }
  0xf9   : > { %v1478_v5 = vsel %vm1468_vm6, %v1442_v62, 0.0  ;;  %v1479_v63 = vsel %vm1468_vm6, %v1443_v44, 0.0  ;;  %v1480_v53 = vsel %vm1468_vm6, %v1444_v28, 0.0  ;;  %v1481_v59 = vsel %vm1468_vm6, %v1445_v39, 0.0 }
  0xfa   : > { %v1482_v19 = vsel %vm1468_vm6, %v1446_v42, 0.0  ;;  %v1483_v46 = vsel %vm1468_vm6, %v1447_v8, 0.0  ;;  %v1484_v6 = vsel %vm1468_vm6, %v1448_v11, 0.0  ;;  %v1485_v62 = vsel %vm1468_vm6, %v1449_v34, 0.0 }
  0xfb   : > { %v1486_v44 = vsel %vm1468_vm6, %v1450_v41, 0.0  ;;  %v1487_v28 = vsel %vm1468_vm6, %v1451_v18, 0.0  ;;  %v1488_v39 = vsel %vm1468_vm6, %v1452_v54, 0.0  ;;  %v1489_v42 = vsel %vm1468_vm6, %v1453_v27, 0.0 }
  0xfc   : > { %v1490_v8 = vsel %vm1468_vm6, %v1454_v55, 0.0  ;;  %v1491_v11 = vsel %vm1468_vm6, %v1455_v33, 0.0  ;;  %v1492_v34 = vsel %vm1468_vm6, %v1456_v25, 0.0  ;;  %v1493_v41 = vsel %vm1468_vm6, %v1457_v31, 0.0 }
  0xfd   : > { %v1494_v18 = vsel %vm1468_vm6, %v1458_v49, 0.0  ;;  %v1495_v54 = vsel %vm1468_vm6, %v1459_v23, 0.0  ;;  %v1496_v27 = vsel %vm1468_vm6, %v1460_v56, 0.0  ;;  %v1497_v55 = vsel %vm1468_vm6, %v1461_v7, 0.0 }
  0xfe   : > { %v1498_v33 = vsel %vm1468_vm6, %v1462_v10, 0.0  ;;  %v1499_v25 = vsel %vm1468_vm6, %v1463_v51, 0.0  ;;  %v1500_v31 = vsel %vm1468_vm6, %v1464_v48, 0.0  ;;  %v4219_v49 = vadd.f32 %v1469_v9, %v3997_v17 }
  0xff   : > { %v4222_v23 = vadd.f32 %v1470_v21, %v4000_v37  ;;  %v4225_v56 = vadd.f32 %v1471_v50, %v4003_v24  ;;  %v4228_v7 = vadd.f32 %v1472_v45, %v4006_v20  ;;  %v4231_v10 = vadd.f32 %v1473_v29, %v4009_v0  ;;  %v4737_v29 = vld [vmem:[#allocation16_spill] sm:$0xff] }
 0x100   : > { %v4234_v51 = vadd.f32 %v1474_v22, %v4012_v1  ;;  %v4237_v47 = vadd.f32 %v1475_v43, %v4015_v2  ;;  %v4240_v17 = vadd.f32 %v1476_v38, %v4018_v30  ;;  %v4243_v37 = vadd.f32 %v1477_v52, %v4021_v3  ;;  %v4738_v43 = vld [vmem:[#allocation17_spill] sm:$0xff]  ;;  %v4739_v52 = vld [vmem:[#allocation18_spill] sm:$0xff] }
 0x101   : > { %v4246_v24 = vadd.f32 %v1478_v5, %v4024_v60  ;;  %v4249_v20 = vadd.f32 %v1479_v63, %v4027_v61  ;;  %v4252_v0 = vadd.f32 %v1480_v53, %v4030_v4  ;;  %v4255_v1 = vadd.f32 %v1481_v59, %v4033_v35 }
 0x102   : > { %v4258_v2 = vadd.f32 %v1482_v19, %v4036_v13  ;;  %v4261_v30 = vadd.f32 %v1483_v46, %v4041_v26  ;;  %v4264_v3 = vadd.f32 %v1484_v6, %v4044_v15  ;;  %v4267_v60 = vadd.f32 %v1485_v62, %v4047_v16  ;;  %v4730_v15 = vld [vmem:[#allocation26_spill] sm:$0xff]  ;;  %1536 = sbr.rel (%p2157_p13) target bundleno = 283 (0x11b), region = 98 }
 0x103   : > { %v4270_v61 = vadd.f32 %v1486_v44, %v4050_v32  ;;  %v4273_v4 = vadd.f32 %v1487_v28, %v4056_v12  ;;  %v4276_v35 = vadd.f32 %v1488_v39, %v4059_v14  ;;  %v4279_v13 = vadd.f32 %v1489_v42, %v4062_v36  ;;  %v4731_v16 = vld [vmem:[#allocation10_spill] sm:$0xff]  ;;  %v4732_v32 = vld [vmem:[#allocation11_spill] sm:$0xff]  ;;  %v4733_v12 = vld [vmem:[#allocation12_spill] sm:$0xff] }
 0x104   : > { %v4282_v26 = vadd.f32 %v1490_v8, %v4065_v58  ;;  %v4285_v48 = vadd.f32 %v1491_v11, %v4730_v15  ;;  %v4288_v57 = vadd.f32 %v1492_v34, %v4731_v16  ;;  %v4291_v9 = vadd.f32 %v1493_v41, %v4732_v32  ;;  %v4734_v14 = vld [vmem:[#allocation13_spill] sm:$0xff]  ;;  %v4735_v36 = vld [vmem:[#allocation14_spill] sm:$0xff]  ;;  %v4736_v58 = vld [vmem:[#allocation15_spill] sm:$0xff] }
 0x105   : > { %v4294_v21 = vadd.f32 %v1494_v18, %v4733_v12  ;;  %v4297_v40 = vadd.f32 %v1495_v54, %v4734_v14  ;;  %v4300_v50 = vadd.f32 %v1496_v27, %v4735_v36  ;;  %v4303_v45 = vadd.f32 %v1497_v55, %v4736_v58 }
 0x106   : > { %v4306_v22 = vadd.f32 %v1498_v33, %v4737_v29  ;;  %v4309_v38 = vadd.f32 %v1499_v25, %v4738_v43  ;;  %v4312_v5 = vadd.f32 %v1500_v31, %v4739_v52 }
 0x107   : > { %v1569_v63 = vrot.slane %v4222_v23, 7  ;;  %vm1570_vm7 = vcmask 1041409   ;;  %v1572_v53 = vrot.slane %v4225_v56, 6  ;;  %vm1573_vm8 = vcmask 1042434  }
 0x108   : > { %v1575_v59 = vrot.slane %v4228_v7, 5  ;;  %vm1576_vm9 = vcmask 1043459   ;;  %v1578_v19 = vrot.slane %v4231_v10, 4  ;;  %vm1579_vm10 = vcmask 1044484  }
 0x109   : > { %v1571_v46 = vsel %vm1570_vm7, %v1569_v63, %v4219_v49  ;;  %v1581_v6 = vrot.slane %v4234_v51, 3  ;;  %vm1582_vm11 = vcmask 1045509   ;;  %v1584_v62 = vrot.slane %v4237_v47, 2 }
 0x10a   : > { %v1574_v44 = vsel %vm1573_vm8, %v1572_v53, %v1571_v46  ;;  %vm1585_vm12 = vcmask 1046534   ;;  %v1587_v28 = vrot.slane %v4240_v17, 1  ;;  %vm1588_vm13 = vcmask 1047559  }
 0x10b   : > { %v1577_v39 = vsel %vm1576_vm9, %v1575_v59, %v1574_v44  ;;  %vm1636_vm14 = vcmask 261120   ;;  %v1590_v42 = vrot.slane %v4246_v24, 7  ;;  %v1592_v8 = vrot.slane %v4249_v20, 6 }
 0x10c   : > { %v1580_v11 = vsel %vm1579_vm10, %v1578_v19, %v1577_v39  ;;  %v1594_v34 = vrot.slane %v4252_v0, 5  ;;  %v1596_v41 = vrot.slane %v4255_v1, 4  ;;  %v1598_v18 = vrot.slane %v4258_v2, 3 }
 0x10d   : > { %v1583_v54 = vsel %vm1582_vm11, %v1581_v6, %v1580_v11  ;;  %v1591_v27 = vsel %vm1570_vm7, %v1590_v42, %v4243_v37  ;;  %v1600_v55 = vrot.slane %v4261_v30, 2  ;;  %v1602_v33 = vrot.slane %v4264_v3, 1 }
 0x10e   : > { %v1586_v25 = vsel %vm1585_vm12, %v1584_v62, %v1583_v54  ;;  %v1593_v31 = vsel %vm1573_vm8, %v1592_v8, %v1591_v27  ;;  %v1604_v15 = vrot.slane %v4270_v61, 7  ;;  %v1606_v16 = vrot.slane %v4273_v4, 6 }
 0x10f   : > { %v1589_v32 = vsel %vm1588_vm13, %v1587_v28, %v1586_v25  ;;  %v1595_v12 = vsel %vm1576_vm9, %v1594_v34, %v1593_v31  ;;  %v1608_v14 = vrot.slane %v4276_v35, 5  ;;  %v1610_v36 = vrot.slane %v4279_v13, 4 }
 0x110   : > { %1637 = vst.msk [vmem:[#allocation2] sm:$0xff] %vm1636_vm14, %v1589_v32  ;;  %v1597_v58 = vsel %vm1579_vm10, %v1596_v41, %v1595_v12  ;;  %v1605_v29 = vsel %vm1570_vm7, %v1604_v15, %v4267_v60  ;;  %v1612_v43 = vrot.slane %v4282_v26, 3  ;;  %v1614_v52 = vrot.slane %v4285_v48, 2 }
 0x111   : > { %v1599_v63 = vsel %vm1582_vm11, %v1598_v18, %v1597_v58  ;;  %v1607_v53 = vsel %vm1573_vm8, %v1606_v16, %v1605_v29  ;;  %v1616_v59 = vrot.slane %v4288_v57, 1  ;;  %v1618_v19 = vrot.slane %v4294_v21, 7 }
 0x112   : > { %v1601_v46 = vsel %vm1585_vm12, %v1600_v55, %v1599_v63  ;;  %v1609_v6 = vsel %vm1576_vm9, %v1608_v14, %v1607_v53  ;;  %v1620_v62 = vrot.slane %v4297_v40, 6  ;;  %v1622_v44 = vrot.slane %v4300_v50, 5 }
 0x113   : > { %v1603_v28 = vsel %vm1588_vm13, %v1602_v33, %v1601_v46  ;;  %v1611_v39 = vsel %vm1579_vm10, %v1610_v36, %v1609_v6  ;;  %v1619_v42 = vsel %vm1570_vm7, %v1618_v19, %v4291_v9  ;;  %v1624_v8 = vrot.slane %v4303_v45, 4 }
 0x114   : > { %1638 = vst.msk [vmem:[#allocation2 + $0x8] sm:$0xff] %vm1636_vm14, %v1603_v28  ;;  %v1613_v11 = vsel %vm1582_vm11, %v1612_v43, %v1611_v39  ;;  %v1621_v34 = vsel %vm1573_vm8, %v1620_v62, %v1619_v42  ;;  %v1626_v41 = vrot.slane %v4306_v22, 3  ;;  %v1628_v18 = vrot.slane %v4309_v38, 2 }
 0x115   : > { %v1615_v54 = vsel %vm1585_vm12, %v1614_v52, %v1613_v11  ;;  %v1623_v27 = vsel %vm1576_vm9, %v1622_v44, %v1621_v34  ;;  %v1630_v55 = vrot.slane %v4312_v5, 1 }
 0x116   : > { %v1617_v33 = vsel %vm1588_vm13, %v1616_v59, %v1615_v54  ;;  %v1625_v25 = vsel %vm1579_vm10, %v1624_v8, %v1623_v27 }
 0x117   : > { %1639 = vst.msk [vmem:[#allocation2 + $0x10] sm:$0xff] %vm1636_vm14, %v1617_v33  ;;  %v1627_v31 = vsel %vm1582_vm11, %v1626_v41, %v1625_v25 }
 0x118   : > { %v1629_v15 = vsel %vm1585_vm12, %v1628_v18, %v1627_v31 }
 0x119   : > { %v1631_v16 = vsel %vm1588_vm13, %v1630_v55, %v1629_v15 }
 0x11a   : > { %1640 = vst.msk [vmem:[#allocation2 + $0x18] sm:$0xff] %vm1636_vm14, %v1631_v16 }
 0x11b PF: > { %p2158_p0 = scmp.le.s32.totalorder %s2365_s29, 0 }
 0x11d   : > { %1644 = sbr.rel (%p2158_p0) target bundleno = 313 (0x139), region = 102 }
 0x122   : > { %v1681_v32 = vrot.slane %v4222_v23, 7  ;;  %vm1682_vm15 = vcmask 1041409   ;;  %v1684_v12 = vrot.slane %v4225_v56, 6  ;;  %vm1685_vm0 = vcmask 1042434   ;;  %v1645_v53 = vld [vmem:[#allocation2] sm:$0xff]  ;;  %v1646_v39 = vld [vmem:[#allocation2 + $0x8] sm:$0xff] }
 0x123   : > { %v1687_v14 = vrot.slane %v4228_v7, 5  ;;  %vm1688_vm1 = vcmask 1043459   ;;  %v1690_v36 = vrot.slane %v4231_v10, 4  ;;  %vm1691_vm2 = vcmask 1044484  }
 0x124   : > { %v1683_v58 = vsel %vm1682_vm15, %v1681_v32, %v4219_v49  ;;  %v1693_v29 = vrot.slane %v4234_v51, 3  ;;  %vm1694_vm3 = vcmask 1045509   ;;  %v1696_v43 = vrot.slane %v4237_v47, 2 }
 0x125   : > { %v1686_v23 = vsel %vm1685_vm0, %v1684_v12, %v1683_v58  ;;  %vm1697_vm4 = vcmask 1046534   ;;  %v1699_v56 = vrot.slane %v4240_v17, 1  ;;  %vm1700_vm5 = vcmask 1047559  }
 0x126   : > { %v1689_v7 = vsel %vm1688_vm1, %v1687_v14, %v1686_v23  ;;  %vm1752_vm6 = vcmask 261120   ;;  %v1702_v10 = vrot.slane %v4246_v24, 7  ;;  %v1704_v52 = vrot.slane %v4249_v20, 6 }
 0x127   : > { %v1692_v49 = vsel %vm1691_vm2, %v1690_v36, %v1689_v7  ;;  %v1706_v51 = vrot.slane %v4252_v0, 5  ;;  %v1708_v63 = vrot.slane %v4255_v1, 4  ;;  %v1710_v47 = vrot.slane %v4258_v2, 3 }
 0x128   : > { %v1695_v59 = vsel %vm1694_vm3, %v1693_v29, %v1692_v49  ;;  %v1703_v17 = vsel %vm1682_vm15, %v1702_v10, %v4243_v37  ;;  %v1712_v19 = vrot.slane %v4261_v30, 2  ;;  %v1714_v24 = vrot.slane %v4264_v3, 1 }
 0x129   : > { %v1698_v20 = vsel %vm1697_vm4, %v1696_v43, %v1695_v59  ;;  %v1705_v46 = vsel %vm1685_vm0, %v1704_v52, %v1703_v17  ;;  %v1716_v0 = vrot.slane %v4270_v61, 7  ;;  %v1718_v1 = vrot.slane %v4273_v4, 6 }
 0x12a   : > { %v1701_v2 = vsel %vm1700_vm5, %v1699_v56, %v1698_v20  ;;  %v1707_v6 = vsel %vm1688_vm1, %v1706_v51, %v1705_v46  ;;  %v1720_v62 = vrot.slane %v4276_v35, 5  ;;  %v1722_v37 = vrot.slane %v4279_v13, 4 }
 0x12b   : > { %v1748_v44 = vadd.f32 %v1701_v2, %v1645_v53  ;;  %v1709_v30 = vsel %vm1691_vm2, %v1708_v63, %v1707_v6  ;;  %v1717_v3 = vsel %vm1682_vm15, %v1716_v0, %v4267_v60  ;;  %v1724_v28 = vrot.slane %v4282_v26, 3 }
 0x12c   : > { %v1711_v61 = vsel %vm1694_vm3, %v1710_v47, %v1709_v30  ;;  %v1719_v4 = vsel %vm1685_vm0, %v1718_v1, %v1717_v3  ;;  %v1726_v42 = vrot.slane %v4285_v48, 2  ;;  %v1728_v8 = vrot.slane %v4288_v57, 1  ;;  %v1647_v57 = vld [vmem:[#allocation2 + $0x10] sm:$0xff] }
 0x12d   : > { %1753 = vst.msk [vmem:[#allocation2] sm:$0xff] %vm1752_vm6, %v1748_v44  ;;  %v1713_v35 = vsel %vm1697_vm4, %v1712_v19, %v1711_v61  ;;  %v1721_v13 = vsel %vm1688_vm1, %v1720_v62, %v1719_v4  ;;  %v1730_v11 = vrot.slane %v4294_v21, 7  ;;  %v1732_v60 = vrot.slane %v4297_v40, 6 }
 0x12e   : > { %v1715_v26 = vsel %vm1700_vm5, %v1714_v24, %v1713_v35  ;;  %v1723_v34 = vsel %vm1691_vm2, %v1722_v37, %v1721_v13  ;;  %v1734_v41 = vrot.slane %v4300_v50, 5  ;;  %v1736_v48 = vrot.slane %v4303_v45, 4 }
 0x12f   : > { %v1749_v18 = vadd.f32 %v1715_v26, %v1646_v39  ;;  %v1725_v54 = vsel %vm1694_vm3, %v1724_v28, %v1723_v34  ;;  %v1731_v27 = vsel %vm1682_vm15, %v1730_v11, %v4291_v9  ;;  %v1738_v55 = vrot.slane %v4306_v22, 3  ;;  %v1648_v9 = vld [vmem:[#allocation2 + $0x18] sm:$0xff] }
 0x130   : > { %v1727_v21 = vsel %vm1697_vm4, %v1726_v42, %v1725_v54  ;;  %v1733_v40 = vsel %vm1685_vm0, %v1732_v60, %v1731_v27  ;;  %v1740_v33 = vrot.slane %v4309_v38, 2  ;;  %v1742_v25 = vrot.slane %v4312_v5, 1 }
 0x131   : > { %1754 = vst.msk [vmem:[#allocation2 + $0x8] sm:$0xff] %vm1752_vm6, %v1749_v18  ;;  %v1729_v50 = vsel %vm1700_vm5, %v1728_v8, %v1727_v21  ;;  %v1735_v45 = vsel %vm1688_vm1, %v1734_v41, %v1733_v40 }
 0x132   : > { %v1750_v31 = vadd.f32 %v1729_v50, %v1647_v57  ;;  %v1737_v15 = vsel %vm1691_vm2, %v1736_v48, %v1735_v45 }
 0x133   : > { %v1739_v22 = vsel %vm1694_vm3, %v1738_v55, %v1737_v15 }
 0x134   : > { %1755 = vst.msk [vmem:[#allocation2 + $0x10] sm:$0xff] %vm1752_vm6, %v1750_v31  ;;  %v1741_v16 = vsel %vm1697_vm4, %v1740_v33, %v1739_v22 }
 0x135   : > { %v1743_v38 = vsel %vm1700_vm5, %v1742_v25, %v1741_v16 }
 0x136   : > { %v1751_v32 = vadd.f32 %v1743_v38, %v1648_v9 }
 0x138   : > { %1756 = vst.msk [vmem:[#allocation2 + $0x18] sm:$0xff] %vm1752_vm6, %v1751_v32 }
 0x139 PF: > { %p2159_p1 = scmp.ne.s32.totalorder %s2365_s29, 1 }
 0x13b   : > { %1760 = sbr.rel (%p2159_p1) target bundleno = 1035 (0x40b), region = 106 }
 0x140   : > { %v1761_v5 = vld [vmem:[#allocation2] sm:$0xff]  ;;  %vm1765_vm7 = vcmask 261120   ;;  %v1763_v12 = vld [vmem:[#allocation2 + $0x10] sm:$0xff]  ;;  %v1762_v14 = vld [vmem:[#allocation2 + $0x8] sm:$0xff] }
 0x141   : > { %v1766_v36 = vsel %vm1765_vm7, %v1761_v5, 0.0  ;;  %v1772_v58 = vsel %vm1765_vm7, %v1763_v12, 0.0  ;;  %v1764_v29 = vld [vmem:[#allocation2 + $0x18] sm:$0xff]  ;;  %v1769_v43 = vsel %vm1765_vm7, %v1762_v14, 0.0  ;;  %v1843_v44 = vld [vmem:[%s4537_s4 + $0x10] sm:$0xff]  ;;  %v1842_v30 = vld [vmem:[%s4537_s4 + $0x8] sm:$0xff] }
 0x142   : > { %1767 = vadd.xlane.f32.xlu0 %v1766_v36  ;;  %1773 = vadd.xlane.f32.xlu1 %v1772_v58  ;;  %v1775_v23 = vsel %vm1765_vm7, %v1764_v29, 0.0  ;;  %v1844_v37 = vld [vmem:[%s4537_s4 + $0x18] sm:$0xff]  ;;  %v1841_v3 = vld [vmem:[%s4537_s4] sm:$0xff]  ;;  %v1955_v32 = vld [vmem:[%s4539_s6 + $0x10] sm:$0xff] }
 0x143   : > { %2192 = vmatprep.subr.mxu0 %v1844_v37  ;;  %v2160_v48 = vld [vmem:[%s4535_s2] ss:$0 sm:$0xff]  ;;  %v1956_v38 = vld [vmem:[%s4539_s6 + $0x18] sm:$0xff] }
 0x144   : > { %2193 = vmatpush3.msra.mxu0 %v1844_v37  ;;  %v2161_v57 = vld [vmem:[%s4536_s3] ss:$0 sm:$0xff]  ;;  %2206 = vmatprep.subr.mxu1 %v1956_v38 }
 0x145   : > { %2194 = vmatprep.subr.mxu0 %v1843_v44  ;;  %2207 = vmatpush3.msra.mxu1 %v1956_v38 }
 0x146   : > { %1770 = vadd.xlane.f32.xlu0 %v1769_v43  ;;  %1776 = vadd.xlane.f32.xlu1 %v1775_v23 }
 0x147   : > { %2195 = vmatpush3.msra.mxu0 %v1843_v44  ;;  %2208 = vmatprep.subr.mxu1 %v1955_v32 }
 0x148   : > { %2196 = vmatprep.subr.mxu0 %v1842_v30  ;;  %2209 = vmatpush3.msra.mxu1 %v1955_v32 }
 0x149   : > { %2197 = vmatpush3.msra.mxu0 %v1842_v30 }
 0x14a   : > { %2198 = vmatprep.subr.mxu0 %v1841_v3 }
 0x14b   : > { %2199 = vmatpush3.msra.mxu0 %v1841_v3 }
 0x1cb   : > { %v1768_v56 = vpop.xlane.xlu0 %1767  ;;  %v1774_v7 = vpop.xlane.xlu1 %1773 }
 0x1cc   : > { %v1779_v10 = vmul.f32 0.03125, %v1768_v56  ;;  %v1781_v52 = vmul.f32 0.03125, %v1774_v7 }
 0x1ce   : > { %v1783_v49 = vsub.f32 %v1761_v5, %v1779_v10  ;;  %v1785_v51 = vsub.f32 %v1763_v12, %v1781_v52  ;;  %v1954_v5 = vld [vmem:[%s4539_s6 + $0x8] sm:$0xff]  ;;  %v1953_v12 = vld [vmem:[%s4539_s6] sm:$0xff] }
 0x1cf   : > { %v1771_v63 = vpop.xlane.xlu0 %1770  ;;  %v1777_v47 = vpop.xlane.xlu1 %1776  ;;  %2210 = vmatprep.subr.mxu1 %v1954_v5 }
 0x1d0   : > { %v1780_v53 = vmul.f32 0.03125, %v1771_v63  ;;  %v1782_v59 = vmul.f32 0.03125, %v1777_v47  ;;  %v1787_v17 = vmul.f32 %v1783_v49, %v1783_v49  ;;  %v1789_v19 = vmul.f32 %v1785_v51, %v1785_v51  ;;  %2211 = vmatpush3.msra.mxu1 %v1954_v5  ;;  %v2167_v47 = vld [vmem:[%s4540_s7] ss:$0 sm:$0xff] }
 0x1d1   : > { %2212 = vmatprep.subr.mxu1 %v1953_v12 }
 0x1d2   : > { %v1784_v24 = vsub.f32 %v1762_v14, %v1780_v53  ;;  %v1786_v20 = vsub.f32 %v1764_v29, %v1782_v59  ;;  %v1791_v46 = vsel %vm1765_vm7, %v1787_v17, 0.0  ;;  %v1797_v0 = vsel %vm1765_vm7, %v1789_v19, 0.0  ;;  %2213 = vmatpush3.msra.mxu1 %v1953_v12  ;;  %v2162_v14 = vld [vmem:[%s4538_s5] ss:$0 sm:$0xff] }
 0x1d3   : > { %1792 = vadd.xlane.f32.xlu0 %v1791_v46 }
 0x1d4   : > { %v1788_v1 = vmul.f32 %v1784_v24, %v1784_v24  ;;  %v1790_v2 = vmul.f32 %v1786_v20, %v1786_v20 }
 0x1d6   : > { %v1794_v6 = vsel %vm1765_vm7, %v1788_v1, 0.0  ;;  %v1800_v62 = vsel %vm1765_vm7, %v1790_v2, 0.0 }
 0x1d7   : > { %1798 = vadd.xlane.f32.xlu0 %v1797_v0  ;;  %1795 = vadd.xlane.f32.xlu1 %v1794_v6 }
 0x1db   : > { %1801 = vadd.xlane.f32.xlu1 %v1800_v62 }
 0x25c   : > { %v1793_v28 = vpop.xlane.xlu0 %1792 }
 0x25d   : > { %v1803_v39 = vmul.f32 0.03125, %v1793_v28 }
 0x25f   : > { %v1807_v61 = vadd.f32 1e-05, %v1803_v39 }
 0x260   : > { %v1796_v4 = vpop.xlane.xlu1 %1795  ;;  %v1799_v42 = vpop.xlane.xlu0 %1798 }
 0x261   : > { %2280 = vrsqrt.f32 %v1807_v61  ;;  %v1804_v8 = vmul.f32 0.03125, %v1796_v4  ;;  %v1805_v35 = vmul.f32 0.03125, %v1799_v42 }
 0x263   : > { %v1808_v13 = vadd.f32 1e-05, %v1804_v8  ;;  %v1809_v11 = vadd.f32 1e-05, %v1805_v35 }
 0x264   : > { %v1802_v60 = vpop.xlane.xlu1 %1801 }
 0x265   : > { %2282 = vrsqrt.f32 %v1808_v13  ;;  %v1806_v26 = vmul.f32 0.03125, %v1802_v60 }
 0x266   : > { %2284 = vrsqrt.f32 %v1809_v11 }
 0x267   : > { %v1810_v34 = vadd.f32 1e-05, %v1806_v26 }
 0x269   : > { %2286 = vrsqrt.f32 %v1810_v34 }
 0x26e   : > { %v2281_v41 = vpop.eup %2280 }
 0x26f   : > { %v1815_v18 = vmul.f32 %v2281_v41, %v1783_v49 }
 0x271   : > { %v1826_v54 = vmul.f32 %v2160_v48, %v1815_v18 }
 0x272   : > { %v2283_v27 = vpop.eup %2282 }
 0x273   : > { %v2285_v55 = vpop.eup %2284  ;;  %v1837_v21 = vadd.f32 %v2161_v57, %v1826_v54  ;;  %v1816_v40 = vmul.f32 %v2283_v27, %v1784_v24 }
 0x274   : > { %v1817_v33 = vmul.f32 %v2285_v55, %v1785_v51 }
 0x275   : > { %2200 = vmatprep.mubr.msk.f32.mxu0 %vm1765_vm7, %v1837_v21  ;;  %v1827_v50 = vmul.f32 %v2160_v48, %v1816_v40 }
 0x276   : > { %v2287_v45 = vpop.eup %2286  ;;  %v1828_v25 = vmul.f32 %v2160_v48, %v1817_v33 }
 0x277   : > { %v1838_v31 = vadd.f32 %v2161_v57, %v1827_v50  ;;  %v1818_v15 = vmul.f32 %v2287_v45, %v1786_v20 }
 0x278   : > { %v1839_v9 = vadd.f32 %v2161_v57, %v1828_v25 }
 0x279   : > { %2201 = vmatmul.mubr.msk.f32.vlgmr.msra.gmra.mxu0 %vm1765_vm7, %v1838_v31  ;;  %v1829_v22 = vmul.f32 %v2160_v48, %v1818_v15 }
 0x27a   : > { %2203 = vmatprep.mubr.msk.f32.mxu0 %vm1765_vm7, %v1839_v9 }
 0x27b   : > { %v1840_v16 = vadd.f32 %v2161_v57, %v1829_v22 }
 0x27d   : > { %2204 = vmatmul.mubr.msk.f32.gmra.mxu0 %vm1765_vm7, %v1840_v16 }
 0x339   : > { %v2202_v36 = vpop.f32.mrf.mxu0 }
 0x33a   : > { %v1936_v58 = vadd.f32 %v2202_v36, %v2162_v14 }
 0x33b   : > { %v1930_v29 = vpop.f32.mrf.mxu0 }
 0x33c   : > { %v1931_v43 = vadd.f32 %v2162_v14, %v1930_v29  ;;  %v1950_v7 = vmax.f32 %v1936_v58, 0.0 }
 0x33d   : > { %v2205_v23 = vpop.f32.mrf.mxu0 }
 0x33e   : > { %v1949_v56 = vmax.f32 %v1931_v43, 0.0  ;;  %v1946_v10 = vadd.f32 %v2205_v23, %v2162_v14 }
 0x33f   : > { %v1940_v52 = vpop.f32.mrf.mxu0 }
 0x340   : > { %v1941_v49 = vadd.f32 %v2162_v14, %v1940_v52  ;;  %2214 = vmatprep.mubr.msk.f32.mxu1 %vm1765_vm7, %v1949_v56  ;;  %v1952_v63 = vmax.f32 %v1946_v10, 0.0 }
 0x341   : > { %2215 = vmatmul.mubr.msk.f32.vlgmr.msra.gmra.mxu1 %vm1765_vm7, %v1950_v7 }
 0x342   : > { %v1951_v51 = vmax.f32 %v1941_v49, 0.0 }
 0x344   : > { %2217 = vmatprep.mubr.msk.f32.mxu1 %vm1765_vm7, %v1951_v51 }
 0x345   : > { %2218 = vmatmul.mubr.msk.f32.gmra.mxu1 %vm1765_vm7, %v1952_v63 }
 0x401   : > { %v2216_v53 = vpop.f32.mrf.mxu1 }
 0x402   : > { %v2048_v59 = vadd.f32 %v2216_v53, %v2167_v47 }
 0x403   : > { %v2042_v17 = vpop.f32.mrf.mxu1 }
 0x404   : > { %2062 = vst.msk [vmem:[#allocation7 + $0x8] sm:$0xff] %vm1765_vm7, %v2048_v59  ;;  %v2043_v19 = vadd.f32 %v2167_v47, %v2042_v17 }
 0x405   : > { %v2219_v24 = vpop.f32.mrf.mxu1 }
 0x406   : > { %2061 = vst.msk [vmem:[#allocation7] sm:$0xff] %vm1765_vm7, %v2043_v19  ;;  %v2058_v20 = vadd.f32 %v2219_v24, %v2167_v47 }
 0x407   : > { %v2052_v46 = vpop.f32.mrf.mxu1 }
 0x408   : > { %2064 = vst.msk [vmem:[#allocation7 + $0x18] sm:$0xff] %vm1765_vm7, %v2058_v20  ;;  %v2053_v0 = vadd.f32 %v2167_v47, %v2052_v46 }
 0x40a   : > { %2063 = vst.msk [vmem:[#allocation7 + $0x10] sm:$0xff] %vm1765_vm7, %v2053_v0 }
 0x40b PF: > { %p4503_p2 = scmp.eq.s32.totalorder %s2147_s10, 1  ;;  %s2376_s14 = smov [#allocation7]  }
 0x40c   : > { %s2074_s13 = sshll.u32 %s2376_s14, 4  ;;  %s2075_s13 = int_to_ptr.vmem [resolvable:$true] %s2074_s13 }
 0x40d   : > { %s2303_s18 = scalar_lea.vmem %s2075_s13, 512  ;;  %p2310_p3 = scmp.lt.s32.totalorder %s2075_s13, %s2075_s13 }
 0x40e   : > { %p2304_p4 = scmp.ne.s32.totalorder %s2075_s13, %s2303_s18  ;;  %p2311_p7 = scmp.lt.s32.totalorder %s2303_s18, %s2303_s18 }
 0x410   : > { %p2305_p5 = pnand %p2304_p4, %p4503_p2  ;;  %p2312_p8 = por %p2311_p7, %p2310_p3 }
 0x412   : > { %p2306_p6 = pneg %p2305_p5 }
 0x414   : > { %p2313_p9 = pnand %p2312_p8, %p2306_p6 }
 0x416   : > { %2316 = shalt.err (!%p2313_p9)
}
 0x417   : > { %s2377_s19 = smov 128   ;;  %s2378_s10 = smov 8  }
 0x418   : > { %2225 = dma.vmem_to_hbm [thread:$0]  (%p4503_p2), %s2075_s13, 512, %s4541_s8, [#allocation4], %s2377_s19, %s2377_s19, %s2378_s10  }
 0x419   : > { %2352 = dma.done.wait (%p4503_p2), [#allocation4], 512  }
 0x41a   : > { %2354 = vsyncadd (%p4503_p2), [#allocation4], 4294966784 }
 0x41b PF: > { %s20_s9 = sadd.s32 1, %s2373_s9   ;;  %s4741_s27 = smov %s2361_s28 }
 0x41c   : > { %p17_p10 = scmp.ge.s32.totalorder %s20_s9, 4   ;;  %s4742_s28 = smov %s2476_s17 }
 0x41d   : > { %s4743_s29 = smov %s2369_s30  ;;  %s4744_s30 = smov %s4746_s11 }
 0x41e   :  { %19 = sbr.rel (!%p17_p10) target bundleno = 4 (0x4), region = 140 }
 0x423   :  { %2090 = vsyncpa [#allocation4], 1 }
 0x424   :  { %2092 = vsyncpa [#allocation4 + $0x1], 1 }
 0x425   :  { %2093 = vsyncpa [#allocation5], 1 }
 0x426   :  { %2095 = vsyncpa [#allocation5 + $0x1], 1 }

// kernel: tpu_custom_call.1
= control target key start
LH: loop header
LB: loop body
LE: loop exit
PB: predicated region body
PF: predicated region fallthrough
CT: control target
= control target key end

     0   :  { %13 = vsyncpa [#allocation5], 0  ;;  %s4533_s0 = inlined_call_operand.vmem [shape: f32[16], index: 0, kind: input, shape index: {}]   ;;  %s4534_s1 = inlined_call_operand.vmem [shape: f32[32,13,32], index: 1, kind: input, shape index: {}]   ;;  %s4535_s2 = inlined_call_operand.vmem [shape: f32[1,32], index: 2, kind: input, shape index: {}]   ;;  %s4536_s3 = inlined_call_operand.vmem [shape: f32[1,32], index: 3, kind: input, shape index: {}]   ;;  %s4537_s4 = inlined_call_operand.vmem [shape: f32[32,32], index: 4, kind: input, shape index: {}]   ;;  %s4538_s5 = inlined_call_operand.vmem [shape: f32[1,32], index: 5, kind: input, shape index: {}]   ;;  %s4539_s6 = inlined_call_operand.vmem [shape: f32[32,32], index: 6, kind: input, shape index: {}]   ;;  %s4540_s7 = inlined_call_operand.vmem [shape: f32[1,32], index: 7, kind: input, shape index: {}]   ;;  %s4541_s8 = inlined_call_operand.hbm [shape: f32[32,32], index: 8, kind: output, shape index: {}]  }
   0x1   :  { %14 = vsyncpa [#allocation4], 0  ;;  %s2424_s27 = smov 0   ;;  %s2426_s28 = smov 0  }
   0x2   :  { %s2428_s29 = smov 0   ;;  %s2430_s30 = smov 0  }
   0x3   :  { %s2432_s9 = smov 0  }
   0x4 LB: > { %s2147_s10 = sadd.s32 4294967295, %s2373_s9   ;;  %s29_s11 = sadd.s32 1, %s2369_s30  ;;  %s2373_s9 = sphi %s2432_s9, %s20_s9   ;;  %s2369_s30 = sphi %s2430_s30, %s4744_s30   ;;  %s2365_s29 = sphi %s2428_s29, %s4743_s29   ;;  %s2361_s28 = sphi %s2426_s28, %s4742_s28   ;;  %s2357_s27 = sphi %s2424_s27, %s4741_s27  }
   0x5   : > { %p30_p0 = scmp.ge.s32.totalorder %s29_s11, 2  ;;  %s62_s12 = sadd.s32 1, %s2361_s28 }
   0x6   : > { %p69_p1 = scmp.ne.s32.totalorder %s2361_s28, %s2357_s27  ;;  %p70_p2 = scmp.eq.s32.totalorder %s2373_s9, 0 }
   0x7   : > { %s4746_s11 = smov (%p30_p0, %s29_s11), 0  ;;  %p2148_p4 = scmp.ge.s32.totalorder %s2373_s9, 1 }
   0x8   : > { %p2457_p3 = por %p70_p2, %p69_p1  ;;  %s58_s14 = ssub.s32 %s2369_s30, %s4746_s11 }
   0x9   : > { %p238_p5 = scmp.lt.s32.totalorder %s2373_s9, 3  ;;  %p60_p6 = scmp.eq.s32.totalorder %s58_s14, 0 }
   0xa   : > { %p2471_p8 = scmp.eq.s32.totalorder %s2147_s10, 0  ;;  %s251_s20 = sshll.u32 %s4533_s0, 4  ;;  %s252_s20 = int_to_ptr.vmem [resolvable:$true] %s251_s20 }
   0xb   : > { %p2465_p7 = pnand %p2148_p4, %p238_p5  ;;  %s2288_s21 = scalar_lea.vmem %s252_s20, 16 }
   0xc   : > { %s2476_s17 = scalar_select %p60_p6, %s2361_s28, %s62_s12  }
   0xd   : > { %p2228_p9 = pneg %p2465_p7  ;;  %p2289_p11 = scmp.ne.s32.totalorder %s252_s20, %s2288_s21 }
   0xe   : > { %p2296_p1 = scmp.lt.s32.totalorder %s252_s20, %s252_s20  ;;  %p2297_p2 = scmp.lt.s32.totalorder %s2288_s21, %s2288_s21 }
   0xf   : > { %p2229_p10 = pnand %p2471_p8, %p2228_p9 }
  0x10   : > { %p2298_p4 = por %p2297_p2, %p2296_p1 }
  0x11   : > { %p2290_p12 = pneg %p2229_p10 }
  0x13   : > { %p2291_p13 = pnand %p2290_p12, %p2289_p11 }
  0x15   : > { %p2292_p0 = pneg %p2291_p13 }
  0x17   : > { %p2299_p5 = pnand %p2298_p4, %p2292_p0 }
  0x19   : > { %2302 = shalt.err (!%p2299_p5)
}
  0x1a   : > { %s2375_s22 = smov [#allocation3]   ;;  %p2150_p6 = scmp.ge.s32.totalorder %s2373_s9, 2 }
  0x1b   : > { %2231 = dma.vmem_to_smem (!%p2229_p10), %s252_s20, 16, %s2375_s22, [#allocation5]  }
  0x1c   : > { %276 = sbr.rel (%p2150_p6) target bundleno = 53 (0x35), region = 44 }
  0x21   : > { %279 = sbr.rel (!%p2457_p3) target bundleno = 53 (0x35), region = 48  ;;  %s281_s23 = sand.u32 (%p2457_p3), 1, %s2361_s28  }
  0x22   : > { %s2152_s24 = sshll.u32 (%p2457_p3), %s2369_s30, 3  ;;  %s2151_s25 = sshll.u32 (%p2457_p3), %s281_s23, 8 }
  0x23   : > { %s2493_s14 = scalar_lea.vmem (%p2457_p3), %s4534_s1, %s2152_s24  ;;  %s2498_s13 = scalar_lea.vmem (%p2457_p3), [#allocation6], %s2151_s25 }
  0x24   : > { %v379_v0 = vld [vmem:[%s2493_s14] sm:$0xff] (%p2457_p3)  ;;  %v381_v1 = vld [vmem:[%s2493_s14 + $0x10] sm:$0xff] (%p2457_p3) }
  0x25   : > { %v383_v2 = vld [vmem:[%s2493_s14 + $0x20] sm:$0xff] (%p2457_p3)  ;;  %380 = vst [vmem:[%s2498_s13] sm:$0xff] (%p2457_p3), %v379_v0  ;;  %382 = vst [vmem:[%s2498_s13 + $0x8] sm:$0xff] (%p2457_p3), %v381_v1  ;;  %v385_v3 = vld [vmem:[%s2493_s14 + $0x30] sm:$0xff] (%p2457_p3) }
  0x26   : > { %384 = vst [vmem:[%s2498_s13 + $0x10] sm:$0xff] %v383_v2  ;;  %v387_v4 = vld [vmem:[%s2493_s14 + $0x40] sm:$0xff]  ;;  %v389_v5 = vld [vmem:[%s2493_s14 + $0x50] sm:$0xff]  ;;  %386 = vst [vmem:[%s2498_s13 + $0x18] sm:$0xff] %v385_v3 }
  0x27   : > { %388 = vst [vmem:[%s2498_s13 + $0x20] sm:$0xff] %v387_v4  ;;  %390 = vst [vmem:[%s2498_s13 + $0x28] sm:$0xff] %v389_v5  ;;  %v391_v6 = vld [vmem:[%s2493_s14 + $0x60] sm:$0xff]  ;;  %v393_v7 = vld [vmem:[%s2493_s14 + $0x70] sm:$0xff] }
  0x28   : > { %v395_v8 = vld [vmem:[%s2493_s14 + $0x80] sm:$0xff]  ;;  %392 = vst [vmem:[%s2498_s13 + $0x30] sm:$0xff] %v391_v6  ;;  %394 = vst [vmem:[%s2498_s13 + $0x38] sm:$0xff] %v393_v7  ;;  %v397_v9 = vld [vmem:[%s2493_s14 + $0x90] sm:$0xff] }
  0x29   : > { %396 = vst [vmem:[%s2498_s13 + $0x40] sm:$0xff] %v395_v8  ;;  %v399_v10 = vld [vmem:[%s2493_s14 + $0xa0] sm:$0xff]  ;;  %v401_v11 = vld [vmem:[%s2493_s14 + $0xb0] sm:$0xff]  ;;  %398 = vst [vmem:[%s2498_s13 + $0x48] sm:$0xff] %v397_v9 }
  0x2a   : > { %400 = vst [vmem:[%s2498_s13 + $0x50] sm:$0xff] %v399_v10  ;;  %402 = vst [vmem:[%s2498_s13 + $0x58] sm:$0xff] %v401_v11  ;;  %v403_v12 = vld [vmem:[%s2493_s14 + $0xc0] sm:$0xff]  ;;  %v405_v13 = vld [vmem:[%s2493_s14 + $0xd0] sm:$0xff] }
  0x2b   : > { %v407_v14 = vld [vmem:[%s2493_s14 + $0xe0] sm:$0xff]  ;;  %404 = vst [vmem:[%s2498_s13 + $0x60] sm:$0xff] %v403_v12  ;;  %406 = vst [vmem:[%s2498_s13 + $0x68] sm:$0xff] %v405_v13  ;;  %v409_v15 = vld [vmem:[%s2493_s14 + $0xf0] sm:$0xff] }
  0x2c   : > { %408 = vst [vmem:[%s2498_s13 + $0x70] sm:$0xff] %v407_v14  ;;  %v411_v16 = vld [vmem:[%s2493_s14 + $0x100] sm:$0xff]  ;;  %v413_v17 = vld [vmem:[%s2493_s14 + $0x110] sm:$0xff]  ;;  %410 = vst [vmem:[%s2498_s13 + $0x78] sm:$0xff] %v409_v15 }
  0x2d   : > { %412 = vst [vmem:[%s2498_s13 + $0x80] sm:$0xff] %v411_v16  ;;  %414 = vst [vmem:[%s2498_s13 + $0x88] sm:$0xff] %v413_v17  ;;  %v415_v18 = vld [vmem:[%s2493_s14 + $0x120] sm:$0xff]  ;;  %v417_v19 = vld [vmem:[%s2493_s14 + $0x130] sm:$0xff] }
  0x2e   : > { %v419_v20 = vld [vmem:[%s2493_s14 + $0x140] sm:$0xff]  ;;  %416 = vst [vmem:[%s2498_s13 + $0x90] sm:$0xff] %v415_v18  ;;  %418 = vst [vmem:[%s2498_s13 + $0x98] sm:$0xff] %v417_v19  ;;  %v421_v21 = vld [vmem:[%s2493_s14 + $0x150] sm:$0xff] }
  0x2f   : > { %420 = vst [vmem:[%s2498_s13 + $0xa0] sm:$0xff] %v419_v20  ;;  %v423_v22 = vld [vmem:[%s2493_s14 + $0x160] sm:$0xff]  ;;  %v425_v23 = vld [vmem:[%s2493_s14 + $0x170] sm:$0xff]  ;;  %422 = vst [vmem:[%s2498_s13 + $0xa8] sm:$0xff] %v421_v21 }
  0x30   : > { %424 = vst [vmem:[%s2498_s13 + $0xb0] sm:$0xff] %v423_v22  ;;  %426 = vst [vmem:[%s2498_s13 + $0xb8] sm:$0xff] %v425_v23  ;;  %v427_v24 = vld [vmem:[%s2493_s14 + $0x180] sm:$0xff]  ;;  %v429_v25 = vld [vmem:[%s2493_s14 + $0x190] sm:$0xff] }
  0x31   : > { %v431_v26 = vld [vmem:[%s2493_s14 + $0x1a0] sm:$0xff]  ;;  %428 = vst [vmem:[%s2498_s13 + $0xc0] sm:$0xff] %v427_v24  ;;  %430 = vst [vmem:[%s2498_s13 + $0xc8] sm:$0xff] %v429_v25  ;;  %v433_v27 = vld [vmem:[%s2493_s14 + $0x1b0] sm:$0xff] }
  0x32   : > { %432 = vst [vmem:[%s2498_s13 + $0xd0] sm:$0xff] %v431_v26  ;;  %v435_v28 = vld [vmem:[%s2493_s14 + $0x1c0] sm:$0xff]  ;;  %v437_v29 = vld [vmem:[%s2493_s14 + $0x1d0] sm:$0xff]  ;;  %434 = vst [vmem:[%s2498_s13 + $0xd8] sm:$0xff] %v433_v27 }
  0x33   : > { %436 = vst [vmem:[%s2498_s13 + $0xe0] sm:$0xff] %v435_v28  ;;  %438 = vst [vmem:[%s2498_s13 + $0xe8] sm:$0xff] %v437_v29  ;;  %v439_v30 = vld [vmem:[%s2493_s14 + $0x1e0] sm:$0xff]  ;;  %v441_v31 = vld [vmem:[%s2493_s14 + $0x1f0] sm:$0xff] }
  0x34   : > { %440 = vst [vmem:[%s2498_s13 + $0xf0] sm:$0xff] %v439_v30  ;;  %442 = vst [vmem:[%s2498_s13 + $0xf8] sm:$0xff] %v441_v31 }
  0x35 PF: > { %451 = sbr.rel (%p2465_p7) target bundleno = 1051 (0x41b), region = 86 }
  0x3a   : > { %2348 = dma.done.wait (%p2471_p8), [#allocation5], 16  }
  0x3b   : > { %2350 = vsyncadd (%p2471_p8), [#allocation5], 4294967280  ;;  %s458_s18 = sand.u32 1, %s2357_s27  }
  0x3c   : > { %s2155_s19 = sshll.u32 %s458_s18, 8 }
  0x3d   : > { %s2568_s20 = scalar_lea.vmem [#allocation6], %s2155_s19 }
  0x3e   : > { %464 = sfence }
  0x3f   : > { %s2571_s15 = sshll.u32 %s2365_s29, 3  ;;  %v491_v32 = vld [vmem:[%s2568_s20] sm:$0x1]  ;;  %v492_v33 = vld [vmem:[%s2568_s20 + $0x8] sm:$0x1]  ;;  %p2157_p13 = scmp.ne.s32.totalorder %s2365_s29, 0 }
  0x40   : > { %s490_s27 = sld [smem:[#allocation3 + %s2571_s15]]  ;;  %v493_v34 = vld [vmem:[%s2568_s20 + $0x10] sm:$0x1]  ;;  %v494_v35 = vld [vmem:[%s2568_s20 + $0x18] sm:$0x1]  ;;  %s588_s16 = sadd.s32 1, %s2571_s15 }
  0x41   : > { %v495_v36 = vld [vmem:[%s2568_s20 + $0x20] sm:$0x1]  ;;  %v496_v37 = vld [vmem:[%s2568_s20 + $0x28] sm:$0x1]  ;;  %v497_v38 = vld [vmem:[%s2568_s20 + $0x30] sm:$0x1] }
  0x42   : > { %v498_v39 = vld [vmem:[%s2568_s20 + $0x38] sm:$0x1]  ;;  %v499_v40 = vld [vmem:[%s2568_s20 + $0x40] sm:$0x1]  ;;  %v500_v42 = vld [vmem:[%s2568_s20 + $0x48] sm:$0x1] }
  0x43   : > { %v501_v43 = vld [vmem:[%s2568_s20 + $0x50] sm:$0x1]  ;;  %v502_v44 = vld [vmem:[%s2568_s20 + $0x58] sm:$0x1]  ;;  %v503_v45 = vld [vmem:[%s2568_s20 + $0x60] sm:$0x1] }
  0x44   : > { %v504_v46 = vld [vmem:[%s2568_s20 + $0x68] sm:$0x1]  ;;  %v505_v47 = vld [vmem:[%s2568_s20 + $0x70] sm:$0x1]  ;;  %v506_v48 = vld [vmem:[%s2568_s20 + $0x78] sm:$0x1] }
  0x45   : > { %v507_v49 = vld [vmem:[%s2568_s20 + $0x80] sm:$0x1]  ;;  %s2596_s21 = sld [smem:[#allocation3 + %s588_s16]]  ;;  %v508_v50 = vld [vmem:[%s2568_s20 + $0x88] sm:$0x1]  ;;  %p2654_p3 = scmp.lt.s32.totalorder %s588_s16, 13 }
  0x46   : > { %v2584_v41 = vstv %s490_s27  ;;  %v509_v51 = vld [vmem:[%s2568_s20 + $0x90] sm:$0x1]  ;;  %v510_v52 = vld [vmem:[%s2568_s20 + $0x98] sm:$0x1]  ;;  %v511_v53 = vld [vmem:[%s2568_s20 + $0xa0] sm:$0x1] }
  0x47   : > { %v2603_v54 = vmul.f32 %v2584_v41, %v491_v32  ;;  %v512_v55 = vld [vmem:[%s2568_s20 + $0xa8] sm:$0x1]  ;;  %v513_v56 = vld [vmem:[%s2568_s20 + $0xb0] sm:$0x1]  ;;  %v514_v57 = vld [vmem:[%s2568_s20 + $0xb8] sm:$0x1]  ;;  %v2609_v58 = vmul.f32 %v2584_v41, %v492_v33  ;;  %v2612_v59 = vmul.f32 %v2584_v41, %v493_v34  ;;  %v2615_v60 = vmul.f32 %v2584_v41, %v494_v35 }
  0x48   : > { %v2618_v61 = vmul.f32 %v2584_v41, %v495_v36  ;;  %v515_v62 = vld [vmem:[%s2568_s20 + $0xc0] sm:$0x1]  ;;  %v516_v63 = vld [vmem:[%s2568_s20 + $0xc8] sm:$0x1]  ;;  %v517_v0 = vld [vmem:[%s2568_s20 + $0xd0] sm:$0x1]  ;;  %v2625_v2 = vmul.f32 %v2584_v41, %v496_v37  ;;  %v2628_v3 = vmul.f32 %v2584_v41, %v497_v38  ;;  %v2631_v4 = vmul.f32 %v2584_v41, %v498_v39 }
  0x49   : > { %v518_v1 = vld [vmem:[%s2568_s20 + $0xd8] sm:$0x1]  ;;  %v2634_v5 = vmul.f32 %v2584_v41, %v499_v40  ;;  %v519_v6 = vld [vmem:[%s2568_s20 + $0xe0] sm:$0x1]  ;;  %v520_v7 = vld [vmem:[%s2568_s20 + $0xe8] sm:$0x1]  ;;  %v2641_v10 = vmul.f32 %v2584_v41, %v500_v42  ;;  %v2644_v11 = vmul.f32 %v2584_v41, %v501_v43  ;;  %v2647_v12 = vmul.f32 %v2584_v41, %v502_v44 }
  0x4a   : > { %v521_v8 = vld [vmem:[%s2568_s20 + $0xf0] sm:$0x1]  ;;  %v522_v9 = vld [vmem:[%s2568_s20 + $0xf8] sm:$0x1]  ;;  %v2650_v13 = vmul.f32 %v2584_v41, %v503_v45  ;;  %v2659_v14 = vmul.f32 %v2584_v41, %v504_v46  ;;  %v2662_v15 = vmul.f32 %v2584_v41, %v505_v47  ;;  %v2665_v16 = vmul.f32 %v2584_v41, %v506_v48  ;;  %v590_v18 = vld [vmem:[%s2568_s20 + $0x1] sm:$0x1] }
  0x4b   : > { %v2668_v17 = vmul.f32 %v2584_v41, %v507_v49  ;;  %v591_v19 = vld [vmem:[%s2568_s20 + $0x9] sm:$0x1]  ;;  %v592_v20 = vld [vmem:[%s2568_s20 + $0x11] sm:$0x1]  ;;  %v593_v21 = vld [vmem:[%s2568_s20 + $0x19] sm:$0x1]  ;;  %v2675_v22 = vmul.f32 %v2584_v41, %v508_v50  ;;  %v2678_v23 = vmul.f32 %v2584_v41, %v509_v51  ;;  %v2681_v24 = vmul.f32 %v2584_v41, %v510_v52 }
  0x4c   : > { %v2684_v25 = vmul.f32 %v2584_v41, %v511_v53  ;;  %v594_v26 = vld [vmem:[%s2568_s20 + $0x21] sm:$0x1]  ;;  %v595_v27 = vld [vmem:[%s2568_s20 + $0x29] sm:$0x1]  ;;  %v596_v28 = vld [vmem:[%s2568_s20 + $0x31] sm:$0x1]  ;;  %v2690_v29 = vmul.f32 %v2584_v41, %v512_v55  ;;  %v2693_v30 = vmul.f32 %v2584_v41, %v513_v56  ;;  %v2696_v31 = vmul.f32 %v2584_v41, %v514_v57 }
  0x4d   : > { %v597_v32 = vld [vmem:[%s2568_s20 + $0x39] sm:$0x1]  ;;  %v598_v33 = vld [vmem:[%s2568_s20 + $0x41] sm:$0x1]  ;;  %v599_v34 = vld [vmem:[%s2568_s20 + $0x49] sm:$0x1]  ;;  %v2702_v35 = vstv %s2596_s21  ;;  %v2705_v36 = vmul.f32 %v2584_v41, %v515_v62  ;;  %v2708_v37 = vmul.f32 %v2584_v41, %v516_v63  ;;  %v2711_v38 = vmul.f32 %v2584_v41, %v517_v0 }
  0x4e   : > { %4546 = vst [vmem:[#allocation10_spill] sm:$0xff] %v2684_v25  ;;  %4547 = vst [vmem:[#allocation11_spill] sm:$0xff] %v2690_v29  ;;  %v2714_v39 = vmul.f32 %v2584_v41, %v518_v1  ;;  %v600_v40 = vld [vmem:[%s2568_s20 + $0x51] sm:$0x1]  ;;  %v601_v42 = vld [vmem:[%s2568_s20 + $0x59] sm:$0x1]  ;;  %v2720_v44 = vmul.f32 %v2584_v41, %v519_v6  ;;  %v2723_v45 = vmul.f32 %v2584_v41, %v520_v7 }
  0x4f   : > { %4548 = vst [vmem:[#allocation12_spill] sm:$0xff] %v2693_v30  ;;  %4549 = vst [vmem:[#allocation13_spill] sm:$0xff] %v2696_v31  ;;  %v602_v43 = vld [vmem:[%s2568_s20 + $0x61] sm:$0x1]  ;;  %v2726_v46 = vmul.f32 %v2584_v41, %v521_v8  ;;  %v2729_v47 = vmul.f32 %v2584_v41, %v522_v9  ;;  %v603_v48 = vld [vmem:[%s2568_s20 + $0x69] sm:$0x1]  ;;  %v623_v55 = vmul.f32 %v2702_v35, %v590_v18 }
  0x50   : > { %4550 = vst [vmem:[#allocation14_spill] sm:$0xff] %v2705_v36  ;;  %4551 = vst [vmem:[#allocation15_spill] sm:$0xff] %v2708_v37  ;;  %v604_v49 = vld [vmem:[%s2568_s20 + $0x71] sm:$0x1]  ;;  %v605_v50 = vld [vmem:[%s2568_s20 + $0x79] sm:$0x1]  ;;  %v624_v56 = vmul.f32 %v2702_v35, %v591_v19  ;;  %v625_v57 = vmul.f32 %v2702_v35, %v592_v20  ;;  %v626_v41 = vmul.f32 %v2702_v35, %v593_v21 }
  0x51   : > { %4552 = vst [vmem:[#allocation16_spill] sm:$0xff] %v2711_v38  ;;  %4553 = vst [vmem:[#allocation17_spill] sm:$0xff] %v2714_v39  ;;  %v606_v51 = vld [vmem:[%s2568_s20 + $0x81] sm:$0x1]  ;;  %v607_v52 = vld [vmem:[%s2568_s20 + $0x89] sm:$0x1]  ;;  %v627_v0 = vmul.f32 %v2702_v35, %v594_v26  ;;  %v628_v1 = vmul.f32 %v2702_v35, %v595_v27  ;;  %v629_v6 = vmul.f32 %v2702_v35, %v596_v28 }
  0x52   : > { %4554 = vst [vmem:[#allocation18_spill] sm:$0xff] %v2720_v44  ;;  %4555 = vst [vmem:[#allocation19_spill] sm:$0xff] %v2723_v45  ;;  %v608_v53 = vld [vmem:[%s2568_s20 + $0x91] sm:$0x1]  ;;  %v609_v62 = vld [vmem:[%s2568_s20 + $0x99] sm:$0x1]  ;;  %v630_v7 = vmul.f32 %v2702_v35, %v597_v32  ;;  %v631_v19 = vmul.f32 %v2702_v35, %v598_v33  ;;  %v632_v20 = vmul.f32 %v2702_v35, %v599_v34 }
  0x53   : > { %4556 = vst [vmem:[#allocation20_spill] sm:$0xff] %v2726_v46  ;;  %4557 = vst [vmem:[#allocation21_spill] sm:$0xff] %v2729_v47  ;;  %v610_v63 = vld [vmem:[%s2568_s20 + $0xa1] sm:$0x1]  ;;  %s656_s23 = scalar_select %p2654_p3, 1, 0  ;;  %v633_v21 = vmul.f32 %v2702_v35, %v600_v40  ;;  %v634_v26 = vmul.f32 %v2702_v35, %v601_v42  ;;  %v635_v47 = vmul.f32 %v2702_v35, %v602_v43 }
  0x54   : > { %v611_v8 = vld [vmem:[%s2568_s20 + $0xa9] sm:$0x1]  ;;  %v612_v9 = vld [vmem:[%s2568_s20 + $0xb1] sm:$0x1]  ;;  %v613_v18 = vld [vmem:[%s2568_s20 + $0xb9] sm:$0x1]  ;;  %v636_v46 = vmul.f32 %v2702_v35, %v603_v48  ;;  %v637_v45 = vmul.f32 %v2702_v35, %v604_v49  ;;  %v638_v44 = vmul.f32 %v2702_v35, %v605_v50  ;;  %v639_v40 = vmul.f32 %v2702_v35, %v606_v51 }
  0x55   : > { %v614_v27 = vld [vmem:[%s2568_s20 + $0xc1] sm:$0x1]  ;;  %v615_v28 = vld [vmem:[%s2568_s20 + $0xc9] sm:$0x1]  ;;  %v616_v32 = vld [vmem:[%s2568_s20 + $0xd1] sm:$0x1]  ;;  %v640_v38 = vmul.f32 %v2702_v35, %v607_v52  ;;  %v641_v42 = vmul.f32 %v2702_v35, %v608_v53  ;;  %v642_v37 = vmul.f32 %v2702_v35, %v609_v62  ;;  %v643_v43 = vmul.f32 %v2702_v35, %v610_v63 }
  0x56   : > { %v617_v33 = vld [vmem:[%s2568_s20 + $0xd9] sm:$0x1]  ;;  %v618_v39 = vld [vmem:[%s2568_s20 + $0xe1] sm:$0x1]  ;;  %v619_v34 = vld [vmem:[%s2568_s20 + $0xe9] sm:$0x1]  ;;  %v644_v48 = vmul.f32 %v2702_v35, %v611_v8  ;;  %v645_v49 = vmul.f32 %v2702_v35, %v612_v9  ;;  %v657_v50 = vstv %s656_s23  ;;  %v646_v30 = vmul.f32 %v2702_v35, %v613_v18 }
  0x57   : > { %v620_v36 = vld [vmem:[%s2568_s20 + $0xf1] sm:$0x1]  ;;  %v621_v31 = vld [vmem:[%s2568_s20 + $0xf9] sm:$0x1]  ;;  %v647_v29 = vmul.f32 %v2702_v35, %v614_v27  ;;  %v648_v51 = vmul.f32 %v2702_v35, %v615_v28  ;;  %vm658_vm0 = vcmp.eq.s32.totalorder %v657_v50, 1  ;;  %v649_v52 = vmul.f32 %v2702_v35, %v616_v32  ;;  %s723_s24 = sadd.s32 2, %s2571_s15 }
  0x58   : > { %v650_v53 = vmul.f32 %v2702_v35, %v617_v33  ;;  %v651_v62 = vmul.f32 %v2702_v35, %v618_v39  ;;  %v652_v63 = vmul.f32 %v2702_v35, %v619_v34  ;;  %v653_v8 = vmul.f32 %v2702_v35, %v620_v36  ;;  %s2815_s25 = sld [smem:[#allocation3 + %s723_s24]]  ;;  %p2825_p7 = scmp.lt.s32.totalorder %s723_s24, 13 }
  0x59   : > { %v654_v9 = vmul.f32 %v2702_v35, %v621_v31  ;;  %v659_v25 = vsel %vm658_vm0, %v623_v55, 0.0  ;;  %v660_v18 = vsel %vm658_vm0, %v624_v56, 0.0  ;;  %v661_v27 = vsel %vm658_vm0, %v625_v57, 0.0  ;;  %s858_s12 = sadd.s32 3, %s2571_s15  ;;  %s993_s27 = sadd.s32 4, %s2571_s15 }
  0x5a   : > { %v662_v28 = vsel %vm658_vm0, %v626_v41, 0.0  ;;  %v663_v32 = vsel %vm658_vm0, %v627_v0, 0.0  ;;  %v664_v33 = vsel %vm658_vm0, %v628_v1, 0.0  ;;  %v665_v39 = vsel %vm658_vm0, %v629_v6, 0.0  ;;  %s791_s14 = scalar_select %p2825_p7, 1, 0 }
  0x5b   : > { %v666_v34 = vsel %vm658_vm0, %v630_v7, 0.0  ;;  %v667_v36 = vsel %vm658_vm0, %v631_v19, 0.0  ;;  %v668_v31 = vsel %vm658_vm0, %v632_v20, 0.0  ;;  %v669_v35 = vsel %vm658_vm0, %v633_v21, 0.0  ;;  %s2930_s13 = sld [smem:[#allocation3 + %s858_s12]]  ;;  %p2956_p8 = scmp.lt.s32.totalorder %s858_s12, 13 }
  0x5c   : > { %v670_v55 = vsel %vm658_vm0, %v634_v26, 0.0  ;;  %v671_v56 = vsel %vm658_vm0, %v635_v47, 0.0  ;;  %v672_v57 = vsel %vm658_vm0, %v636_v46, 0.0  ;;  %v673_v41 = vsel %vm658_vm0, %v637_v45, 0.0  ;;  %s3165_s16 = sld [smem:[#allocation3 + %s993_s27]]  ;;  %p3167_p9 = scmp.lt.s32.totalorder %s993_s27, 13 }
  0x5d   : > { %v674_v0 = vsel %vm658_vm0, %v638_v44, 0.0  ;;  %v675_v1 = vsel %vm658_vm0, %v639_v40, 0.0  ;;  %v676_v6 = vsel %vm658_vm0, %v640_v38, 0.0  ;;  %v677_v7 = vsel %vm658_vm0, %v641_v42, 0.0  ;;  %s926_s19 = scalar_select %p2956_p8, 1, 0 }
  0x5e   : > { %v678_v19 = vsel %vm658_vm0, %v642_v37, 0.0  ;;  %v679_v20 = vsel %vm658_vm0, %v643_v43, 0.0  ;;  %v680_v21 = vsel %vm658_vm0, %v644_v48, 0.0  ;;  %v681_v47 = vsel %vm658_vm0, %v645_v49, 0.0  ;;  %s1061_s22 = scalar_select %p3167_p9, 1, 0 }
  0x5f   : > { %v682_v46 = vsel %vm658_vm0, %v646_v30, 0.0  ;;  %v683_v45 = vsel %vm658_vm0, %v647_v29, 0.0  ;;  %v684_v44 = vsel %vm658_vm0, %v648_v51, 0.0  ;;  %v685_v26 = vsel %vm658_vm0, %v649_v52, 0.0  ;;  %v726_v51 = vld [vmem:[%s2568_s20 + $0xa] sm:$0x1] }
  0x60   : > { %v686_v38 = vsel %vm658_vm0, %v650_v53, 0.0  ;;  %v687_v40 = vsel %vm658_vm0, %v651_v62, 0.0  ;;  %v688_v37 = vsel %vm658_vm0, %v652_v63, 0.0  ;;  %v689_v42 = vsel %vm658_vm0, %v653_v8, 0.0  ;;  %v728_v52 = vld [vmem:[%s2568_s20 + $0x1a] sm:$0x1] }
  0x61   : > { %v690_v43 = vsel %vm658_vm0, %v654_v9, 0.0  ;;  %v2820_v30 = vadd.f32 %v659_v25, %v2603_v54  ;;  %v2823_v29 = vadd.f32 %v660_v18, %v2609_v58  ;;  %v2830_v48 = vadd.f32 %v661_v27, %v2612_v59  ;;  %v729_v63 = vld [vmem:[%s2568_s20 + $0x22] sm:$0x1]  ;;  %v730_v8 = vld [vmem:[%s2568_s20 + $0x2a] sm:$0x1]  ;;  %v4568_v27 = vld [vmem:[#allocation12_spill] sm:$0xff] }
  0x62   : > { %v2833_v49 = vadd.f32 %v662_v28, %v2615_v60  ;;  %v2836_v50 = vadd.f32 %v663_v32, %v2618_v61  ;;  %v2839_v54 = vadd.f32 %v664_v33, %v2625_v2  ;;  %v2842_v58 = vadd.f32 %v665_v39, %v2628_v3  ;;  %v731_v9 = vld [vmem:[%s2568_s20 + $0x32] sm:$0x1]  ;;  %v732_v18 = vld [vmem:[%s2568_s20 + $0x3a] sm:$0x1]  ;;  %v4572_v32 = vld [vmem:[#allocation14_spill] sm:$0xff]  ;;  %s1128_s23 = sadd.s32 5, %s2571_s15 }
  0x63   : > { %v2845_v25 = vadd.f32 %v666_v34, %v2631_v4  ;;  %v2848_v59 = vadd.f32 %v667_v36, %v2634_v5  ;;  %v2851_v60 = vadd.f32 %v668_v31, %v2641_v10  ;;  %v2854_v61 = vadd.f32 %v669_v35, %v2644_v11  ;;  %v4570_v28 = vld [vmem:[#allocation13_spill] sm:$0xff]  ;;  %v4574_v39 = vld [vmem:[#allocation15_spill] sm:$0xff]  ;;  %v733_v36 = vld [vmem:[%s2568_s20 + $0x42] sm:$0x1]  ;;  %s1263_s24 = sadd.s32 6, %s2571_s15  ;;  %p3412_p10 = scmp.lt.s32.totalorder %s1128_s23, 13 }
  0x64   : > { %v2857_v2 = vadd.f32 %v670_v55, %v2647_v12  ;;  %v2860_v3 = vadd.f32 %v671_v56, %v2650_v13  ;;  %v2863_v4 = vadd.f32 %v672_v57, %v2659_v14  ;;  %v2867_v5 = vadd.f32 %v673_v41, %v2662_v15  ;;  %v725_v13 = vld [vmem:[%s2568_s20 + $0x2] sm:$0x1]  ;;  %v727_v14 = vld [vmem:[%s2568_s20 + $0x12] sm:$0x1]  ;;  %v734_v31 = vld [vmem:[%s2568_s20 + $0x4a] sm:$0x1] }
  0x65   : > { %v2870_v10 = vadd.f32 %v674_v0, %v2665_v16  ;;  %v2873_v11 = vadd.f32 %v675_v1, %v2668_v17  ;;  %v2876_v12 = vadd.f32 %v676_v6, %v2675_v22  ;;  %v2885_v15 = vadd.f32 %v677_v7, %v2678_v23  ;;  %v4564_v17 = vld [vmem:[#allocation10_spill] sm:$0xff]  ;;  %v4566_v22 = vld [vmem:[#allocation11_spill] sm:$0xff]  ;;  %v735_v35 = vld [vmem:[%s2568_s20 + $0x52] sm:$0x1]  ;;  %s3418_s12 = sld [smem:[#allocation3 + %s1263_s24]]  ;;  %p3878_p11 = scmp.lt.s32.totalorder %s1263_s24, 13 }
  0x66   : > { %v2888_v16 = vadd.f32 %v678_v19, %v2681_v24  ;;  %v2891_v53 = vadd.f32 %v679_v20, %v4564_v17  ;;  %v2894_v62 = vadd.f32 %v680_v21, %v4566_v22  ;;  %v2901_v23 = vadd.f32 %v681_v47, %v4568_v27  ;;  %v736_v55 = vld [vmem:[%s2568_s20 + $0x5a] sm:$0x1]  ;;  %v4576_v56 = vld [vmem:[#allocation16_spill] sm:$0xff]  ;;  %v4580_v1 = vld [vmem:[#allocation18_spill] sm:$0xff] }
  0x67   : > { %4559 = vst [vmem:[#allocation22_spill] sm:$0xff] %v2870_v10  ;;  %4560 = vst [vmem:[#allocation23_spill] sm:$0xff] %v2873_v11  ;;  %v2904_v24 = vadd.f32 %v682_v46, %v4570_v28  ;;  %v2907_v33 = vadd.f32 %v683_v45, %v4572_v32  ;;  %v2910_v34 = vadd.f32 %v684_v44, %v4574_v39  ;;  %v4578_v41 = vld [vmem:[#allocation17_spill] sm:$0xff]  ;;  %v737_v7 = vld [vmem:[%s2568_s20 + $0x62] sm:$0x1]  ;;  %v757_v20 = vstv %s2815_s25  ;;  %s3402_s25 = sld [smem:[#allocation3 + %s1128_s23]] }
  0x68   : > { %4561 = vst [vmem:[#allocation24_spill] sm:$0xff] %v2876_v12  ;;  %4562 = vst [vmem:[#allocation25_spill] sm:$0xff] %v2885_v15  ;;  %v2917_v57 = vadd.f32 %v685_v26, %v4576_v56  ;;  %v2920_v0 = vadd.f32 %v686_v38, %v4578_v41  ;;  %v2923_v6 = vadd.f32 %v687_v40, %v4580_v1  ;;  %v738_v19 = vld [vmem:[%s2568_s20 + $0x6a] sm:$0x1]  ;;  %v4584_v46 = vld [vmem:[#allocation20_spill] sm:$0xff]  ;;  %v2947_v22 = vstv %s791_s14 }
  0x69   : > { %4563 = vst [vmem:[#allocation26_spill] sm:$0xff] %v2888_v16  ;;  %4565 = vst [vmem:[#allocation10_spill] sm:$0xff] %v2891_v53  ;;  %v4582_v21 = vld [vmem:[#allocation19_spill] sm:$0xff]  ;;  %v2936_v45 = vadd.f32 %v689_v42, %v4584_v46  ;;  %v4586_v44 = vld [vmem:[#allocation21_spill] sm:$0xff]  ;;  %v758_v32 = vmul.f32 %v757_v20, %v725_v13  ;;  %v759_v42 = vmul.f32 %v757_v20, %v726_v51  ;;  %vm793_vm1 = vcmp.eq.s32.totalorder %v2947_v22, 1 }
  0x6a   : > { %4567 = vst [vmem:[#allocation11_spill] sm:$0xff] %v2894_v62  ;;  %4569 = vst [vmem:[#allocation12_spill] sm:$0xff] %v2901_v23  ;;  %v2933_v47 = vadd.f32 %v688_v37, %v4582_v21  ;;  %v2939_v26 = vadd.f32 %v690_v43, %v4586_v44  ;;  %v739_v38 = vld [vmem:[%s2568_s20 + $0x72] sm:$0x1]  ;;  %v740_v40 = vld [vmem:[%s2568_s20 + $0x7a] sm:$0x1]  ;;  %v760_v39 = vmul.f32 %v757_v20, %v727_v14 }
  0x6b   : > { %4571 = vst [vmem:[#allocation13_spill] sm:$0xff] %v2904_v24  ;;  %4573 = vst [vmem:[#allocation14_spill] sm:$0xff] %v2907_v33  ;;  %v741_v17 = vld [vmem:[%s2568_s20 + $0x82] sm:$0x1]  ;;  %v742_v27 = vld [vmem:[%s2568_s20 + $0x8a] sm:$0x1]  ;;  %v761_v43 = vmul.f32 %v757_v20, %v728_v52  ;;  %v762_v1 = vmul.f32 %v757_v20, %v729_v63  ;;  %v763_v21 = vmul.f32 %v757_v20, %v730_v8 }
  0x6c   : > { %4575 = vst [vmem:[#allocation15_spill] sm:$0xff] %v2910_v34  ;;  %4577 = vst [vmem:[#allocation16_spill] sm:$0xff] %v2917_v57  ;;  %v743_v37 = vld [vmem:[%s2568_s20 + $0x92] sm:$0x1]  ;;  %v744_v28 = vld [vmem:[%s2568_s20 + $0x9a] sm:$0x1]  ;;  %v764_v46 = vmul.f32 %v757_v20, %v731_v9  ;;  %v765_v44 = vmul.f32 %v757_v20, %v732_v18  ;;  %v766_v52 = vmul.f32 %v757_v20, %v733_v36 }
  0x6d   : > { %4579 = vst [vmem:[#allocation17_spill] sm:$0xff] %v2920_v0  ;;  %4581 = vst [vmem:[#allocation18_spill] sm:$0xff] %v2923_v6  ;;  %v745_v56 = vld [vmem:[%s2568_s20 + $0xa2] sm:$0x1]  ;;  %v746_v41 = vld [vmem:[%s2568_s20 + $0xaa] sm:$0x1]  ;;  %v770_v18 = vmul.f32 %v757_v20, %v737_v7  ;;  %v771_v6 = vmul.f32 %v757_v20, %v738_v19  ;;  %v772_v0 = vmul.f32 %v757_v20, %v739_v38 }
  0x6e   : > { %4583 = vst [vmem:[#allocation19_spill] sm:$0xff] %v2933_v47  ;;  %4585 = vst [vmem:[#allocation20_spill] sm:$0xff] %v2936_v45  ;;  %v747_v13 = vld [vmem:[%s2568_s20 + $0xb2] sm:$0x1]  ;;  %v748_v51 = vld [vmem:[%s2568_s20 + $0xba] sm:$0x1]  ;;  %v768_v45 = vmul.f32 %v757_v20, %v735_v35  ;;  %v769_v47 = vmul.f32 %v757_v20, %v736_v55  ;;  %v773_v57 = vmul.f32 %v757_v20, %v740_v40 }
  0x6f   : > { %4587 = vst [vmem:[#allocation21_spill] sm:$0xff] %v2939_v26  ;;  %v749_v14 = vld [vmem:[%s2568_s20 + $0xc2] sm:$0x1]  ;;  %v767_v26 = vmul.f32 %v757_v20, %v734_v31  ;;  %v750_v63 = vld [vmem:[%s2568_s20 + $0xca] sm:$0x1]  ;;  %v774_v23 = vmul.f32 %v757_v20, %v741_v17  ;;  %v775_v62 = vmul.f32 %v757_v20, %v742_v27  ;;  %v776_v53 = vmul.f32 %v757_v20, %v743_v37 }
  0x70   : > { %v751_v8 = vld [vmem:[%s2568_s20 + $0xd2] sm:$0x1]  ;;  %v752_v9 = vld [vmem:[%s2568_s20 + $0xda] sm:$0x1]  ;;  %v753_v34 = vld [vmem:[%s2568_s20 + $0xe2] sm:$0x1]  ;;  %v777_v16 = vmul.f32 %v757_v20, %v744_v28  ;;  %v778_v31 = vmul.f32 %v757_v20, %v745_v56  ;;  %v779_v35 = vmul.f32 %v757_v20, %v746_v41  ;;  %v780_v55 = vmul.f32 %v757_v20, %v747_v13 }
  0x71   : > { %v754_v33 = vld [vmem:[%s2568_s20 + $0xea] sm:$0x1]  ;;  %v755_v24 = vld [vmem:[%s2568_s20 + $0xf2] sm:$0x1]  ;;  %v756_v36 = vld [vmem:[%s2568_s20 + $0xfa] sm:$0x1]  ;;  %v781_v15 = vmul.f32 %v757_v20, %v748_v51  ;;  %v782_v7 = vmul.f32 %v757_v20, %v749_v14  ;;  %v783_v12 = vmul.f32 %v757_v20, %v750_v63  ;;  %v784_v19 = vmul.f32 %v757_v20, %v751_v8 }
  0x72   : > { %v785_v38 = vmul.f32 %v757_v20, %v752_v9  ;;  %v786_v40 = vmul.f32 %v757_v20, %v753_v34  ;;  %v787_v11 = vmul.f32 %v757_v20, %v754_v33  ;;  %v788_v10 = vmul.f32 %v757_v20, %v755_v24  ;;  %v4589_v22 = vld [vmem:[#allocation22_spill] sm:$0xff]  ;;  %s1196_s14 = scalar_select %p3412_p10, 1, 0 }
  0x73   : > { %v789_v17 = vmul.f32 %v757_v20, %v756_v36  ;;  %v794_v27 = vsel %vm793_vm1, %v758_v32, 0.0  ;;  %v2976_v37 = vstv %s2930_s13  ;;  %v2978_v28 = vstv %s926_s19  ;;  %s1398_s13 = sadd.s32 7, %s2571_s15 }
  0x74   : > { %v795_v56 = vsel %vm793_vm1, %v759_v42, 0.0  ;;  %v796_v41 = vsel %vm793_vm1, %v760_v39, 0.0  ;;  %v797_v33 = vsel %vm793_vm1, %v761_v43, 0.0  ;;  %v798_v24 = vsel %vm793_vm1, %v762_v1, 0.0  ;;  %s3884_s19 = sld [smem:[#allocation3 + %s1398_s13]]  ;;  %p3898_p12 = scmp.lt.s32.totalorder %s1398_s13, 13 }
  0x75   : > { %v799_v34 = vsel %vm793_vm1, %v763_v21, 0.0  ;;  %v800_v20 = vsel %vm793_vm1, %v764_v46, 0.0  ;;  %v801_v32 = vsel %vm793_vm1, %v765_v44, 0.0  ;;  %v802_v42 = vsel %vm793_vm1, %v766_v52, 0.0  ;;  %s1331_s15 = scalar_select %p3878_p11, 1, 0 }
  0x76   : > { %v803_v39 = vsel %vm793_vm1, %v767_v26, 0.0  ;;  %v804_v43 = vsel %vm793_vm1, %v768_v45, 0.0  ;;  %v805_v1 = vsel %vm793_vm1, %v769_v47, 0.0  ;;  %v806_v21 = vsel %vm793_vm1, %v770_v18, 0.0 }
  0x77   : > { %v807_v46 = vsel %vm793_vm1, %v771_v6, 0.0  ;;  %v808_v44 = vsel %vm793_vm1, %v772_v0, 0.0  ;;  %v809_v13 = vsel %vm793_vm1, %v773_v57, 0.0  ;;  %v810_v26 = vsel %vm793_vm1, %v774_v23, 0.0 }
  0x78   : > { %v811_v45 = vsel %vm793_vm1, %v775_v62, 0.0  ;;  %v812_v47 = vsel %vm793_vm1, %v776_v53, 0.0  ;;  %v813_v51 = vsel %vm793_vm1, %v777_v16, 0.0  ;;  %v814_v6 = vsel %vm793_vm1, %v778_v31, 0.0  ;;  %v4590_v31 = vld [vmem:[#allocation23_spill] sm:$0xff] }
  0x79   : > { %v815_v0 = vsel %vm793_vm1, %v779_v35, 0.0  ;;  %v816_v57 = vsel %vm793_vm1, %v780_v55, 0.0  ;;  %v817_v23 = vsel %vm793_vm1, %v781_v15, 0.0  ;;  %v818_v62 = vsel %vm793_vm1, %v782_v7, 0.0  ;;  %v862_v55 = vld [vmem:[%s2568_s20 + $0x13] sm:$0x1] }
  0x7a   : > { %v819_v53 = vsel %vm793_vm1, %v783_v12, 0.0  ;;  %v820_v16 = vsel %vm793_vm1, %v784_v19, 0.0  ;;  %v821_v14 = vsel %vm793_vm1, %v785_v38, 0.0  ;;  %v822_v52 = vsel %vm793_vm1, %v786_v40, 0.0  ;;  %v864_v7 = vld [vmem:[%s2568_s20 + $0x23] sm:$0x1] }
  0x7b   : > { %v823_v63 = vsel %vm793_vm1, %v787_v11, 0.0  ;;  %v824_v15 = vsel %vm793_vm1, %v788_v10, 0.0  ;;  %v825_v8 = vsel %vm793_vm1, %v789_v17, 0.0  ;;  %v3043_v12 = vadd.f32 %v794_v27, %v2820_v30  ;;  %v4591_v19 = vld [vmem:[#allocation24_spill] sm:$0xff]  ;;  %v4592_v38 = vld [vmem:[#allocation25_spill] sm:$0xff]  ;;  %v4593_v40 = vld [vmem:[#allocation26_spill] sm:$0xff] }
  0x7c   : > { %v3046_v9 = vadd.f32 %v795_v56, %v2823_v29  ;;  %v3049_v18 = vadd.f32 %v796_v41, %v2830_v48  ;;  %v3052_v36 = vadd.f32 %v797_v33, %v2833_v49  ;;  %v3055_v11 = vadd.f32 %v798_v24, %v2836_v50  ;;  %v4594_v27 = vld [vmem:[#allocation10_spill] sm:$0xff]  ;;  %v865_v41 = vld [vmem:[%s2568_s20 + $0x2b] sm:$0x1]  ;;  %v866_v33 = vld [vmem:[%s2568_s20 + $0x33] sm:$0x1] }
  0x7d   : > { %v3058_v10 = vadd.f32 %v799_v34, %v2839_v54  ;;  %v3061_v30 = vadd.f32 %v800_v20, %v2842_v58  ;;  %v3064_v29 = vadd.f32 %v801_v32, %v2845_v25  ;;  %v3067_v48 = vadd.f32 %v802_v42, %v2848_v59  ;;  %v860_v25 = vld [vmem:[%s2568_s20 + $0x3] sm:$0x1]  ;;  %v867_v24 = vld [vmem:[%s2568_s20 + $0x3b] sm:$0x1]  ;;  %v4596_v20 = vld [vmem:[#allocation11_spill] sm:$0xff] }
  0x7e   : > { %v3070_v49 = vadd.f32 %v803_v39, %v2851_v60  ;;  %v3073_v50 = vadd.f32 %v804_v43, %v2854_v61  ;;  %v3076_v54 = vadd.f32 %v805_v1, %v2857_v2  ;;  %v3079_v58 = vadd.f32 %v806_v21, %v2860_v3  ;;  %v861_v2 = vld [vmem:[%s2568_s20 + $0xb] sm:$0x1]  ;;  %v863_v3 = vld [vmem:[%s2568_s20 + $0x1b] sm:$0x1]  ;;  %v868_v34 = vld [vmem:[%s2568_s20 + $0x43] sm:$0x1] }
  0x7f   : > { %v3083_v59 = vadd.f32 %v807_v46, %v2863_v4  ;;  %v3086_v60 = vadd.f32 %v808_v44, %v2867_v5  ;;  %v3089_v61 = vadd.f32 %v809_v13, %v4589_v22  ;;  %v3092_v35 = vadd.f32 %v810_v26, %v4590_v31  ;;  %v4598_v42 = vld [vmem:[#allocation12_spill] sm:$0xff]  ;;  %v4600_v43 = vld [vmem:[#allocation13_spill] sm:$0xff]  ;;  %v4602_v21 = vld [vmem:[#allocation14_spill] sm:$0xff] }
  0x80   : > { %v3099_v4 = vadd.f32 %v811_v45, %v4591_v19  ;;  %v3102_v5 = vadd.f32 %v812_v47, %v4592_v38  ;;  %v3105_v17 = vadd.f32 %v813_v51, %v4593_v40  ;;  %v3108_v56 = vadd.f32 %v814_v6, %v4594_v27  ;;  %v869_v44 = vld [vmem:[%s2568_s20 + $0x4b] sm:$0x1]  ;;  %v870_v13 = vld [vmem:[%s2568_s20 + $0x53] sm:$0x1]  ;;  %v871_v26 = vld [vmem:[%s2568_s20 + $0x5b] sm:$0x1] }
  0x81   : > { %v3115_v32 = vadd.f32 %v815_v0, %v4596_v20  ;;  %v3118_v39 = vadd.f32 %v816_v57, %v4598_v42  ;;  %v3121_v1 = vadd.f32 %v817_v23, %v4600_v43  ;;  %v3124_v46 = vadd.f32 %v818_v62, %v4602_v21  ;;  %v872_v45 = vld [vmem:[%s2568_s20 + $0x63] sm:$0x1]  ;;  %v4604_v47 = vld [vmem:[#allocation15_spill] sm:$0xff]  ;;  %v4606_v6 = vld [vmem:[#allocation16_spill] sm:$0xff] }
  0x82   : > { %4595 = vst [vmem:[#allocation22_spill] sm:$0xff] %v3108_v56  ;;  %v3132_v51 = vadd.f32 %v819_v53, %v4604_v47  ;;  %v3135_v0 = vadd.f32 %v820_v16, %v4606_v6  ;;  %v4608_v57 = vld [vmem:[#allocation17_spill] sm:$0xff]  ;;  %v4610_v62 = vld [vmem:[#allocation18_spill] sm:$0xff]  ;;  %v873_v31 = vld [vmem:[%s2568_s20 + $0x6b] sm:$0x1]  ;;  %vm928_vm2 = vcmp.eq.s32.totalorder %v2978_v28, 1 }
  0x83   : > { %4597 = vst [vmem:[#allocation23_spill] sm:$0xff] %v3115_v32  ;;  %4599 = vst [vmem:[#allocation24_spill] sm:$0xff] %v3118_v39  ;;  %v3138_v23 = vadd.f32 %v821_v14, %v4608_v57  ;;  %v3141_v22 = vadd.f32 %v822_v52, %v4610_v62  ;;  %v874_v19 = vld [vmem:[%s2568_s20 + $0x73] sm:$0x1]  ;;  %v875_v38 = vld [vmem:[%s2568_s20 + $0x7b] sm:$0x1]  ;;  %v893_v52 = vmul.f32 %v2976_v37, %v860_v25 }
  0x84   : > { %4601 = vst [vmem:[#allocation25_spill] sm:$0xff] %v3121_v1  ;;  %4603 = vst [vmem:[#allocation26_spill] sm:$0xff] %v3124_v46  ;;  %v4612_v40 = vld [vmem:[#allocation19_spill] sm:$0xff]  ;;  %v4614_v20 = vld [vmem:[#allocation20_spill] sm:$0xff]  ;;  %v895_v57 = vmul.f32 %v2976_v37, %v862_v55  ;;  %v897_v62 = vmul.f32 %v2976_v37, %v864_v7  ;;  %v899_v55 = vmul.f32 %v2976_v37, %v866_v33 }
  0x85   : > { %4605 = vst [vmem:[#allocation10_spill] sm:$0xff] %v3132_v51  ;;  %4607 = vst [vmem:[#allocation11_spill] sm:$0xff] %v3135_v0  ;;  %v3147_v27 = vadd.f32 %v823_v63, %v4612_v40  ;;  %v3150_v53 = vadd.f32 %v824_v15, %v4614_v20  ;;  %v4616_v42 = vld [vmem:[#allocation21_spill] sm:$0xff]  ;;  %v876_v14 = vld [vmem:[%s2568_s20 + $0x83] sm:$0x1]  ;;  %v894_v63 = vmul.f32 %v2976_v37, %v861_v2 }
  0x86   : > { %4609 = vst [vmem:[#allocation12_spill] sm:$0xff] %v3138_v23  ;;  %4611 = vst [vmem:[#allocation13_spill] sm:$0xff] %v3141_v22  ;;  %v3153_v16 = vadd.f32 %v825_v8, %v4616_v42  ;;  %v877_v43 = vld [vmem:[%s2568_s20 + $0x8b] sm:$0x1]  ;;  %v878_v21 = vld [vmem:[%s2568_s20 + $0x93] sm:$0x1]  ;;  %v896_v15 = vmul.f32 %v2976_v37, %v863_v3  ;;  %v898_v2 = vmul.f32 %v2976_v37, %v865_v41 }
  0x87   : > { %4613 = vst [vmem:[#allocation14_spill] sm:$0xff] %v3147_v27  ;;  %4615 = vst [vmem:[#allocation15_spill] sm:$0xff] %v3150_v53  ;;  %v879_v47 = vld [vmem:[%s2568_s20 + $0x9b] sm:$0x1]  ;;  %v880_v6 = vld [vmem:[%s2568_s20 + $0xa3] sm:$0x1]  ;;  %v900_v3 = vmul.f32 %v2976_v37, %v867_v24  ;;  %v901_v7 = vmul.f32 %v2976_v37, %v868_v34  ;;  %v902_v53 = vmul.f32 %v2976_v37, %v869_v44 }
  0x88   : > { %4617 = vst [vmem:[#allocation16_spill] sm:$0xff] %v3153_v16  ;;  %v881_v8 = vld [vmem:[%s2568_s20 + $0xab] sm:$0x1]  ;;  %v882_v25 = vld [vmem:[%s2568_s20 + $0xb3] sm:$0x1]  ;;  %v903_v27 = vmul.f32 %v2976_v37, %v870_v13  ;;  %v904_v22 = vmul.f32 %v2976_v37, %v871_v26  ;;  %v905_v41 = vmul.f32 %v2976_v37, %v872_v45  ;;  %v906_v24 = vmul.f32 %v2976_v37, %v873_v31 }
  0x89   : > { %v883_v40 = vld [vmem:[%s2568_s20 + $0xbb] sm:$0x1]  ;;  %v884_v20 = vld [vmem:[%s2568_s20 + $0xc3] sm:$0x1]  ;;  %v885_v42 = vld [vmem:[%s2568_s20 + $0xcb] sm:$0x1]  ;;  %v907_v34 = vmul.f32 %v2976_v37, %v874_v19  ;;  %v908_v51 = vmul.f32 %v2976_v37, %v875_v38  ;;  %v909_v46 = vmul.f32 %v2976_v37, %v876_v14  ;;  %v910_v13 = vmul.f32 %v2976_v37, %v877_v43 }
  0x8a   : > { %v886_v16 = vld [vmem:[%s2568_s20 + $0xd3] sm:$0x1]  ;;  %v887_v23 = vld [vmem:[%s2568_s20 + $0xdb] sm:$0x1]  ;;  %v888_v33 = vld [vmem:[%s2568_s20 + $0xe3] sm:$0x1]  ;;  %v911_v39 = vmul.f32 %v2976_v37, %v878_v21  ;;  %v912_v26 = vmul.f32 %v2976_v37, %v879_v47  ;;  %v913_v45 = vmul.f32 %v2976_v37, %v880_v6  ;;  %v914_v31 = vmul.f32 %v2976_v37, %v881_v8 }
  0x8b   : > { %v889_v0 = vld [vmem:[%s2568_s20 + $0xeb] sm:$0x1]  ;;  %v890_v1 = vld [vmem:[%s2568_s20 + $0xf3] sm:$0x1]  ;;  %v891_v44 = vld [vmem:[%s2568_s20 + $0xfb] sm:$0x1]  ;;  %v915_v19 = vmul.f32 %v2976_v37, %v882_v25  ;;  %v916_v38 = vmul.f32 %v2976_v37, %v883_v40  ;;  %v917_v14 = vmul.f32 %v2976_v37, %v884_v20  ;;  %v918_v32 = vmul.f32 %v2976_v37, %v885_v42 }
  0x8c   : > { %v919_v43 = vmul.f32 %v2976_v37, %v886_v16  ;;  %v920_v21 = vmul.f32 %v2976_v37, %v887_v23  ;;  %v921_v47 = vmul.f32 %v2976_v37, %v888_v33  ;;  %v922_v6 = vmul.f32 %v2976_v37, %v889_v0 }
  0x8d   : > { %v923_v56 = vmul.f32 %v2976_v37, %v890_v1  ;;  %v924_v8 = vmul.f32 %v2976_v37, %v891_v44  ;;  %v929_v25 = vsel %vm928_vm2, %v893_v52, 0.0  ;;  %v930_v40 = vsel %vm928_vm2, %v894_v63, 0.0 }
  0x8e   : > { %v3217_v20 = vstv %s3165_s16  ;;  %v3219_v16 = vstv %s1061_s22  ;;  %v931_v23 = vsel %vm928_vm2, %v895_v57, 0.0  ;;  %v932_v1 = vsel %vm928_vm2, %v896_v15, 0.0  ;;  %s1466_s16 = scalar_select %p3898_p12, 1, 0 }
  0x8f   : > { %v933_v37 = vsel %vm928_vm2, %v897_v62, 0.0  ;;  %v934_v0 = vsel %vm928_vm2, %v898_v2, 0.0  ;;  %v935_v52 = vsel %vm928_vm2, %v899_v55, 0.0  ;;  %v936_v63 = vsel %vm928_vm2, %v900_v3, 0.0 }
  0x90   : > { %v937_v42 = vsel %vm928_vm2, %v901_v7, 0.0  ;;  %v938_v57 = vsel %vm928_vm2, %v902_v53, 0.0  ;;  %v939_v15 = vsel %vm928_vm2, %v903_v27, 0.0  ;;  %v940_v62 = vsel %vm928_vm2, %v904_v22, 0.0 }
  0x91   : > { %v941_v2 = vsel %vm928_vm2, %v905_v41, 0.0  ;;  %v942_v55 = vsel %vm928_vm2, %v906_v24, 0.0  ;;  %v943_v3 = vsel %vm928_vm2, %v907_v34, 0.0  ;;  %v944_v7 = vsel %vm928_vm2, %v908_v51, 0.0 }
  0x92   : > { %v945_v53 = vsel %vm928_vm2, %v909_v46, 0.0  ;;  %v946_v27 = vsel %vm928_vm2, %v910_v13, 0.0  ;;  %v947_v22 = vsel %vm928_vm2, %v911_v39, 0.0  ;;  %v948_v41 = vsel %vm928_vm2, %v912_v26, 0.0 }
  0x93   : > { %v949_v33 = vsel %vm928_vm2, %v913_v45, 0.0  ;;  %v950_v24 = vsel %vm928_vm2, %v914_v31, 0.0  ;;  %v951_v51 = vsel %vm928_vm2, %v915_v19, 0.0  ;;  %v952_v46 = vsel %vm928_vm2, %v916_v38, 0.0 }
  0x94   : > { %v953_v34 = vsel %vm928_vm2, %v917_v14, 0.0  ;;  %v954_v39 = vsel %vm928_vm2, %v918_v32, 0.0  ;;  %v955_v44 = vsel %vm928_vm2, %v919_v43, 0.0  ;;  %v956_v13 = vsel %vm928_vm2, %v920_v21, 0.0 }
  0x95   : > { %v957_v26 = vsel %vm928_vm2, %v921_v47, 0.0  ;;  %v958_v45 = vsel %vm928_vm2, %v922_v6, 0.0  ;;  %v959_v31 = vsel %vm928_vm2, %v923_v56, 0.0  ;;  %v960_v19 = vsel %vm928_vm2, %v924_v8, 0.0  ;;  %v995_v56 = vld [vmem:[%s2568_s20 + $0x4] sm:$0x1] }
  0x96   : > { %v3282_v32 = vadd.f32 %v929_v25, %v3043_v12  ;;  %v3285_v38 = vadd.f32 %v930_v40, %v3046_v9  ;;  %v3288_v14 = vadd.f32 %v931_v23, %v3049_v18  ;;  %v3291_v43 = vadd.f32 %v932_v1, %v3052_v36  ;;  %v998_v47 = vld [vmem:[%s2568_s20 + $0x1c] sm:$0x1]  ;;  %v999_v6 = vld [vmem:[%s2568_s20 + $0x24] sm:$0x1]  ;;  %v1000_v8 = vld [vmem:[%s2568_s20 + $0x2c] sm:$0x1] }
  0x97   : > { %v3294_v21 = vadd.f32 %v933_v37, %v3055_v11  ;;  %v3297_v28 = vadd.f32 %v934_v0, %v3058_v10  ;;  %v3300_v12 = vadd.f32 %v935_v52, %v3061_v30  ;;  %v3303_v9 = vadd.f32 %v936_v63, %v3064_v29  ;;  %v1001_v23 = vld [vmem:[%s2568_s20 + $0x34] sm:$0x1]  ;;  %v1002_v1 = vld [vmem:[%s2568_s20 + $0x3c] sm:$0x1]  ;;  %v1003_v37 = vld [vmem:[%s2568_s20 + $0x44] sm:$0x1] }
  0x98   : > { %v3306_v18 = vadd.f32 %v937_v42, %v3067_v48  ;;  %v3309_v36 = vadd.f32 %v938_v57, %v3070_v49  ;;  %v3312_v11 = vadd.f32 %v939_v15, %v3073_v50  ;;  %v3315_v10 = vadd.f32 %v940_v62, %v3076_v54  ;;  %v996_v48 = vld [vmem:[%s2568_s20 + $0xc] sm:$0x1]  ;;  %v4623_v52 = vld [vmem:[#allocation24_spill] sm:$0xff]  ;;  %v4625_v63 = vld [vmem:[#allocation25_spill] sm:$0xff] }
  0x99   : > { %v3318_v30 = vadd.f32 %v941_v2, %v3079_v58  ;;  %v3321_v29 = vadd.f32 %v942_v55, %v3083_v59  ;;  %v3326_v49 = vadd.f32 %v943_v3, %v3086_v60  ;;  %v3329_v50 = vadd.f32 %v944_v7, %v3089_v61  ;;  %v997_v59 = vld [vmem:[%s2568_s20 + $0x14] sm:$0x1]  ;;  %v1004_v0 = vld [vmem:[%s2568_s20 + $0x4c] sm:$0x1]  ;;  %v4629_v15 = vld [vmem:[#allocation10_spill] sm:$0xff] }
  0x9a   : > { %v3332_v54 = vadd.f32 %v945_v53, %v3092_v35  ;;  %v3335_v58 = vadd.f32 %v946_v27, %v3099_v4  ;;  %v3343_v60 = vadd.f32 %v947_v22, %v3102_v5  ;;  %v3346_v61 = vadd.f32 %v948_v41, %v3105_v17  ;;  %v4619_v35 = vld [vmem:[#allocation22_spill] sm:$0xff]  ;;  %v4621_v4 = vld [vmem:[#allocation23_spill] sm:$0xff]  ;;  %v1005_v2 = vld [vmem:[%s2568_s20 + $0x54] sm:$0x1] }
  0x9b   : > { %v3349_v25 = vadd.f32 %v949_v33, %v4619_v35  ;;  %v3352_v40 = vadd.f32 %v950_v24, %v4621_v4  ;;  %v3359_v5 = vadd.f32 %v951_v51, %v4623_v52  ;;  %v3362_v42 = vadd.f32 %v952_v46, %v4625_v63  ;;  %v4627_v17 = vld [vmem:[#allocation26_spill] sm:$0xff]  ;;  %v1006_v55 = vld [vmem:[%s2568_s20 + $0x5c] sm:$0x1]  ;;  %v1008_v7 = vld [vmem:[%s2568_s20 + $0x6c] sm:$0x1] }
  0x9c   : > { %v3365_v57 = vadd.f32 %v953_v34, %v4627_v17  ;;  %v3368_v62 = vadd.f32 %v954_v39, %v4629_v15  ;;  %v1007_v3 = vld [vmem:[%s2568_s20 + $0x64] sm:$0x1]  ;;  %v4631_v53 = vld [vmem:[#allocation11_spill] sm:$0xff]  ;;  %v4633_v22 = vld [vmem:[#allocation12_spill] sm:$0xff]  ;;  %v1028_v17 = vmul.f32 %v3217_v20, %v995_v56  ;;  %vm1063_vm3 = vcmp.eq.s32.totalorder %v3219_v16, 1 }
  0x9d   : > { %4620 = vst [vmem:[#allocation17_spill] sm:$0xff] %v3349_v25  ;;  %4622 = vst [vmem:[#allocation18_spill] sm:$0xff] %v3352_v40  ;;  %v3376_v27 = vadd.f32 %v955_v44, %v4631_v53  ;;  %v3379_v41 = vadd.f32 %v956_v13, %v4633_v22  ;;  %v4635_v33 = vld [vmem:[#allocation13_spill] sm:$0xff]  ;;  %v4637_v51 = vld [vmem:[#allocation14_spill] sm:$0xff]  ;;  %v1032_v22 = vmul.f32 %v3217_v20, %v999_v6 }
  0x9e   : > { %4624 = vst [vmem:[#allocation19_spill] sm:$0xff] %v3359_v5  ;;  %4626 = vst [vmem:[#allocation20_spill] sm:$0xff] %v3362_v42  ;;  %v3382_v24 = vadd.f32 %v957_v26, %v4635_v33  ;;  %v3385_v46 = vadd.f32 %v958_v45, %v4637_v51  ;;  %v1009_v34 = vld [vmem:[%s2568_s20 + $0x74] sm:$0x1]  ;;  %v1010_v39 = vld [vmem:[%s2568_s20 + $0x7c] sm:$0x1]  ;;  %v1029_v45 = vmul.f32 %v3217_v20, %v996_v48 }
  0x9f   : > { %4628 = vst [vmem:[#allocation21_spill] sm:$0xff] %v3365_v57  ;;  %4630 = vst [vmem:[#allocation22_spill] sm:$0xff] %v3368_v62  ;;  %v1011_v35 = vld [vmem:[%s2568_s20 + $0x84] sm:$0x1]  ;;  %v4639_v4 = vld [vmem:[#allocation15_spill] sm:$0xff]  ;;  %v1033_v33 = vmul.f32 %v3217_v20, %v1000_v8  ;;  %v1035_v6 = vmul.f32 %v3217_v20, %v1002_v1  ;;  %v1036_v8 = vmul.f32 %v3217_v20, %v1003_v37 }
  0xa0   : > { %4632 = vst [vmem:[#allocation23_spill] sm:$0xff] %v3376_v27  ;;  %4634 = vst [vmem:[#allocation24_spill] sm:$0xff] %v3379_v41  ;;  %v3391_v52 = vadd.f32 %v959_v31, %v4639_v4  ;;  %v4641_v44 = vld [vmem:[#allocation16_spill] sm:$0xff]  ;;  %v1012_v13 = vld [vmem:[%s2568_s20 + $0x8c] sm:$0x1]  ;;  %v1030_v31 = vmul.f32 %v3217_v20, %v997_v59  ;;  %v1037_v51 = vmul.f32 %v3217_v20, %v1004_v0 }
  0xa1   : > { %4636 = vst [vmem:[#allocation25_spill] sm:$0xff] %v3382_v24  ;;  %4638 = vst [vmem:[#allocation26_spill] sm:$0xff] %v3385_v46  ;;  %v3394_v63 = vadd.f32 %v960_v19, %v4641_v44  ;;  %v1013_v26 = vld [vmem:[%s2568_s20 + $0x94] sm:$0x1]  ;;  %v1014_v15 = vld [vmem:[%s2568_s20 + $0x9c] sm:$0x1]  ;;  %v1031_v19 = vmul.f32 %v3217_v20, %v998_v47  ;;  %v1034_v47 = vmul.f32 %v3217_v20, %v1001_v23 }
  0xa2   : > { %4640 = vst [vmem:[#allocation10_spill] sm:$0xff] %v3391_v52  ;;  %v1015_v53 = vld [vmem:[%s2568_s20 + $0xa4] sm:$0x1]  ;;  %v1016_v56 = vld [vmem:[%s2568_s20 + $0xac] sm:$0x1]  ;;  %v1038_v52 = vmul.f32 %v3217_v20, %v1005_v2  ;;  %v1039_v46 = vmul.f32 %v3217_v20, %v1006_v55  ;;  %v1040_v24 = vmul.f32 %v3217_v20, %v1007_v3  ;;  %v1041_v23 = vmul.f32 %v3217_v20, %v1008_v7 }
  0xa3   : > { %4642 = vst [vmem:[#allocation11_spill] sm:$0xff] %v3394_v63  ;;  %v1017_v48 = vld [vmem:[%s2568_s20 + $0xb4] sm:$0x1]  ;;  %v1018_v59 = vld [vmem:[%s2568_s20 + $0xbc] sm:$0x1]  ;;  %v1042_v37 = vmul.f32 %v3217_v20, %v1009_v34  ;;  %v1043_v0 = vmul.f32 %v3217_v20, %v1010_v39  ;;  %v1044_v62 = vmul.f32 %v3217_v20, %v1011_v35  ;;  %v1045_v57 = vmul.f32 %v3217_v20, %v1012_v13 }
  0xa4   : > { %v1019_v4 = vld [vmem:[%s2568_s20 + $0xc4] sm:$0x1]  ;;  %v1020_v44 = vld [vmem:[%s2568_s20 + $0xcc] sm:$0x1]  ;;  %v1021_v63 = vld [vmem:[%s2568_s20 + $0xd4] sm:$0x1]  ;;  %v1046_v55 = vmul.f32 %v3217_v20, %v1013_v26  ;;  %v1047_v3 = vmul.f32 %v3217_v20, %v1014_v15  ;;  %v1048_v7 = vmul.f32 %v3217_v20, %v1015_v53  ;;  %v1049_v5 = vmul.f32 %v3217_v20, %v1016_v56 }
  0xa5   : > { %v1022_v41 = vld [vmem:[%s2568_s20 + $0xdc] sm:$0x1]  ;;  %v1023_v1 = vld [vmem:[%s2568_s20 + $0xe4] sm:$0x1]  ;;  %v1024_v27 = vld [vmem:[%s2568_s20 + $0xec] sm:$0x1]  ;;  %v1050_v34 = vmul.f32 %v3217_v20, %v1017_v48  ;;  %v1051_v39 = vmul.f32 %v3217_v20, %v1018_v59  ;;  %v1052_v35 = vmul.f32 %v3217_v20, %v1019_v4  ;;  %v1053_v13 = vmul.f32 %v3217_v20, %v1020_v44 }
  0xa6   : > { %v1025_v42 = vld [vmem:[%s2568_s20 + $0xf4] sm:$0x1]  ;;  %v1026_v2 = vld [vmem:[%s2568_s20 + $0xfc] sm:$0x1]  ;;  %v1054_v26 = vmul.f32 %v3217_v20, %v1021_v63  ;;  %v1055_v40 = vmul.f32 %v3217_v20, %v1022_v41  ;;  %v1056_v15 = vmul.f32 %v3217_v20, %v1023_v1  ;;  %v1057_v53 = vmul.f32 %v3217_v20, %v1024_v27 }
  0xa7   : > { %v1058_v56 = vmul.f32 %v3217_v20, %v1025_v42  ;;  %v1059_v25 = vmul.f32 %v3217_v20, %v1026_v2  ;;  %v3461_v48 = vstv %s3402_s25  ;;  %v1064_v59 = vsel %vm1063_vm3, %v1028_v17, 0.0 }
  0xa8   : > { %v1065_v63 = vsel %vm1063_vm3, %v1029_v45, 0.0  ;;  %v3467_v4 = vstv %s1196_s14  ;;  %v3470_v41 = vstv %s3418_s12  ;;  %v1066_v27 = vsel %vm1063_vm3, %v1030_v31, 0.0 }
  0xa9   : > { %v1067_v20 = vsel %vm1063_vm3, %v1031_v19, 0.0  ;;  %v1068_v42 = vsel %vm1063_vm3, %v1032_v22, 0.0  ;;  %v1069_v44 = vsel %vm1063_vm3, %v1033_v33, 0.0  ;;  %v1070_v17 = vsel %vm1063_vm3, %v1034_v47, 0.0 }
  0xaa   : > { %v1071_v45 = vsel %vm1063_vm3, %v1035_v6, 0.0  ;;  %v1072_v1 = vsel %vm1063_vm3, %v1036_v8, 0.0  ;;  %v1073_v31 = vsel %vm1063_vm3, %v1037_v51, 0.0  ;;  %v1074_v19 = vsel %vm1063_vm3, %v1038_v52, 0.0 }
  0xab   : > { %v1075_v22 = vsel %vm1063_vm3, %v1039_v46, 0.0  ;;  %v1076_v33 = vsel %vm1063_vm3, %v1040_v24, 0.0  ;;  %v1077_v47 = vsel %vm1063_vm3, %v1041_v23, 0.0  ;;  %v1078_v6 = vsel %vm1063_vm3, %v1042_v37, 0.0 }
  0xac   : > { %v1079_v8 = vsel %vm1063_vm3, %v1043_v0, 0.0  ;;  %v1080_v51 = vsel %vm1063_vm3, %v1044_v62, 0.0  ;;  %v1081_v52 = vsel %vm1063_vm3, %v1045_v57, 0.0  ;;  %v1082_v46 = vsel %vm1063_vm3, %v1046_v55, 0.0 }
  0xad   : > { %v1083_v24 = vsel %vm1063_vm3, %v1047_v3, 0.0  ;;  %v1084_v23 = vsel %vm1063_vm3, %v1048_v7, 0.0  ;;  %v1085_v37 = vsel %vm1063_vm3, %v1049_v5, 0.0  ;;  %v1086_v0 = vsel %vm1063_vm3, %v1050_v34, 0.0 }
  0xae   : > { %v1087_v62 = vsel %vm1063_vm3, %v1051_v39, 0.0  ;;  %v1088_v57 = vsel %vm1063_vm3, %v1052_v35, 0.0  ;;  %v1089_v2 = vsel %vm1063_vm3, %v1053_v13, 0.0  ;;  %v1090_v55 = vsel %vm1063_vm3, %v1054_v26, 0.0 }
  0xaf   : > { %v1091_v3 = vsel %vm1063_vm3, %v1055_v40, 0.0  ;;  %v1092_v5 = vsel %vm1063_vm3, %v1056_v15, 0.0  ;;  %v1093_v7 = vsel %vm1063_vm3, %v1057_v53, 0.0  ;;  %v1094_v34 = vsel %vm1063_vm3, %v1058_v56, 0.0  ;;  %v1132_v53 = vld [vmem:[%s2568_s20 + $0x15] sm:$0x1] }
  0xb0   : > { %v1095_v39 = vsel %vm1063_vm3, %v1059_v25, 0.0  ;;  %v3533_v35 = vadd.f32 %v1064_v59, %v3282_v32  ;;  %v3536_v13 = vadd.f32 %v1065_v63, %v3285_v38  ;;  %v3539_v40 = vadd.f32 %v1066_v27, %v3288_v14  ;;  %v1130_v25 = vld [vmem:[%s2568_s20 + $0x5] sm:$0x1]  ;;  %v1135_v59 = vld [vmem:[%s2568_s20 + $0x2d] sm:$0x1] }
  0xb1   : > { %v3542_v26 = vadd.f32 %v1067_v20, %v3291_v43  ;;  %v3545_v15 = vadd.f32 %v1068_v42, %v3294_v21  ;;  %v3548_v16 = vadd.f32 %v1069_v44, %v3297_v28  ;;  %v3551_v32 = vadd.f32 %v1070_v17, %v3300_v12  ;;  %v1134_v56 = vld [vmem:[%s2568_s20 + $0x25] sm:$0x1]  ;;  %v1136_v20 = vld [vmem:[%s2568_s20 + $0x35] sm:$0x1]  ;;  %v1137_v42 = vld [vmem:[%s2568_s20 + $0x3d] sm:$0x1] }
  0xb2   : > { %v3554_v38 = vadd.f32 %v1071_v45, %v3303_v9  ;;  %v3557_v14 = vadd.f32 %v1072_v1, %v3306_v18  ;;  %v3560_v43 = vadd.f32 %v1073_v31, %v3309_v36  ;;  %v3563_v21 = vadd.f32 %v1074_v19, %v3312_v11  ;;  %v1131_v18 = vld [vmem:[%s2568_s20 + $0xd] sm:$0x1]  ;;  %v1138_v44 = vld [vmem:[%s2568_s20 + $0x45] sm:$0x1] }
  0xb3   : > { %v3566_v28 = vadd.f32 %v1075_v22, %v3315_v10  ;;  %v3569_v12 = vadd.f32 %v1076_v33, %v3318_v30  ;;  %v3572_v9 = vadd.f32 %v1077_v47, %v3321_v29  ;;  %v3577_v36 = vadd.f32 %v1078_v6, %v3326_v49  ;;  %v1133_v29 = vld [vmem:[%s2568_s20 + $0x1d] sm:$0x1]  ;;  %v4651_v17 = vld [vmem:[#allocation19_spill] sm:$0xff]  ;;  %v4657_v19 = vld [vmem:[#allocation22_spill] sm:$0xff] }
  0xb4   : > { %v3580_v11 = vadd.f32 %v1079_v8, %v3329_v50  ;;  %v3583_v10 = vadd.f32 %v1080_v51, %v3332_v54  ;;  %v3586_v30 = vadd.f32 %v1081_v52, %v3335_v58  ;;  %v3593_v63 = vadd.f32 %v1082_v46, %v3343_v60  ;;  %v4647_v50 = vld [vmem:[#allocation17_spill] sm:$0xff]  ;;  %v4649_v54 = vld [vmem:[#allocation18_spill] sm:$0xff]  ;;  %v4653_v60 = vld [vmem:[#allocation20_spill] sm:$0xff] }
  0xb5   : > { %v3596_v49 = vadd.f32 %v1083_v24, %v3346_v61  ;;  %v3599_v27 = vadd.f32 %v1084_v23, %v4647_v50  ;;  %v3602_v58 = vadd.f32 %v1085_v37, %v4649_v54  ;;  %v3608_v45 = vadd.f32 %v1086_v0, %v4651_v17  ;;  %v4655_v61 = vld [vmem:[#allocation21_spill] sm:$0xff]  ;;  %v1139_v33 = vld [vmem:[%s2568_s20 + $0x4d] sm:$0x1]  ;;  %v1140_v47 = vld [vmem:[%s2568_s20 + $0x55] sm:$0x1] }
  0xb6   : > { %4644 = vst [vmem:[#allocation12_spill] sm:$0xff] %v3586_v30  ;;  %4645 = vst [vmem:[#allocation13_spill] sm:$0xff] %v3593_v63  ;;  %v3611_v1 = vadd.f32 %v1087_v62, %v4653_v60  ;;  %v3614_v31 = vadd.f32 %v1088_v57, %v4655_v61  ;;  %v3617_v22 = vadd.f32 %v1089_v2, %v4657_v19  ;;  %v1141_v6 = vld [vmem:[%s2568_s20 + $0x5d] sm:$0x1]  ;;  %v4659_v8 = vld [vmem:[#allocation23_spill] sm:$0xff]  ;;  %vm1198_vm4 = vcmp.eq.s32.totalorder %v3467_v4, 1 }
  0xb7   : > { %4646 = vst [vmem:[#allocation14_spill] sm:$0xff] %v3596_v49  ;;  %4648 = vst [vmem:[#allocation15_spill] sm:$0xff] %v3599_v27  ;;  %v3623_v51 = vadd.f32 %v1090_v55, %v4659_v8  ;;  %v4661_v52 = vld [vmem:[#allocation24_spill] sm:$0xff]  ;;  %v4663_v24 = vld [vmem:[#allocation25_spill] sm:$0xff] }
  0xb8   : > { %4650 = vst [vmem:[#allocation16_spill] sm:$0xff] %v3602_v58  ;;  %4652 = vst [vmem:[#allocation17_spill] sm:$0xff] %v3608_v45  ;;  %v3626_v46 = vadd.f32 %v1091_v3, %v4661_v52  ;;  %v3629_v23 = vadd.f32 %v1092_v5, %v4663_v24  ;;  %v4665_v37 = vld [vmem:[#allocation26_spill] sm:$0xff]  ;;  %v1143_v57 = vld [vmem:[%s2568_s20 + $0x6d] sm:$0x1]  ;;  %v1163_v5 = vmul.f32 %v3461_v48, %v1130_v25 }
  0xb9   : > { %4654 = vst [vmem:[#allocation18_spill] sm:$0xff] %v3611_v1  ;;  %4656 = vst [vmem:[#allocation19_spill] sm:$0xff] %v3614_v31  ;;  %v3632_v0 = vadd.f32 %v1093_v7, %v4665_v37  ;;  %v1142_v62 = vld [vmem:[%s2568_s20 + $0x65] sm:$0x1]  ;;  %v1144_v2 = vld [vmem:[%s2568_s20 + $0x75] sm:$0x1]  ;;  %v1164_v7 = vmul.f32 %v3461_v48, %v1131_v18  ;;  %v1166_v24 = vmul.f32 %v3461_v48, %v1133_v29 }
  0xba   : > { %4658 = vst [vmem:[#allocation20_spill] sm:$0xff] %v3617_v22  ;;  %4660 = vst [vmem:[#allocation21_spill] sm:$0xff] %v3623_v51  ;;  %v4667_v50 = vld [vmem:[#allocation10_spill] sm:$0xff]  ;;  %v4669_v55 = vld [vmem:[#allocation11_spill] sm:$0xff]  ;;  %v1168_v37 = vmul.f32 %v3461_v48, %v1135_v59  ;;  %v1169_v18 = vmul.f32 %v3461_v48, %v1136_v20  ;;  %v1173_v59 = vmul.f32 %v3461_v48, %v1140_v47 }
  0xbb   : > { %4662 = vst [vmem:[#allocation22_spill] sm:$0xff] %v3626_v46  ;;  %4664 = vst [vmem:[#allocation23_spill] sm:$0xff] %v3629_v23  ;;  %v3638_v54 = vadd.f32 %v1094_v34, %v4667_v50  ;;  %v3641_v17 = vadd.f32 %v1095_v39, %v4669_v55  ;;  %v1145_v3 = vld [vmem:[%s2568_s20 + $0x7d] sm:$0x1]  ;;  %v1146_v60 = vld [vmem:[%s2568_s20 + $0x85] sm:$0x1]  ;;  %v1165_v34 = vmul.f32 %v3461_v48, %v1132_v53 }
  0xbc   : > { %4666 = vst [vmem:[#allocation24_spill] sm:$0xff] %v3632_v0  ;;  %v1147_v61 = vld [vmem:[%s2568_s20 + $0x8d] sm:$0x1]  ;;  %v1148_v19 = vld [vmem:[%s2568_s20 + $0x95] sm:$0x1]  ;;  %v1167_v39 = vmul.f32 %v3461_v48, %v1134_v56  ;;  %v1172_v53 = vmul.f32 %v3461_v48, %v1139_v33  ;;  %v1174_v23 = vmul.f32 %v3461_v48, %v1141_v6  ;;  %v1175_v46 = vmul.f32 %v3461_v48, %v1142_v62 }
  0xbd   : > { %4668 = vst [vmem:[#allocation25_spill] sm:$0xff] %v3638_v54  ;;  %4670 = vst [vmem:[#allocation26_spill] sm:$0xff] %v3641_v17  ;;  %v1149_v8 = vld [vmem:[%s2568_s20 + $0x9d] sm:$0x1]  ;;  %v1150_v52 = vld [vmem:[%s2568_s20 + $0xa5] sm:$0x1]  ;;  %v1170_v17 = vmul.f32 %v3461_v48, %v1137_v42  ;;  %v1171_v54 = vmul.f32 %v3461_v48, %v1138_v44  ;;  %v1176_v20 = vmul.f32 %v3461_v48, %v1143_v57 }
  0xbe   : > { %v1151_v50 = vld [vmem:[%s2568_s20 + $0xad] sm:$0x1]  ;;  %v1152_v25 = vld [vmem:[%s2568_s20 + $0xb5] sm:$0x1]  ;;  %v1153_v55 = vld [vmem:[%s2568_s20 + $0xbd] sm:$0x1]  ;;  %v1177_v44 = vmul.f32 %v3461_v48, %v1144_v2  ;;  %v1178_v33 = vmul.f32 %v3461_v48, %v1145_v3  ;;  %v1179_v31 = vmul.f32 %v3461_v48, %v1146_v60  ;;  %v1180_v47 = vmul.f32 %v3461_v48, %v1147_v61 }
  0xbf   : > { %v1154_v29 = vld [vmem:[%s2568_s20 + $0xc5] sm:$0x1]  ;;  %v1155_v56 = vld [vmem:[%s2568_s20 + $0xcd] sm:$0x1]  ;;  %v1156_v0 = vld [vmem:[%s2568_s20 + $0xd5] sm:$0x1]  ;;  %v1181_v45 = vmul.f32 %v3461_v48, %v1148_v19  ;;  %v1182_v62 = vmul.f32 %v3461_v48, %v1149_v8  ;;  %v1183_v57 = vmul.f32 %v3461_v48, %v1150_v52  ;;  %v1184_v58 = vmul.f32 %v3461_v48, %v1151_v50 }
  0xc0   : > { %v1157_v51 = vld [vmem:[%s2568_s20 + $0xdd] sm:$0x1]  ;;  %v1158_v42 = vld [vmem:[%s2568_s20 + $0xe5] sm:$0x1]  ;;  %v1159_v22 = vld [vmem:[%s2568_s20 + $0xed] sm:$0x1]  ;;  %v1185_v2 = vmul.f32 %v3461_v48, %v1152_v25  ;;  %v1186_v49 = vmul.f32 %v3461_v48, %v1153_v55  ;;  %v1187_v3 = vmul.f32 %v3461_v48, %v1154_v29  ;;  %v1188_v60 = vmul.f32 %v3461_v48, %v1155_v56 }
  0xc1   : > { %v1160_v1 = vld [vmem:[%s2568_s20 + $0xf5] sm:$0x1]  ;;  %v1161_v6 = vld [vmem:[%s2568_s20 + $0xfd] sm:$0x1]  ;;  %v1265_v27 = vld [vmem:[%s2568_s20 + $0x6] sm:$0x1]  ;;  %v1189_v30 = vmul.f32 %v3461_v48, %v1156_v0  ;;  %v1190_v19 = vmul.f32 %v3461_v48, %v1157_v51  ;;  %v1191_v8 = vmul.f32 %v3461_v48, %v1158_v42  ;;  %v1192_v52 = vmul.f32 %v3461_v48, %v1159_v22 }
  0xc2   : > { %v1266_v61 = vld [vmem:[%s2568_s20 + $0xe] sm:$0x1]  ;;  %v1267_v63 = vld [vmem:[%s2568_s20 + $0x16] sm:$0x1]  ;;  %v1193_v50 = vmul.f32 %v3461_v48, %v1160_v1  ;;  %v1194_v25 = vmul.f32 %v3461_v48, %v1161_v6  ;;  %v3697_v55 = vmul.f32 %v3470_v41, %v1265_v27  ;;  %v1199_v29 = vsel %vm1198_vm4, %v1163_v5, 0.0 }
  0xc3   : > { %v1200_v0 = vsel %vm1198_vm4, %v1164_v7, 0.0  ;;  %v3704_v51 = vmul.f32 %v3470_v41, %v1266_v61  ;;  %v3707_v22 = vmul.f32 %v3470_v41, %v1267_v63  ;;  %v1201_v48 = vsel %vm1198_vm4, %v1165_v34, 0.0 }
  0xc4   : > { %v1202_v1 = vsel %vm1198_vm4, %v1166_v24, 0.0  ;;  %v1203_v27 = vsel %vm1198_vm4, %v1167_v39, 0.0  ;;  %v1204_v5 = vsel %vm1198_vm4, %v1168_v37, 0.0  ;;  %v1205_v7 = vsel %vm1198_vm4, %v1169_v18, 0.0 }
  0xc5   : > { %v1206_v56 = vsel %vm1198_vm4, %v1170_v17, 0.0  ;;  %v1207_v63 = vsel %vm1198_vm4, %v1171_v54, 0.0  ;;  %v1208_v34 = vsel %vm1198_vm4, %v1172_v53, 0.0  ;;  %v1209_v24 = vsel %vm1198_vm4, %v1173_v59, 0.0 }
  0xc6   : > { %v1210_v39 = vsel %vm1198_vm4, %v1174_v23, 0.0  ;;  %v1211_v37 = vsel %vm1198_vm4, %v1175_v46, 0.0  ;;  %v1212_v18 = vsel %vm1198_vm4, %v1176_v20, 0.0  ;;  %v1213_v17 = vsel %vm1198_vm4, %v1177_v44, 0.0 }
  0xc7   : > { %v1214_v54 = vsel %vm1198_vm4, %v1178_v33, 0.0  ;;  %v1215_v53 = vsel %vm1198_vm4, %v1179_v31, 0.0  ;;  %v1216_v59 = vsel %vm1198_vm4, %v1180_v47, 0.0  ;;  %v1217_v23 = vsel %vm1198_vm4, %v1181_v45, 0.0 }
  0xc8   : > { %v1218_v46 = vsel %vm1198_vm4, %v1182_v62, 0.0  ;;  %v1219_v20 = vsel %vm1198_vm4, %v1183_v57, 0.0  ;;  %v1220_v42 = vsel %vm1198_vm4, %v1184_v58, 0.0  ;;  %v1221_v44 = vsel %vm1198_vm4, %v1185_v2, 0.0 }
  0xc9   : > { %v1222_v31 = vsel %vm1198_vm4, %v1186_v49, 0.0  ;;  %v1223_v33 = vsel %vm1198_vm4, %v1187_v3, 0.0  ;;  %v1224_v45 = vsel %vm1198_vm4, %v1188_v60, 0.0  ;;  %v1225_v47 = vsel %vm1198_vm4, %v1189_v30, 0.0 }
  0xca   : > { %v1226_v6 = vsel %vm1198_vm4, %v1190_v19, 0.0  ;;  %v1227_v58 = vsel %vm1198_vm4, %v1191_v8, 0.0  ;;  %v1228_v62 = vsel %vm1198_vm4, %v1192_v52, 0.0  ;;  %v1229_v49 = vsel %vm1198_vm4, %v1193_v50, 0.0  ;;  %v1268_v19 = vld [vmem:[%s2568_s20 + $0x1e] sm:$0x1] }
  0xcb   : > { %v1230_v57 = vsel %vm1198_vm4, %v1194_v25, 0.0  ;;  %v3770_v2 = vadd.f32 %v1199_v29, %v3533_v35  ;;  %v3773_v30 = vadd.f32 %v1200_v0, %v3536_v13  ;;  %v3776_v3 = vadd.f32 %v1201_v48, %v3539_v40  ;;  %v1271_v52 = vld [vmem:[%s2568_s20 + $0x36] sm:$0x1]  ;;  %v1272_v50 = vld [vmem:[%s2568_s20 + $0x3e] sm:$0x1] }
  0xcc   : > { %v3779_v60 = vadd.f32 %v1202_v1, %v3542_v26  ;;  %v3782_v61 = vadd.f32 %v1203_v27, %v3545_v15  ;;  %v3785_v4 = vadd.f32 %v1204_v5, %v3548_v16  ;;  %v3788_v35 = vadd.f32 %v1205_v7, %v3551_v32  ;;  %v1273_v25 = vld [vmem:[%s2568_s20 + $0x46] sm:$0x1]  ;;  %v4678_v1 = vld [vmem:[#allocation16_spill] sm:$0xff]  ;;  %v1274_v5 = vld [vmem:[%s2568_s20 + $0x4e] sm:$0x1] }
  0xcd   : > { %v3791_v13 = vadd.f32 %v1206_v56, %v3554_v38  ;;  %v3794_v40 = vadd.f32 %v1207_v63, %v3557_v14  ;;  %v3797_v26 = vadd.f32 %v1208_v34, %v3560_v43  ;;  %v3800_v15 = vadd.f32 %v1209_v24, %v3563_v21  ;;  %v1269_v14 = vld [vmem:[%s2568_s20 + $0x26] sm:$0x1]  ;;  %v1275_v7 = vld [vmem:[%s2568_s20 + $0x56] sm:$0x1]  ;;  %v1276_v56 = vld [vmem:[%s2568_s20 + $0x5e] sm:$0x1] }
  0xce   : > { %v3803_v16 = vadd.f32 %v1210_v39, %v3566_v28  ;;  %v3806_v32 = vadd.f32 %v1211_v37, %v3569_v12  ;;  %v3809_v38 = vadd.f32 %v1212_v18, %v3572_v9  ;;  %v3814_v43 = vadd.f32 %v1213_v17, %v3577_v36  ;;  %v4671_v12 = vld [vmem:[#allocation12_spill] sm:$0xff]  ;;  %v1270_v9 = vld [vmem:[%s2568_s20 + $0x2e] sm:$0x1]  ;;  %v4672_v36 = vld [vmem:[#allocation13_spill] sm:$0xff] }
  0xcf   : > { %v3817_v21 = vadd.f32 %v1214_v54, %v3580_v11  ;;  %v3820_v28 = vadd.f32 %v1215_v53, %v3583_v10  ;;  %v3823_v8 = vadd.f32 %v1216_v59, %v4671_v12  ;;  %v3831_v29 = vadd.f32 %v1217_v23, %v4672_v36  ;;  %v4674_v11 = vld [vmem:[#allocation14_spill] sm:$0xff]  ;;  %v4676_v10 = vld [vmem:[#allocation15_spill] sm:$0xff]  ;;  %v4680_v34 = vld [vmem:[#allocation17_spill] sm:$0xff] }
  0xd0   : > { %v3834_v0 = vadd.f32 %v1218_v46, %v4674_v11  ;;  %v3837_v48 = vadd.f32 %v1219_v20, %v4676_v10  ;;  %v3840_v27 = vadd.f32 %v1220_v42, %v4678_v1  ;;  %v1277_v63 = vld [vmem:[%s2568_s20 + $0x66] sm:$0x1]  ;;  %v3847_v24 = vadd.f32 %v1221_v44, %v4680_v34  ;;  %v4684_v18 = vld [vmem:[#allocation19_spill] sm:$0xff]  ;;  %v4686_v54 = vld [vmem:[#allocation20_spill] sm:$0xff] }
  0xd1   : > { %4673 = vst [vmem:[#allocation10_spill] sm:$0xff] %v3831_v29  ;;  %v4682_v39 = vld [vmem:[#allocation18_spill] sm:$0xff]  ;;  %v3853_v17 = vadd.f32 %v1223_v33, %v4684_v18  ;;  %v3856_v53 = vadd.f32 %v1224_v45, %v4686_v54  ;;  %v1278_v59 = vld [vmem:[%s2568_s20 + $0x6e] sm:$0x1]  ;;  %v1279_v23 = vld [vmem:[%s2568_s20 + $0x76] sm:$0x1]  ;;  %v1301_v18 = vmul.f32 %v3470_v41, %v1268_v19  ;;  %v1302_v54 = vmul.f32 %v3470_v41, %v1269_v14 }
  0xd2   : > { %4675 = vst [vmem:[#allocation11_spill] sm:$0xff] %v3834_v0  ;;  %4677 = vst [vmem:[#allocation12_spill] sm:$0xff] %v3837_v48  ;;  %v3850_v37 = vadd.f32 %v1222_v31, %v4682_v39  ;;  %v1280_v46 = vld [vmem:[%s2568_s20 + $0x7e] sm:$0x1]  ;;  %v1281_v20 = vld [vmem:[%s2568_s20 + $0x86] sm:$0x1]  ;;  %v1306_v19 = vmul.f32 %v3470_v41, %v1273_v25  ;;  %v1312_v25 = vmul.f32 %v3470_v41, %v1279_v23  ;;  %v3947_v29 = vstv %s3884_s19 }
  0xd3   : > { %4679 = vst [vmem:[#allocation13_spill] sm:$0xff] %v3840_v27  ;;  %4681 = vst [vmem:[#allocation14_spill] sm:$0xff] %v3847_v24  ;;  %v4688_v42 = vld [vmem:[#allocation21_spill] sm:$0xff]  ;;  %v4690_v12 = vld [vmem:[#allocation22_spill] sm:$0xff] }
  0xd4   : > { %4683 = vst [vmem:[#allocation15_spill] sm:$0xff] %v3850_v37  ;;  %4685 = vst [vmem:[#allocation16_spill] sm:$0xff] %v3853_v17  ;;  %v3863_v44 = vadd.f32 %v1225_v47, %v4688_v42  ;;  %v3866_v31 = vadd.f32 %v1226_v6, %v4690_v12  ;;  %v4692_v33 = vld [vmem:[#allocation23_spill] sm:$0xff]  ;;  %v4694_v45 = vld [vmem:[#allocation24_spill] sm:$0xff] }
  0xd5   : > { %4687 = vst [vmem:[#allocation17_spill] sm:$0xff] %v3856_v53  ;;  %v3869_v36 = vadd.f32 %v1227_v58, %v4692_v33  ;;  %v3872_v11 = vadd.f32 %v1228_v62, %v4694_v45  ;;  %v1282_v10 = vld [vmem:[%s2568_s20 + $0x8e] sm:$0x1]  ;;  %v1283_v1 = vld [vmem:[%s2568_s20 + $0x96] sm:$0x1]  ;;  %v4697_v47 = vld [vmem:[#allocation25_spill] sm:$0xff]  ;;  %v1303_v33 = vmul.f32 %v3470_v41, %v1270_v9  ;;  %v1305_v45 = vmul.f32 %v3470_v41, %v1272_v50 }
  0xd6   : > { %4689 = vst [vmem:[#allocation18_spill] sm:$0xff] %v3863_v44  ;;  %4691 = vst [vmem:[#allocation19_spill] sm:$0xff] %v3866_v31  ;;  %v3887_v6 = vadd.f32 %v1229_v49, %v4697_v47  ;;  %v4699_v58 = vld [vmem:[#allocation26_spill] sm:$0xff]  ;;  %v1284_v62 = vld [vmem:[%s2568_s20 + $0x9e] sm:$0x1]  ;;  %v1310_v9 = vmul.f32 %v3470_v41, %v1277_v63  ;;  %v1311_v50 = vmul.f32 %v3470_v41, %v1278_v59 }
  0xd7   : > { %4693 = vst [vmem:[#allocation20_spill] sm:$0xff] %v3869_v36  ;;  %4695 = vst [vmem:[#allocation21_spill] sm:$0xff] %v3872_v11  ;;  %v3890_v34 = vadd.f32 %v1230_v57, %v4699_v58  ;;  %v1285_v39 = vld [vmem:[%s2568_s20 + $0xa6] sm:$0x1]  ;;  %v1286_v42 = vld [vmem:[%s2568_s20 + $0xae] sm:$0x1]  ;;  %v1304_v57 = vmul.f32 %v3470_v41, %v1271_v52  ;;  %v1309_v11 = vmul.f32 %v3470_v41, %v1276_v56 }
  0xd8   : > { %4698 = vst [vmem:[#allocation22_spill] sm:$0xff] %v3887_v6  ;;  %v1287_v49 = vld [vmem:[%s2568_s20 + $0xb6] sm:$0x1]  ;;  %v1288_v12 = vld [vmem:[%s2568_s20 + $0xbe] sm:$0x1]  ;;  %v1308_v6 = vmul.f32 %v3470_v41, %v1275_v7  ;;  %v1313_v31 = vmul.f32 %v3470_v41, %v1280_v46  ;;  %v1314_v44 = vmul.f32 %v3470_v41, %v1281_v20  ;;  %v1315_v56 = vmul.f32 %v3470_v41, %v1282_v10 }
  0xd9   : > { %4700 = vst [vmem:[#allocation23_spill] sm:$0xff] %v3890_v34  ;;  %v1289_v14 = vld [vmem:[%s2568_s20 + $0xc6] sm:$0x1]  ;;  %v1290_v47 = vld [vmem:[%s2568_s20 + $0xce] sm:$0x1]  ;;  %v1307_v34 = vmul.f32 %v3470_v41, %v1274_v5  ;;  %v1316_v63 = vmul.f32 %v3470_v41, %v1283_v1  ;;  %v1317_v53 = vmul.f32 %v3470_v41, %v1284_v62  ;;  %v1318_v59 = vmul.f32 %v3470_v41, %v1285_v39 }
  0xda   : > { %v1291_v58 = vld [vmem:[%s2568_s20 + $0xd6] sm:$0x1]  ;;  %v1292_v52 = vld [vmem:[%s2568_s20 + $0xde] sm:$0x1]  ;;  %v1293_v36 = vld [vmem:[%s2568_s20 + $0xe6] sm:$0x1]  ;;  %v1319_v46 = vmul.f32 %v3470_v41, %v1286_v42  ;;  %v1320_v20 = vmul.f32 %v3470_v41, %v1287_v49  ;;  %v1321_v17 = vmul.f32 %v3470_v41, %v1288_v12  ;;  %v1322_v37 = vmul.f32 %v3470_v41, %v1289_v14 }
  0xdb   : > { %v1294_v5 = vld [vmem:[%s2568_s20 + $0xee] sm:$0x1]  ;;  %v1295_v7 = vld [vmem:[%s2568_s20 + $0xf6] sm:$0x1]  ;;  %v1296_v23 = vld [vmem:[%s2568_s20 + $0xfe] sm:$0x1]  ;;  %v1323_v24 = vmul.f32 %v3470_v41, %v1290_v47  ;;  %v1324_v1 = vmul.f32 %v3470_v41, %v1291_v58  ;;  %v1325_v62 = vmul.f32 %v3470_v41, %v1292_v52  ;;  %v1326_v39 = vmul.f32 %v3470_v41, %v1293_v36 }
  0xdc   : > { %v1400_v10 = vld [vmem:[%s2568_s20 + $0x7] sm:$0x1]  ;;  %v1401_v27 = vld [vmem:[%s2568_s20 + $0xf] sm:$0x1]  ;;  %v1402_v48 = vld [vmem:[%s2568_s20 + $0x17] sm:$0x1]  ;;  %v1327_v0 = vmul.f32 %v3470_v41, %v1294_v5  ;;  %v1328_v42 = vmul.f32 %v3470_v41, %v1295_v7  ;;  %v1332_v49 = vstv %s1331_s15  ;;  %v1329_v12 = vmul.f32 %v3470_v41, %v1296_v23 }
  0xdd   : > { %vm1333_vm5 = vcmp.eq.s32.totalorder %v1332_v49, 1  ;;  %v3951_v14 = vmul.f32 %v3947_v29, %v1400_v10  ;;  %v3953_v47 = vstv %s1466_s16  ;;  %v3960_v52 = vmul.f32 %v3947_v29, %v1401_v27  ;;  %v4704_v49 = vld [vmem:[#allocation10_spill] sm:$0xff] }
  0xde   : > { %v1334_v36 = vsel %vm1333_vm5, %v3697_v55, 0.0  ;;  %v1335_v58 = vsel %vm1333_vm5, %v3704_v51, 0.0  ;;  %v3963_v5 = vmul.f32 %v3947_v29, %v1402_v48  ;;  %v1336_v41 = vsel %vm1333_vm5, %v3707_v22, 0.0 }
  0xdf   : > { %4702 = vst [vmem:[#allocation24_spill] sm:$0xff] %v3951_v14  ;;  %v1337_v7 = vsel %vm1333_vm5, %v1301_v18, 0.0  ;;  %v1338_v23 = vsel %vm1333_vm5, %v1302_v54, 0.0  ;;  %v1339_v10 = vsel %vm1333_vm5, %v1303_v33, 0.0  ;;  %v1340_v55 = vsel %vm1333_vm5, %v1304_v57, 0.0 }
  0xe0   : > { %4703 = vst [vmem:[#allocation25_spill] sm:$0xff] %v3963_v5  ;;  %v1341_v14 = vsel %vm1333_vm5, %v1305_v45, 0.0  ;;  %v1342_v51 = vsel %vm1333_vm5, %v1306_v19, 0.0  ;;  %v1343_v27 = vsel %vm1333_vm5, %v1307_v34, 0.0  ;;  %v1344_v48 = vsel %vm1333_vm5, %v1308_v6, 0.0 }
  0xe1   : > { %v1345_v5 = vsel %vm1333_vm5, %v1309_v11, 0.0  ;;  %v1346_v22 = vsel %vm1333_vm5, %v1310_v9, 0.0  ;;  %v1347_v18 = vsel %vm1333_vm5, %v1311_v50, 0.0  ;;  %v1348_v54 = vsel %vm1333_vm5, %v1312_v25, 0.0 }
  0xe2   : > { %v1349_v33 = vsel %vm1333_vm5, %v1313_v31, 0.0  ;;  %v1350_v57 = vsel %vm1333_vm5, %v1314_v44, 0.0  ;;  %v1351_v45 = vsel %vm1333_vm5, %v1315_v56, 0.0  ;;  %v1352_v19 = vsel %vm1333_vm5, %v1316_v63, 0.0 }
  0xe3   : > { %v1353_v34 = vsel %vm1333_vm5, %v1317_v53, 0.0  ;;  %v1354_v6 = vsel %vm1333_vm5, %v1318_v59, 0.0  ;;  %v1355_v11 = vsel %vm1333_vm5, %v1319_v46, 0.0  ;;  %v1356_v9 = vsel %vm1333_vm5, %v1320_v20, 0.0 }
  0xe4   : > { %v1357_v50 = vsel %vm1333_vm5, %v1321_v17, 0.0  ;;  %v1358_v25 = vsel %vm1333_vm5, %v1322_v37, 0.0  ;;  %v1359_v31 = vsel %vm1333_vm5, %v1323_v24, 0.0  ;;  %v1360_v44 = vsel %vm1333_vm5, %v1324_v1, 0.0 }
  0xe5   : > { %v1361_v56 = vsel %vm1333_vm5, %v1325_v62, 0.0  ;;  %v1362_v63 = vsel %vm1333_vm5, %v1326_v39, 0.0  ;;  %v1363_v53 = vsel %vm1333_vm5, %v1327_v0, 0.0  ;;  %v1364_v59 = vsel %vm1333_vm5, %v1328_v42, 0.0  ;;  %v1404_v62 = vld [vmem:[%s2568_s20 + $0x27] sm:$0x1] }
  0xe6   : > { %v1365_v46 = vsel %vm1333_vm5, %v1329_v12, 0.0  ;;  %v3997_v17 = vadd.f32 %v1334_v36, %v3770_v2  ;;  %v4000_v37 = vadd.f32 %v1335_v58, %v3773_v30  ;;  %v4003_v24 = vadd.f32 %v1336_v41, %v3776_v3  ;;  %v1405_v39 = vld [vmem:[%s2568_s20 + $0x2f] sm:$0x1]  ;;  %v1407_v42 = vld [vmem:[%s2568_s20 + $0x3f] sm:$0x1] }
  0xe7   : > { %v4006_v20 = vadd.f32 %v1337_v7, %v3779_v60  ;;  %v4009_v0 = vadd.f32 %v1338_v23, %v3782_v61  ;;  %v4012_v1 = vadd.f32 %v1339_v10, %v3785_v4  ;;  %v4015_v2 = vadd.f32 %v1340_v55, %v3788_v35  ;;  %v1410_v41 = vld [vmem:[%s2568_s20 + $0x57] sm:$0x1]  ;;  %v4708_v7 = vld [vmem:[#allocation14_spill] sm:$0xff]  ;;  %v4710_v10 = vld [vmem:[#allocation15_spill] sm:$0xff] }
  0xe8   : > { %v4018_v30 = vadd.f32 %v1341_v14, %v3791_v13  ;;  %v4021_v3 = vadd.f32 %v1342_v51, %v3794_v40  ;;  %v4024_v60 = vadd.f32 %v1343_v27, %v3797_v26  ;;  %v4027_v61 = vadd.f32 %v1344_v48, %v3800_v15  ;;  %v1403_v40 = vld [vmem:[%s2568_s20 + $0x1f] sm:$0x1]  ;;  %v4712_v51 = vld [vmem:[#allocation16_spill] sm:$0xff] }
  0xe9   : > { %v4030_v4 = vadd.f32 %v1345_v5, %v3803_v16  ;;  %v4033_v35 = vadd.f32 %v1346_v22, %v3806_v32  ;;  %v4036_v13 = vadd.f32 %v1347_v18, %v3809_v38  ;;  %v4041_v26 = vadd.f32 %v1348_v54, %v3814_v43  ;;  %v1406_v38 = vld [vmem:[%s2568_s20 + $0x37] sm:$0x1]  ;;  %v4705_v43 = vld [vmem:[#allocation11_spill] sm:$0xff]  ;;  %v4714_v48 = vld [vmem:[#allocation17_spill] sm:$0xff] }
  0xea   : > { %v4044_v15 = vadd.f32 %v1349_v33, %v3817_v21  ;;  %v4047_v16 = vadd.f32 %v1350_v57, %v3820_v28  ;;  %v4050_v32 = vadd.f32 %v1351_v45, %v3823_v8  ;;  %v4056_v12 = vadd.f32 %v1352_v19, %v4704_v49  ;;  %v4706_v21 = vld [vmem:[#allocation12_spill] sm:$0xff]  ;;  %v4707_v28 = vld [vmem:[#allocation13_spill] sm:$0xff]  ;;  %v1408_v8 = vld [vmem:[%s2568_s20 + $0x47] sm:$0x1] }
  0xeb   : > { %v4059_v14 = vadd.f32 %v1353_v34, %v4705_v43  ;;  %v4062_v36 = vadd.f32 %v1354_v6, %v4706_v21  ;;  %v4065_v58 = vadd.f32 %v1355_v11, %v4707_v28  ;;  %v1409_v5 = vld [vmem:[%s2568_s20 + $0x4f] sm:$0x1]  ;;  %v4071_v23 = vadd.f32 %v1356_v9, %v4708_v7  ;;  %v1411_v18 = vld [vmem:[%s2568_s20 + $0x5f] sm:$0x1]  ;;  %v1412_v54 = vld [vmem:[%s2568_s20 + $0x67] sm:$0x1] }
  0xec   : > { %v4074_v55 = vadd.f32 %v1357_v50, %v4710_v10  ;;  %v4077_v27 = vadd.f32 %v1358_v25, %v4712_v51  ;;  %v4080_v22 = vadd.f32 %v1359_v31, %v4714_v48  ;;  %v1413_v33 = vld [vmem:[%s2568_s20 + $0x6f] sm:$0x1]  ;;  %v4716_v57 = vld [vmem:[#allocation18_spill] sm:$0xff]  ;;  %v4720_v6 = vld [vmem:[#allocation20_spill] sm:$0xff]  ;;  %vm1468_vm6 = vcmp.eq.s32.totalorder %v3953_v47, 1 }
  0xed   : > { %4709 = vst [vmem:[#allocation26_spill] sm:$0xff] %v4071_v23  ;;  %v4086_v45 = vadd.f32 %v1360_v44, %v4716_v57  ;;  %v4718_v19 = vld [vmem:[#allocation19_spill] sm:$0xff]  ;;  %v4092_v11 = vadd.f32 %v1362_v63, %v4720_v6  ;;  %v4722_v9 = vld [vmem:[#allocation21_spill] sm:$0xff]  ;;  %v1414_v25 = vld [vmem:[%s2568_s20 + $0x77] sm:$0x1]  ;;  %v1436_v63 = vmul.f32 %v3947_v29, %v1403_v40  ;;  %v1441_v6 = vmul.f32 %v3947_v29, %v1408_v8 }
  0xee   : > { %4711 = vst [vmem:[#allocation10_spill] sm:$0xff] %v4074_v55  ;;  %4713 = vst [vmem:[#allocation11_spill] sm:$0xff] %v4077_v27  ;;  %v4089_v34 = vadd.f32 %v1361_v56, %v4718_v19  ;;  %v4095_v50 = vadd.f32 %v1363_v53, %v4722_v9  ;;  %v1415_v31 = vld [vmem:[%s2568_s20 + $0x7f] sm:$0x1]  ;;  %v1416_v49 = vld [vmem:[%s2568_s20 + $0x87] sm:$0x1]  ;;  %v1437_v53 = vmul.f32 %v3947_v29, %v1404_v62 }
  0xef   : > { %4715 = vst [vmem:[#allocation12_spill] sm:$0xff] %v4080_v22  ;;  %4717 = vst [vmem:[#allocation13_spill] sm:$0xff] %v4086_v45  ;;  %v4724_v43 = vld [vmem:[#allocation22_spill] sm:$0xff]  ;;  %v4726_v44 = vld [vmem:[#allocation23_spill] sm:$0xff]  ;;  %v1439_v19 = vmul.f32 %v3947_v29, %v1406_v38  ;;  %v1442_v62 = vmul.f32 %v3947_v29, %v1409_v5  ;;  %v1447_v8 = vmul.f32 %v3947_v29, %v1414_v25 }
  0xf0   : > { %4719 = vst [vmem:[#allocation14_spill] sm:$0xff] %v4089_v34  ;;  %4721 = vst [vmem:[#allocation15_spill] sm:$0xff] %v4092_v11  ;;  %v4101_v21 = vadd.f32 %v1364_v59, %v4724_v43  ;;  %v4104_v28 = vadd.f32 %v1365_v46, %v4726_v44  ;;  %v1417_v56 = vld [vmem:[%s2568_s20 + $0x8f] sm:$0x1]  ;;  %v1418_v7 = vld [vmem:[%s2568_s20 + $0x97] sm:$0x1]  ;;  %v1438_v59 = vmul.f32 %v3947_v29, %v1405_v39 }
  0xf1   : > { %4723 = vst [vmem:[#allocation16_spill] sm:$0xff] %v4095_v50  ;;  %v1419_v10 = vld [vmem:[%s2568_s20 + $0x9f] sm:$0x1]  ;;  %v1420_v51 = vld [vmem:[%s2568_s20 + $0xa7] sm:$0x1]  ;;  %v1440_v46 = vmul.f32 %v3947_v29, %v1407_v42  ;;  %v1443_v44 = vmul.f32 %v3947_v29, %v1410_v41  ;;  %v1445_v39 = vmul.f32 %v3947_v29, %v1412_v54  ;;  %v1446_v42 = vmul.f32 %v3947_v29, %v1413_v33 }
  0xf2   : > { %4725 = vst [vmem:[#allocation17_spill] sm:$0xff] %v4101_v21  ;;  %4727 = vst [vmem:[#allocation18_spill] sm:$0xff] %v4104_v28  ;;  %v1421_v48 = vld [vmem:[%s2568_s20 + $0xaf] sm:$0x1]  ;;  %v1422_v57 = vld [vmem:[%s2568_s20 + $0xb7] sm:$0x1]  ;;  %v1444_v28 = vmul.f32 %v3947_v29, %v1411_v18  ;;  %v1448_v11 = vmul.f32 %v3947_v29, %v1415_v31  ;;  %v1449_v34 = vmul.f32 %v3947_v29, %v1416_v49 }
  0xf3   : > { %v1423_v9 = vld [vmem:[%s2568_s20 + $0xbf] sm:$0x1]  ;;  %v1424_v40 = vld [vmem:[%s2568_s20 + $0xc7] sm:$0x1]  ;;  %v1425_v43 = vld [vmem:[%s2568_s20 + $0xcf] sm:$0x1]  ;;  %v1450_v41 = vmul.f32 %v3947_v29, %v1417_v56  ;;  %v1451_v18 = vmul.f32 %v3947_v29, %v1418_v7  ;;  %v1452_v54 = vmul.f32 %v3947_v29, %v1419_v10  ;;  %v1453_v27 = vmul.f32 %v3947_v29, %v1420_v51 }
  0xf4   : > { %v1426_v21 = vld [vmem:[%s2568_s20 + $0xd7] sm:$0x1]  ;;  %v1427_v38 = vld [vmem:[%s2568_s20 + $0xdf] sm:$0x1]  ;;  %v1428_v50 = vld [vmem:[%s2568_s20 + $0xe7] sm:$0x1]  ;;  %v1454_v55 = vmul.f32 %v3947_v29, %v1421_v48  ;;  %v1455_v33 = vmul.f32 %v3947_v29, %v1422_v57  ;;  %v1456_v25 = vmul.f32 %v3947_v29, %v1423_v9  ;;  %v1457_v31 = vmul.f32 %v3947_v29, %v1424_v40 }
  0xf5   : > { %v1429_v45 = vld [vmem:[%s2568_s20 + $0xef] sm:$0x1]  ;;  %v1430_v22 = vld [vmem:[%s2568_s20 + $0xf7] sm:$0x1]  ;;  %v1431_v5 = vld [vmem:[%s2568_s20 + $0xff] sm:$0x1]  ;;  %v1458_v49 = vmul.f32 %v3947_v29, %v1425_v43  ;;  %v1459_v23 = vmul.f32 %v3947_v29, %v1426_v21  ;;  %v1460_v56 = vmul.f32 %v3947_v29, %v1427_v38  ;;  %v1461_v7 = vmul.f32 %v3947_v29, %v1428_v50 }
  0xf6   : > { %v1462_v10 = vmul.f32 %v3947_v29, %v1429_v45  ;;  %v1463_v51 = vmul.f32 %v3947_v29, %v1430_v22  ;;  %v1464_v48 = vmul.f32 %v3947_v29, %v1431_v5  ;;  %v4728_v57 = vld [vmem:[#allocation24_spill] sm:$0xff]  ;;  %v1470_v21 = vsel %vm1468_vm6, %v3960_v52, 0.0  ;;  %v4729_v40 = vld [vmem:[#allocation25_spill] sm:$0xff] }
  0xf7   : > { %v1469_v9 = vsel %vm1468_vm6, %v4728_v57, 0.0  ;;  %v1471_v50 = vsel %vm1468_vm6, %v4729_v40, 0.0  ;;  %v1472_v45 = vsel %vm1468_vm6, %v1436_v63, 0.0  ;;  %v1473_v29 = vsel %vm1468_vm6, %v1437_v53, 0.0 }
  0xf8   : > { %v1474_v22 = vsel %vm1468_vm6, %v1438_v59, 0.0  ;;  %v1475_v43 = vsel %vm1468_vm6, %v1439_v19, 0.0  ;;  %v1476_v38 = vsel %vm1468_vm6, %v1440_v46, 0.0  ;;  %v1477_v52 = vsel %vm1468_vm6, %v1441_v6, 0.0 }
  0xf9   : > { %v1478_v5 = vsel %vm1468_vm6, %v1442_v62, 0.0  ;;  %v1479_v63 = vsel %vm1468_vm6, %v1443_v44, 0.0  ;;  %v1480_v53 = vsel %vm1468_vm6, %v1444_v28, 0.0  ;;  %v1481_v59 = vsel %vm1468_vm6, %v1445_v39, 0.0 }
  0xfa   : > { %v1482_v19 = vsel %vm1468_vm6, %v1446_v42, 0.0  ;;  %v1483_v46 = vsel %vm1468_vm6, %v1447_v8, 0.0  ;;  %v1484_v6 = vsel %vm1468_vm6, %v1448_v11, 0.0  ;;  %v1485_v62 = vsel %vm1468_vm6, %v1449_v34, 0.0 }
  0xfb   : > { %v1486_v44 = vsel %vm1468_vm6, %v1450_v41, 0.0  ;;  %v1487_v28 = vsel %vm1468_vm6, %v1451_v18, 0.0  ;;  %v1488_v39 = vsel %vm1468_vm6, %v1452_v54, 0.0  ;;  %v1489_v42 = vsel %vm1468_vm6, %v1453_v27, 0.0 }
  0xfc   : > { %v1490_v8 = vsel %vm1468_vm6, %v1454_v55, 0.0  ;;  %v1491_v11 = vsel %vm1468_vm6, %v1455_v33, 0.0  ;;  %v1492_v34 = vsel %vm1468_vm6, %v1456_v25, 0.0  ;;  %v1493_v41 = vsel %vm1468_vm6, %v1457_v31, 0.0 }
  0xfd   : > { %v1494_v18 = vsel %vm1468_vm6, %v1458_v49, 0.0  ;;  %v1495_v54 = vsel %vm1468_vm6, %v1459_v23, 0.0  ;;  %v1496_v27 = vsel %vm1468_vm6, %v1460_v56, 0.0  ;;  %v1497_v55 = vsel %vm1468_vm6, %v1461_v7, 0.0 }
  0xfe   : > { %v1498_v33 = vsel %vm1468_vm6, %v1462_v10, 0.0  ;;  %v1499_v25 = vsel %vm1468_vm6, %v1463_v51, 0.0  ;;  %v1500_v31 = vsel %vm1468_vm6, %v1464_v48, 0.0  ;;  %v4219_v49 = vadd.f32 %v1469_v9, %v3997_v17 }
  0xff   : > { %v4222_v23 = vadd.f32 %v1470_v21, %v4000_v37  ;;  %v4225_v56 = vadd.f32 %v1471_v50, %v4003_v24  ;;  %v4228_v7 = vadd.f32 %v1472_v45, %v4006_v20  ;;  %v4231_v10 = vadd.f32 %v1473_v29, %v4009_v0  ;;  %v4737_v29 = vld [vmem:[#allocation16_spill] sm:$0xff] }
 0x100   : > { %v4234_v51 = vadd.f32 %v1474_v22, %v4012_v1  ;;  %v4237_v47 = vadd.f32 %v1475_v43, %v4015_v2  ;;  %v4240_v17 = vadd.f32 %v1476_v38, %v4018_v30  ;;  %v4243_v37 = vadd.f32 %v1477_v52, %v4021_v3  ;;  %v4738_v43 = vld [vmem:[#allocation17_spill] sm:$0xff]  ;;  %v4739_v52 = vld [vmem:[#allocation18_spill] sm:$0xff] }
 0x101   : > { %v4246_v24 = vadd.f32 %v1478_v5, %v4024_v60  ;;  %v4249_v20 = vadd.f32 %v1479_v63, %v4027_v61  ;;  %v4252_v0 = vadd.f32 %v1480_v53, %v4030_v4  ;;  %v4255_v1 = vadd.f32 %v1481_v59, %v4033_v35 }
 0x102   : > { %v4258_v2 = vadd.f32 %v1482_v19, %v4036_v13  ;;  %v4261_v30 = vadd.f32 %v1483_v46, %v4041_v26  ;;  %v4264_v3 = vadd.f32 %v1484_v6, %v4044_v15  ;;  %v4267_v60 = vadd.f32 %v1485_v62, %v4047_v16  ;;  %v4730_v15 = vld [vmem:[#allocation26_spill] sm:$0xff]  ;;  %1536 = sbr.rel (%p2157_p13) target bundleno = 283 (0x11b), region = 98 }
 0x103   : > { %v4270_v61 = vadd.f32 %v1486_v44, %v4050_v32  ;;  %v4273_v4 = vadd.f32 %v1487_v28, %v4056_v12  ;;  %v4276_v35 = vadd.f32 %v1488_v39, %v4059_v14  ;;  %v4279_v13 = vadd.f32 %v1489_v42, %v4062_v36  ;;  %v4731_v16 = vld [vmem:[#allocation10_spill] sm:$0xff]  ;;  %v4732_v32 = vld [vmem:[#allocation11_spill] sm:$0xff]  ;;  %v4733_v12 = vld [vmem:[#allocation12_spill] sm:$0xff] }
 0x104   : > { %v4282_v26 = vadd.f32 %v1490_v8, %v4065_v58  ;;  %v4285_v48 = vadd.f32 %v1491_v11, %v4730_v15  ;;  %v4288_v57 = vadd.f32 %v1492_v34, %v4731_v16  ;;  %v4291_v9 = vadd.f32 %v1493_v41, %v4732_v32  ;;  %v4734_v14 = vld [vmem:[#allocation13_spill] sm:$0xff]  ;;  %v4735_v36 = vld [vmem:[#allocation14_spill] sm:$0xff]  ;;  %v4736_v58 = vld [vmem:[#allocation15_spill] sm:$0xff] }
 0x105   : > { %v4294_v21 = vadd.f32 %v1494_v18, %v4733_v12  ;;  %v4297_v40 = vadd.f32 %v1495_v54, %v4734_v14  ;;  %v4300_v50 = vadd.f32 %v1496_v27, %v4735_v36  ;;  %v4303_v45 = vadd.f32 %v1497_v55, %v4736_v58 }
 0x106   : > { %v4306_v22 = vadd.f32 %v1498_v33, %v4737_v29  ;;  %v4309_v38 = vadd.f32 %v1499_v25, %v4738_v43  ;;  %v4312_v5 = vadd.f32 %v1500_v31, %v4739_v52 }
 0x107   : > { %v1569_v63 = vrot.slane %v4222_v23, 7  ;;  %vm1570_vm7 = vcmask 1041409   ;;  %v1572_v53 = vrot.slane %v4225_v56, 6  ;;  %vm1573_vm8 = vcmask 1042434  }
 0x108   : > { %v1575_v59 = vrot.slane %v4228_v7, 5  ;;  %vm1576_vm9 = vcmask 1043459   ;;  %v1578_v19 = vrot.slane %v4231_v10, 4  ;;  %vm1579_vm10 = vcmask 1044484  }
 0x109   : > { %v1571_v46 = vsel %vm1570_vm7, %v1569_v63, %v4219_v49  ;;  %v1581_v6 = vrot.slane %v4234_v51, 3  ;;  %vm1582_vm11 = vcmask 1045509   ;;  %v1584_v62 = vrot.slane %v4237_v47, 2 }
 0x10a   : > { %v1574_v44 = vsel %vm1573_vm8, %v1572_v53, %v1571_v46  ;;  %vm1585_vm12 = vcmask 1046534   ;;  %v1587_v28 = vrot.slane %v4240_v17, 1  ;;  %vm1588_vm13 = vcmask 1047559  }
 0x10b   : > { %v1577_v39 = vsel %vm1576_vm9, %v1575_v59, %v1574_v44  ;;  %vm1636_vm14 = vcmask 261120   ;;  %v1590_v42 = vrot.slane %v4246_v24, 7  ;;  %v1592_v8 = vrot.slane %v4249_v20, 6 }
 0x10c   : > { %v1580_v11 = vsel %vm1579_vm10, %v1578_v19, %v1577_v39  ;;  %v1594_v34 = vrot.slane %v4252_v0, 5  ;;  %v1596_v41 = vrot.slane %v4255_v1, 4  ;;  %v1598_v18 = vrot.slane %v4258_v2, 3 }
 0x10d   : > { %v1583_v54 = vsel %vm1582_vm11, %v1581_v6, %v1580_v11  ;;  %v1591_v27 = vsel %vm1570_vm7, %v1590_v42, %v4243_v37  ;;  %v1600_v55 = vrot.slane %v4261_v30, 2  ;;  %v1602_v33 = vrot.slane %v4264_v3, 1 }
 0x10e   : > { %v1586_v25 = vsel %vm1585_vm12, %v1584_v62, %v1583_v54  ;;  %v1593_v31 = vsel %vm1573_vm8, %v1592_v8, %v1591_v27  ;;  %v1604_v15 = vrot.slane %v4270_v61, 7  ;;  %v1606_v16 = vrot.slane %v4273_v4, 6 }
 0x10f   : > { %v1589_v32 = vsel %vm1588_vm13, %v1587_v28, %v1586_v25  ;;  %v1595_v12 = vsel %vm1576_vm9, %v1594_v34, %v1593_v31  ;;  %v1608_v14 = vrot.slane %v4276_v35, 5  ;;  %v1610_v36 = vrot.slane %v4279_v13, 4 }
 0x110   : > { %1637 = vst.msk [vmem:[#allocation2] sm:$0xff] %vm1636_vm14, %v1589_v32  ;;  %v1597_v58 = vsel %vm1579_vm10, %v1596_v41, %v1595_v12  ;;  %v1605_v29 = vsel %vm1570_vm7, %v1604_v15, %v4267_v60  ;;  %v1612_v43 = vrot.slane %v4282_v26, 3  ;;  %v1614_v52 = vrot.slane %v4285_v48, 2 }
 0x111   : > { %v1599_v63 = vsel %vm1582_vm11, %v1598_v18, %v1597_v58  ;;  %v1607_v53 = vsel %vm1573_vm8, %v1606_v16, %v1605_v29  ;;  %v1616_v59 = vrot.slane %v4288_v57, 1  ;;  %v1618_v19 = vrot.slane %v4294_v21, 7 }
 0x112   : > { %v1601_v46 = vsel %vm1585_vm12, %v1600_v55, %v1599_v63  ;;  %v1609_v6 = vsel %vm1576_vm9, %v1608_v14, %v1607_v53  ;;  %v1620_v62 = vrot.slane %v4297_v40, 6  ;;  %v1622_v44 = vrot.slane %v4300_v50, 5 }
 0x113   : > { %v1603_v28 = vsel %vm1588_vm13, %v1602_v33, %v1601_v46  ;;  %v1611_v39 = vsel %vm1579_vm10, %v1610_v36, %v1609_v6  ;;  %v1619_v42 = vsel %vm1570_vm7, %v1618_v19, %v4291_v9  ;;  %v1624_v8 = vrot.slane %v4303_v45, 4 }
 0x114   : > { %1638 = vst.msk [vmem:[#allocation2 + $0x8] sm:$0xff] %vm1636_vm14, %v1603_v28  ;;  %v1613_v11 = vsel %vm1582_vm11, %v1612_v43, %v1611_v39  ;;  %v1621_v34 = vsel %vm1573_vm8, %v1620_v62, %v1619_v42  ;;  %v1626_v41 = vrot.slane %v4306_v22, 3  ;;  %v1628_v18 = vrot.slane %v4309_v38, 2 }
 0x115   : > { %v1615_v54 = vsel %vm1585_vm12, %v1614_v52, %v1613_v11  ;;  %v1623_v27 = vsel %vm1576_vm9, %v1622_v44, %v1621_v34  ;;  %v1630_v55 = vrot.slane %v4312_v5, 1 }
 0x116   : > { %v1617_v33 = vsel %vm1588_vm13, %v1616_v59, %v1615_v54  ;;  %v1625_v25 = vsel %vm1579_vm10, %v1624_v8, %v1623_v27 }
 0x117   : > { %1639 = vst.msk [vmem:[#allocation2 + $0x10] sm:$0xff] %vm1636_vm14, %v1617_v33  ;;  %v1627_v31 = vsel %vm1582_vm11, %v1626_v41, %v1625_v25 }
 0x118   : > { %v1629_v15 = vsel %vm1585_vm12, %v1628_v18, %v1627_v31 }
 0x119   : > { %v1631_v16 = vsel %vm1588_vm13, %v1630_v55, %v1629_v15 }
 0x11a   : > { %1640 = vst.msk [vmem:[#allocation2 + $0x18] sm:$0xff] %vm1636_vm14, %v1631_v16 }
 0x11b PF: > { %p2158_p0 = scmp.le.s32.totalorder %s2365_s29, 0 }
 0x11d   : > { %1644 = sbr.rel (%p2158_p0) target bundleno = 313 (0x139), region = 102 }
 0x122   : > { %v1681_v32 = vrot.slane %v4222_v23, 7  ;;  %vm1682_vm15 = vcmask 1041409   ;;  %v1684_v12 = vrot.slane %v4225_v56, 6  ;;  %vm1685_vm0 = vcmask 1042434   ;;  %v1645_v53 = vld [vmem:[#allocation2] sm:$0xff]  ;;  %v1646_v39 = vld [vmem:[#allocation2 + $0x8] sm:$0xff] }
 0x123   : > { %v1687_v14 = vrot.slane %v4228_v7, 5  ;;  %vm1688_vm1 = vcmask 1043459   ;;  %v1690_v36 = vrot.slane %v4231_v10, 4  ;;  %vm1691_vm2 = vcmask 1044484  }
 0x124   : > { %v1683_v58 = vsel %vm1682_vm15, %v1681_v32, %v4219_v49  ;;  %v1693_v29 = vrot.slane %v4234_v51, 3  ;;  %vm1694_vm3 = vcmask 1045509   ;;  %v1696_v43 = vrot.slane %v4237_v47, 2 }
 0x125   : > { %v1686_v23 = vsel %vm1685_vm0, %v1684_v12, %v1683_v58  ;;  %vm1697_vm4 = vcmask 1046534   ;;  %v1699_v56 = vrot.slane %v4240_v17, 1  ;;  %vm1700_vm5 = vcmask 1047559  }
 0x126   : > { %v1689_v7 = vsel %vm1688_vm1, %v1687_v14, %v1686_v23  ;;  %vm1752_vm6 = vcmask 261120   ;;  %v1702_v10 = vrot.slane %v4246_v24, 7  ;;  %v1704_v52 = vrot.slane %v4249_v20, 6 }
 0x127   : > { %v1692_v49 = vsel %vm1691_vm2, %v1690_v36, %v1689_v7  ;;  %v1706_v51 = vrot.slane %v4252_v0, 5  ;;  %v1708_v63 = vrot.slane %v4255_v1, 4  ;;  %v1710_v47 = vrot.slane %v4258_v2, 3 }
 0x128   : > { %v1695_v59 = vsel %vm1694_vm3, %v1693_v29, %v1692_v49  ;;  %v1703_v17 = vsel %vm1682_vm15, %v1702_v10, %v4243_v37  ;;  %v1712_v19 = vrot.slane %v4261_v30, 2  ;;  %v1714_v24 = vrot.slane %v4264_v3, 1 }
 0x129   : > { %v1698_v20 = vsel %vm1697_vm4, %v1696_v43, %v1695_v59  ;;  %v1705_v46 = vsel %vm1685_vm0, %v1704_v52, %v1703_v17  ;;  %v1716_v0 = vrot.slane %v4270_v61, 7  ;;  %v1718_v1 = vrot.slane %v4273_v4, 6 }
 0x12a   : > { %v1701_v2 = vsel %vm1700_vm5, %v1699_v56, %v1698_v20  ;;  %v1707_v6 = vsel %vm1688_vm1, %v1706_v51, %v1705_v46  ;;  %v1720_v62 = vrot.slane %v4276_v35, 5  ;;  %v1722_v37 = vrot.slane %v4279_v13, 4 }
 0x12b   : > { %v1748_v44 = vadd.f32 %v1701_v2, %v1645_v53  ;;  %v1709_v30 = vsel %vm1691_vm2, %v1708_v63, %v1707_v6  ;;  %v1717_v3 = vsel %vm1682_vm15, %v1716_v0, %v4267_v60  ;;  %v1724_v28 = vrot.slane %v4282_v26, 3 }
 0x12c   : > { %v1711_v61 = vsel %vm1694_vm3, %v1710_v47, %v1709_v30  ;;  %v1719_v4 = vsel %vm1685_vm0, %v1718_v1, %v1717_v3  ;;  %v1726_v42 = vrot.slane %v4285_v48, 2  ;;  %v1728_v8 = vrot.slane %v4288_v57, 1  ;;  %v1647_v57 = vld [vmem:[#allocation2 + $0x10] sm:$0xff] }
 0x12d   : > { %1753 = vst.msk [vmem:[#allocation2] sm:$0xff] %vm1752_vm6, %v1748_v44  ;;  %v1713_v35 = vsel %vm1697_vm4, %v1712_v19, %v1711_v61  ;;  %v1721_v13 = vsel %vm1688_vm1, %v1720_v62, %v1719_v4  ;;  %v1730_v11 = vrot.slane %v4294_v21, 7  ;;  %v1732_v60 = vrot.slane %v4297_v40, 6 }
 0x12e   : > { %v1715_v26 = vsel %vm1700_vm5, %v1714_v24, %v1713_v35  ;;  %v1723_v34 = vsel %vm1691_vm2, %v1722_v37, %v1721_v13  ;;  %v1734_v41 = vrot.slane %v4300_v50, 5  ;;  %v1736_v48 = vrot.slane %v4303_v45, 4 }
 0x12f   : > { %v1749_v18 = vadd.f32 %v1715_v26, %v1646_v39  ;;  %v1725_v54 = vsel %vm1694_vm3, %v1724_v28, %v1723_v34  ;;  %v1731_v27 = vsel %vm1682_vm15, %v1730_v11, %v4291_v9  ;;  %v1738_v55 = vrot.slane %v4306_v22, 3  ;;  %v1648_v9 = vld [vmem:[#allocation2 + $0x18] sm:$0xff] }
 0x130   : > { %v1727_v21 = vsel %vm1697_vm4, %v1726_v42, %v1725_v54  ;;  %v1733_v40 = vsel %vm1685_vm0, %v1732_v60, %v1731_v27  ;;  %v1740_v33 = vrot.slane %v4309_v38, 2  ;;  %v1742_v25 = vrot.slane %v4312_v5, 1 }
 0x131   : > { %1754 = vst.msk [vmem:[#allocation2 + $0x8] sm:$0xff] %vm1752_vm6, %v1749_v18  ;;  %v1729_v50 = vsel %vm1700_vm5, %v1728_v8, %v1727_v21  ;;  %v1735_v45 = vsel %vm1688_vm1, %v1734_v41, %v1733_v40 }
 0x132   : > { %v1750_v31 = vadd.f32 %v1729_v50, %v1647_v57  ;;  %v1737_v15 = vsel %vm1691_vm2, %v1736_v48, %v1735_v45 }
 0x133   : > { %v1739_v22 = vsel %vm1694_vm3, %v1738_v55, %v1737_v15 }
 0x134   : > { %1755 = vst.msk [vmem:[#allocation2 + $0x10] sm:$0xff] %vm1752_vm6, %v1750_v31  ;;  %v1741_v16 = vsel %vm1697_vm4, %v1740_v33, %v1739_v22 }
 0x135   : > { %v1743_v38 = vsel %vm1700_vm5, %v1742_v25, %v1741_v16 }
 0x136   : > { %v1751_v32 = vadd.f32 %v1743_v38, %v1648_v9 }
 0x138   : > { %1756 = vst.msk [vmem:[#allocation2 + $0x18] sm:$0xff] %vm1752_vm6, %v1751_v32 }
 0x139 PF: > { %p2159_p1 = scmp.ne.s32.totalorder %s2365_s29, 1 }
 0x13b   : > { %1760 = sbr.rel (%p2159_p1) target bundleno = 1035 (0x40b), region = 106 }
 0x140   : > { %v1761_v5 = vld [vmem:[#allocation2] sm:$0xff]  ;;  %vm1765_vm7 = vcmask 261120   ;;  %v1763_v12 = vld [vmem:[#allocation2 + $0x10] sm:$0xff]  ;;  %v1762_v14 = vld [vmem:[#allocation2 + $0x8] sm:$0xff] }
 0x141   : > { %v1766_v36 = vsel %vm1765_vm7, %v1761_v5, 0.0  ;;  %v1772_v58 = vsel %vm1765_vm7, %v1763_v12, 0.0  ;;  %v1764_v29 = vld [vmem:[#allocation2 + $0x18] sm:$0xff]  ;;  %v1769_v43 = vsel %vm1765_vm7, %v1762_v14, 0.0  ;;  %v1843_v44 = vld [vmem:[%s4537_s4 + $0x10] sm:$0xff]  ;;  %v1842_v30 = vld [vmem:[%s4537_s4 + $0x8] sm:$0xff] }
 0x142   : > { %1767 = vadd.xlane.f32.xlu0 %v1766_v36  ;;  %1773 = vadd.xlane.f32.xlu1 %v1772_v58  ;;  %v1775_v23 = vsel %vm1765_vm7, %v1764_v29, 0.0  ;;  %v1844_v37 = vld [vmem:[%s4537_s4 + $0x18] sm:$0xff]  ;;  %v1841_v3 = vld [vmem:[%s4537_s4] sm:$0xff]  ;;  %v1955_v32 = vld [vmem:[%s4539_s6 + $0x10] sm:$0xff] }
 0x143   : > { %2192 = vmatprep.subr.mxu0 %v1844_v37  ;;  %v2160_v48 = vld [vmem:[%s4535_s2] ss:$0 sm:$0xff]  ;;  %v1956_v38 = vld [vmem:[%s4539_s6 + $0x18] sm:$0xff] }
 0x144   : > { %2193 = vmatpush3.msra.mxu0 %v1844_v37  ;;  %v2161_v57 = vld [vmem:[%s4536_s3] ss:$0 sm:$0xff]  ;;  %2206 = vmatprep.subr.mxu1 %v1956_v38 }
 0x145   : > { %2194 = vmatprep.subr.mxu0 %v1843_v44  ;;  %2207 = vmatpush3.msra.mxu1 %v1956_v38 }
 0x146   : > { %1770 = vadd.xlane.f32.xlu0 %v1769_v43  ;;  %1776 = vadd.xlane.f32.xlu1 %v1775_v23 }
 0x147   : > { %2195 = vmatpush3.msra.mxu0 %v1843_v44  ;;  %2208 = vmatprep.subr.mxu1 %v1955_v32 }
 0x148   : > { %2196 = vmatprep.subr.mxu0 %v1842_v30  ;;  %2209 = vmatpush3.msra.mxu1 %v1955_v32 }
 0x149   : > { %2197 = vmatpush3.msra.mxu0 %v1842_v30 }
 0x14a   : > { %2198 = vmatprep.subr.mxu0 %v1841_v3 }
 0x14b   : > { %2199 = vmatpush3.msra.mxu0 %v1841_v3 }
 0x1cb   : > { %v1768_v56 = vpop.xlane.xlu0 %1767  ;;  %v1774_v7 = vpop.xlane.xlu1 %1773 }
 0x1cc   : > { %v1779_v10 = vmul.f32 0.03125, %v1768_v56  ;;  %v1781_v52 = vmul.f32 0.03125, %v1774_v7 }
 0x1ce   : > { %v1783_v49 = vsub.f32 %v1761_v5, %v1779_v10  ;;  %v1785_v51 = vsub.f32 %v1763_v12, %v1781_v52  ;;  %v1954_v5 = vld [vmem:[%s4539_s6 + $0x8] sm:$0xff]  ;;  %v1953_v12 = vld [vmem:[%s4539_s6] sm:$0xff] }
 0x1cf   : > { %v1771_v63 = vpop.xlane.xlu0 %1770  ;;  %v1777_v47 = vpop.xlane.xlu1 %1776  ;;  %2210 = vmatprep.subr.mxu1 %v1954_v5 }
 0x1d0   : > { %v1780_v53 = vmul.f32 0.03125, %v1771_v63  ;;  %v1782_v59 = vmul.f32 0.03125, %v1777_v47  ;;  %v1787_v17 = vmul.f32 %v1783_v49, %v1783_v49  ;;  %v1789_v19 = vmul.f32 %v1785_v51, %v1785_v51  ;;  %2211 = vmatpush3.msra.mxu1 %v1954_v5  ;;  %v2167_v47 = vld [vmem:[%s4540_s7] ss:$0 sm:$0xff] }
 0x1d1   : > { %2212 = vmatprep.subr.mxu1 %v1953_v12 }
 0x1d2   : > { %v1784_v24 = vsub.f32 %v1762_v14, %v1780_v53  ;;  %v1786_v20 = vsub.f32 %v1764_v29, %v1782_v59  ;;  %v1791_v46 = vsel %vm1765_vm7, %v1787_v17, 0.0  ;;  %v1797_v0 = vsel %vm1765_vm7, %v1789_v19, 0.0  ;;  %2213 = vmatpush3.msra.mxu1 %v1953_v12  ;;  %v2162_v14 = vld [vmem:[%s4538_s5] ss:$0 sm:$0xff] }
 0x1d3   : > { %1792 = vadd.xlane.f32.xlu0 %v1791_v46 }
 0x1d4   : > { %v1788_v1 = vmul.f32 %v1784_v24, %v1784_v24  ;;  %v1790_v2 = vmul.f32 %v1786_v20, %v1786_v20 }
 0x1d6   : > { %v1794_v6 = vsel %vm1765_vm7, %v1788_v1, 0.0  ;;  %v1800_v62 = vsel %vm1765_vm7, %v1790_v2, 0.0 }
 0x1d7   : > { %1798 = vadd.xlane.f32.xlu0 %v1797_v0  ;;  %1795 = vadd.xlane.f32.xlu1 %v1794_v6 }
 0x1db   : > { %1801 = vadd.xlane.f32.xlu1 %v1800_v62 }
 0x25c   : > { %v1793_v28 = vpop.xlane.xlu0 %1792 }
 0x25d   : > { %v1803_v39 = vmul.f32 0.03125, %v1793_v28 }
 0x25f   : > { %v1807_v61 = vadd.f32 1e-05, %v1803_v39 }
 0x260   : > { %v1796_v4 = vpop.xlane.xlu1 %1795  ;;  %v1799_v42 = vpop.xlane.xlu0 %1798 }
 0x261   : > { %2280 = vrsqrt.f32 %v1807_v61  ;;  %v1804_v8 = vmul.f32 0.03125, %v1796_v4  ;;  %v1805_v35 = vmul.f32 0.03125, %v1799_v42 }
 0x263   : > { %v1808_v13 = vadd.f32 1e-05, %v1804_v8  ;;  %v1809_v11 = vadd.f32 1e-05, %v1805_v35 }
 0x264   : > { %v1802_v60 = vpop.xlane.xlu1 %1801 }
 0x265   : > { %2282 = vrsqrt.f32 %v1808_v13  ;;  %v1806_v26 = vmul.f32 0.03125, %v1802_v60 }
 0x266   : > { %2284 = vrsqrt.f32 %v1809_v11 }
 0x267   : > { %v1810_v34 = vadd.f32 1e-05, %v1806_v26 }
 0x269   : > { %2286 = vrsqrt.f32 %v1810_v34 }
 0x26e   : > { %v2281_v41 = vpop.eup %2280 }
 0x26f   : > { %v1815_v18 = vmul.f32 %v2281_v41, %v1783_v49 }
 0x271   : > { %v1826_v54 = vmul.f32 %v2160_v48, %v1815_v18 }
 0x272   : > { %v2283_v27 = vpop.eup %2282 }
 0x273   : > { %v2285_v55 = vpop.eup %2284  ;;  %v1837_v21 = vadd.f32 %v2161_v57, %v1826_v54  ;;  %v1816_v40 = vmul.f32 %v2283_v27, %v1784_v24 }
 0x274   : > { %v1817_v33 = vmul.f32 %v2285_v55, %v1785_v51 }
 0x275   : > { %2200 = vmatprep.mubr.msk.f32.mxu0 %vm1765_vm7, %v1837_v21  ;;  %v1827_v50 = vmul.f32 %v2160_v48, %v1816_v40 }
 0x276   : > { %v2287_v45 = vpop.eup %2286  ;;  %v1828_v25 = vmul.f32 %v2160_v48, %v1817_v33 }
 0x277   : > { %v1838_v31 = vadd.f32 %v2161_v57, %v1827_v50  ;;  %v1818_v15 = vmul.f32 %v2287_v45, %v1786_v20 }
 0x278   : > { %v1839_v9 = vadd.f32 %v2161_v57, %v1828_v25 }
 0x279   : > { %2201 = vmatmul.mubr.msk.f32.vlgmr.msra.gmra.mxu0 %vm1765_vm7, %v1838_v31  ;;  %v1829_v22 = vmul.f32 %v2160_v48, %v1818_v15 }
 0x27a   : > { %2203 = vmatprep.mubr.msk.f32.mxu0 %vm1765_vm7, %v1839_v9 }
 0x27b   : > { %v1840_v16 = vadd.f32 %v2161_v57, %v1829_v22 }
 0x27d   : > { %2204 = vmatmul.mubr.msk.f32.gmra.mxu0 %vm1765_vm7, %v1840_v16 }
 0x339   : > { %v2202_v36 = vpop.f32.mrf.mxu0 }
 0x33a   : > { %v1936_v58 = vadd.f32 %v2202_v36, %v2162_v14 }
 0x33b   : > { %v1930_v29 = vpop.f32.mrf.mxu0 }
 0x33c   : > { %v1931_v43 = vadd.f32 %v2162_v14, %v1930_v29  ;;  %v1950_v7 = vmax.f32 %v1936_v58, 0.0 }
 0x33d   : > { %v2205_v23 = vpop.f32.mrf.mxu0 }
 0x33e   : > { %v1949_v56 = vmax.f32 %v1931_v43, 0.0  ;;  %v1946_v10 = vadd.f32 %v2205_v23, %v2162_v14 }
 0x33f   : > { %v1940_v52 = vpop.f32.mrf.mxu0 }
 0x340   : > { %v1941_v49 = vadd.f32 %v2162_v14, %v1940_v52  ;;  %2214 = vmatprep.mubr.msk.f32.mxu1 %vm1765_vm7, %v1949_v56  ;;  %v1952_v63 = vmax.f32 %v1946_v10, 0.0 }
 0x341   : > { %2215 = vmatmul.mubr.msk.f32.vlgmr.msra.gmra.mxu1 %vm1765_vm7, %v1950_v7 }
 0x342   : > { %v1951_v51 = vmax.f32 %v1941_v49, 0.0 }
 0x344   : > { %2217 = vmatprep.mubr.msk.f32.mxu1 %vm1765_vm7, %v1951_v51 }
 0x345   : > { %2218 = vmatmul.mubr.msk.f32.gmra.mxu1 %vm1765_vm7, %v1952_v63 }
 0x401   : > { %v2216_v53 = vpop.f32.mrf.mxu1 }
 0x402   : > { %v2048_v59 = vadd.f32 %v2216_v53, %v2167_v47 }
 0x403   : > { %v2042_v17 = vpop.f32.mrf.mxu1 }
 0x404   : > { %2062 = vst.msk [vmem:[#allocation7 + $0x8] sm:$0xff] %vm1765_vm7, %v2048_v59  ;;  %v2043_v19 = vadd.f32 %v2167_v47, %v2042_v17 }
 0x405   : > { %v2219_v24 = vpop.f32.mrf.mxu1 }
 0x406   : > { %2061 = vst.msk [vmem:[#allocation7] sm:$0xff] %vm1765_vm7, %v2043_v19  ;;  %v2058_v20 = vadd.f32 %v2219_v24, %v2167_v47 }
 0x407   : > { %v2052_v46 = vpop.f32.mrf.mxu1 }
 0x408   : > { %2064 = vst.msk [vmem:[#allocation7 + $0x18] sm:$0xff] %vm1765_vm7, %v2058_v20  ;;  %v2053_v0 = vadd.f32 %v2167_v47, %v2052_v46 }
 0x40a   : > { %2063 = vst.msk [vmem:[#allocation7 + $0x10] sm:$0xff] %vm1765_vm7, %v2053_v0 }
 0x40b PF: > { %p4503_p2 = scmp.eq.s32.totalorder %s2147_s10, 1  ;;  %s2376_s14 = smov [#allocation7]  }
 0x40c   : > { %s2074_s13 = sshll.u32 %s2376_s14, 4  ;;  %s2075_s13 = int_to_ptr.vmem [resolvable:$true] %s2074_s13 }
 0x40d   : > { %s2303_s18 = scalar_lea.vmem %s2075_s13, 512  ;;  %p2310_p3 = scmp.lt.s32.totalorder %s2075_s13, %s2075_s13 }
 0x40e   : > { %p2304_p4 = scmp.ne.s32.totalorder %s2075_s13, %s2303_s18  ;;  %p2311_p7 = scmp.lt.s32.totalorder %s2303_s18, %s2303_s18 }
 0x410   : > { %p2305_p5 = pnand %p2304_p4, %p4503_p2  ;;  %p2312_p8 = por %p2311_p7, %p2310_p3 }
 0x412   : > { %p2306_p6 = pneg %p2305_p5 }
 0x414   : > { %p2313_p9 = pnand %p2312_p8, %p2306_p6 }
 0x416   : > { %2316 = shalt.err (!%p2313_p9)
}
 0x417   : > { %s2377_s19 = smov 128   ;;  %s2378_s10 = smov 8  }
 0x418   : > { %2225 = dma.vmem_to_hbm [thread:$0]  (%p4503_p2), %s2075_s13, 512, %s4541_s8, [#allocation4], %s2377_s19, %s2377_s19, %s2378_s10  }
 0x419   : > { %2352 = dma.done.wait (%p4503_p2), [#allocation4], 512  }
 0x41a   : > { %2354 = vsyncadd (%p4503_p2), [#allocation4], 4294966784 }
 0x41b PF: > { %s20_s9 = sadd.s32 1, %s2373_s9   ;;  %s4741_s27 = smov %s2361_s28 }
 0x41c   : > { %p17_p10 = scmp.ge.s32.totalorder %s20_s9, 4   ;;  %s4742_s28 = smov %s2476_s17 }
 0x41d   : > { %s4743_s29 = smov %s2369_s30  ;;  %s4744_s30 = smov %s4746_s11 }
 0x41e   :  { %19 = sbr.rel (!%p17_p10) target bundleno = 4 (0x4), region = 140 }
 0x423   :  { %2090 = vsyncpa [#allocation4], 1 }
 0x424   :  { %2092 = vsyncpa [#allocation4 + $0x1], 1 }
 0x425   :  { %2093 = vsyncpa [#allocation5], 1 }
 0x426   :  { %2095 = vsyncpa [#allocation5 + $0x1], 1 }

</bundles_post_ra>
